<compile_context>
chip_gen: v6e
topology: v6e:2x2x1
jax: 0.10.0
libtpu: 0.0.40
codegen_flags: <defaults>
</compile_context>

<pallas_src>
import functools
import math

import jax
import jax.numpy as jnp
from jax.experimental import pallas as pl
from jax.experimental.pallas import tpu as pltpu


def _conv2d_kernel(x_ref, w_ref, b_ref, o_ref, *, H, W, KH, KW):
    """Direct conv as VPU broadcast-FMA over a lane-flattened spatial axis.

    x_ref: (1, Cin, H*W)        VMEM  one image, spatial flattened onto lanes
    w_ref: (Cout, Cin*KH*KW)    SMEM  weights read as scalars
    b_ref: (Cout,)              SMEM  bias read as scalars
    o_ref: (1, Cout, H*W)       VMEM  output in *input* spatial geometry
                                      (entry ho*W+wo is valid for ho<Ho, wo<Wo)
    """
    Cin = x_ref.shape[1]
    Cout = o_ref.shape[1]
    HW = H * W

    x_img = x_ref[0]  # (Cin, HW) single dense load

    # Bias-initialised accumulators, one lane-dense row per output channel.
    accs = [jnp.full((1, HW), b_ref[co], dtype=jnp.float32) for co in range(Cout)]

    # One XLU lane-rotation per kernel tap instead of 9 strided VMEM slices:
    #   shifted[ci, p] == x_img[ci, (p + kh*W + kw) mod HW]
    # For all valid output positions p = ho*W + wo the modulo never triggers.
    for kh in range(KH):
        for kw in range(KW):
            s = kh * W + kw
            shifted = x_img if s == 0 else pltpu.roll(x_img, HW - s, 1)
            for ci in range(Cin):
                tap = shifted[ci:ci + 1, :]            # (1, HW), lane-dense
                t = ci * KH * KW + kh * KW + kw
                for co in range(Cout):
                    accs[co] = accs[co] + w_ref[co, t] * tap   # scalar * vector FMA

    o_ref[0] = jnp.concatenate(accs, axis=0).astype(o_ref.dtype)  # (Cout, HW)


@jax.jit
def conv2d_forward(x_nchw, w_oihw, bias):
    """Equivalent of nn.Conv2d(3, 6, 3, stride=1, padding=0)(x_nchw)."""
    N, Cin, H, W = x_nchw.shape
    Cout, _, KH, KW = w_oihw.shape
    Ho, Wo = H - KH + 1, W - KW + 1
    HW = H * W

    # Free, contiguous reshapes only -- no NCHW<->NHWC / OIHW<->HWIO transposes.
    x_flat = x_nchw.reshape(N, Cin, HW)
    w_flat = w_oihw.reshape(Cout, Cin * KH * KW)

    kernel = functools.partial(_conv2d_kernel, H=H, W=W, KH=KH, KW=KW)

    out_flat = pl.pallas_call(
        kernel,
        out_shape=jax.ShapeDtypeStruct((N, Cout, HW), x_nchw.dtype),
        grid=(N,),
        in_specs=[
            pl.BlockSpec((1, Cin, HW), lambda n: (n, 0, 0)),            # VMEM (default)
            pl.BlockSpec(memory_space=pltpu.MemorySpace.SMEM),          # weights
            pl.BlockSpec(memory_space=pltpu.MemorySpace.SMEM),          # bias
        ],
        out_specs=pl.BlockSpec((1, Cout, HW), lambda n: (n, 0, 0)),
        compiler_params=pltpu.CompilerParams(
            dimension_semantics=("parallel",)),
    )(x_flat, w_flat, bias)

    # Kernel output uses the input spatial stride (W); crop to the valid window.
    return out_flat.reshape(N, Cout, H, W)[:, :, :Ho, :Wo]


if __name__ == "__main__":
    key = jax.random.PRNGKey(0)
    kx, kw, kb = jax.random.split(key, 3)

    # Shapes implied by the module: NCHW input with 3 channels.
    N, Cin, H, W = 2, 3, 16, 16
    Cout, KH, KW = 6, 3, 3

    x = jax.random.normal(kx, (N, Cin, H, W), dtype=jnp.float32)

    # Deterministic PyTorch-style init: U(-1/sqrt(fan_in), 1/sqrt(fan_in)).
    fan_in = Cin * KH * KW
    bound = 1.0 / math.sqrt(fan_in)
    weight = jax.random.uniform(kw, (Cout, Cin, KH, KW), jnp.float32,
                                minval=-bound, maxval=bound)
    bias = jax.random.uniform(kb, (Cout,), jnp.float32,
                              minval=-bound, maxval=bound)

    out = conv2d_forward(x, weight, bias)
    out = jax.block_until_ready(out)

    # Reference check against XLA's conv (NCHW / OIHW, valid padding, exact f32).
    ref = jax.lax.conv_general_dilated(
        x, weight, window_strides=(1, 1), padding="VALID",
        dimension_numbers=("NCHW", "OIHW", "NCHW"),
        precision=jax.lax.Precision.HIGHEST,
    ) + bias.reshape(1, Cout, 1, 1)
    assert out.shape == (N, Cout, H - KH + 1, W - KW + 1)
    assert jnp.allclose(out, ref, atol=1e-5, rtol=1e-5)

    print("KERNEL_OK")
</pallas_src>

<mosaic_0001>
module attributes {stable_mosaic.version = 11 : i64} {
  func.func @_conv2d_kernel(%arg0: i32, %arg1: memref<1x3x256xf32, #tpu.memory_space<vmem>>, %arg2: memref<6x27xf32, #tpu.memory_space<smem>>, %arg3: memref<6xf32, #tpu.memory_space<smem>>, %arg4: memref<1x6x256xf32, #tpu.memory_space<vmem>>) attributes {dimension_semantics = [#tpu.dimension_semantics<parallel>], iteration_bounds = array<i64: 2>, scalar_prefetch = 0 : i64, scratch_operands = 0 : i64, tpu.core_type = #tpu.core_type<tc>, window_params = [{transform_indices = @transform_0, window_bounds = array<i64: 1, 3, 256>}, {transform_indices = @transform_1, window_bounds = array<i64: 6, 27>}, {transform_indices = @transform_2, window_bounds = array<i64: 6>}, {transform_indices = @transform_3, window_bounds = array<i64: 1, 6, 256>}]} {
    %c0 = arith.constant 0 : index
    %c0_0 = arith.constant 0 : index
    %c0_1 = arith.constant 0 : index
    %0 = vector.load %arg1[%c0, %c0_0, %c0_1] : memref<1x3x256xf32, #tpu.memory_space<vmem>>, vector<1x3x256xf32>
    %1 = vector.shape_cast %0 : vector<1x3x256xf32> to vector<3x256xf32>
    %c0_2 = arith.constant 0 : index
    %2 = memref.load %arg3[%c0_2] : memref<6xf32, #tpu.memory_space<smem>>
    %3 = vector.broadcast %2 : f32 to vector<1x256xf32>
    %c1 = arith.constant 1 : index
    %4 = memref.load %arg3[%c1] : memref<6xf32, #tpu.memory_space<smem>>
    %5 = vector.broadcast %4 : f32 to vector<1x256xf32>
    %c2 = arith.constant 2 : index
    %6 = memref.load %arg3[%c2] : memref<6xf32, #tpu.memory_space<smem>>
    %7 = vector.broadcast %6 : f32 to vector<1x256xf32>
    %c3 = arith.constant 3 : index
    %8 = memref.load %arg3[%c3] : memref<6xf32, #tpu.memory_space<smem>>
    %9 = vector.broadcast %8 : f32 to vector<1x256xf32>
    %c4 = arith.constant 4 : index
    %10 = memref.load %arg3[%c4] : memref<6xf32, #tpu.memory_space<smem>>
    %11 = vector.broadcast %10 : f32 to vector<1x256xf32>
    %c5 = arith.constant 5 : index
    %12 = memref.load %arg3[%c5] : memref<6xf32, #tpu.memory_space<smem>>
    %13 = vector.broadcast %12 : f32 to vector<1x256xf32>
    %14 = vector.extract_strided_slice %1 {offsets = [0, 0], sizes = [1, 256], strides = [1, 1]} : vector<3x256xf32> to vector<1x256xf32>
    %c0_3 = arith.constant 0 : index
    %c0_4 = arith.constant 0 : index
    %15 = memref.load %arg2[%c0_3, %c0_4] : memref<6x27xf32, #tpu.memory_space<smem>>
    %16 = vector.broadcast %15 : f32 to vector<1x256xf32>
    %17 = arith.mulf %16, %14 : vector<1x256xf32>
    %18 = arith.addf %3, %17 : vector<1x256xf32>
    %c1_5 = arith.constant 1 : index
    %c0_6 = arith.constant 0 : index
    %19 = memref.load %arg2[%c1_5, %c0_6] : memref<6x27xf32, #tpu.memory_space<smem>>
    %20 = vector.broadcast %19 : f32 to vector<1x256xf32>
    %21 = arith.mulf %20, %14 : vector<1x256xf32>
    %22 = arith.addf %5, %21 : vector<1x256xf32>
    %c2_7 = arith.constant 2 : index
    %c0_8 = arith.constant 0 : index
    %23 = memref.load %arg2[%c2_7, %c0_8] : memref<6x27xf32, #tpu.memory_space<smem>>
    %24 = vector.broadcast %23 : f32 to vector<1x256xf32>
    %25 = arith.mulf %24, %14 : vector<1x256xf32>
    %26 = arith.addf %7, %25 : vector<1x256xf32>
    %c3_9 = arith.constant 3 : index
    %c0_10 = arith.constant 0 : index
    %27 = memref.load %arg2[%c3_9, %c0_10] : memref<6x27xf32, #tpu.memory_space<smem>>
    %28 = vector.broadcast %27 : f32 to vector<1x256xf32>
    %29 = arith.mulf %28, %14 : vector<1x256xf32>
    %30 = arith.addf %9, %29 : vector<1x256xf32>
    %c4_11 = arith.constant 4 : index
    %c0_12 = arith.constant 0 : index
    %31 = memref.load %arg2[%c4_11, %c0_12] : memref<6x27xf32, #tpu.memory_space<smem>>
    %32 = vector.broadcast %31 : f32 to vector<1x256xf32>
    %33 = arith.mulf %32, %14 : vector<1x256xf32>
    %34 = arith.addf %11, %33 : vector<1x256xf32>
    %c5_13 = arith.constant 5 : index
    %c0_14 = arith.constant 0 : index
    %35 = memref.load %arg2[%c5_13, %c0_14] : memref<6x27xf32, #tpu.memory_space<smem>>
    %36 = vector.broadcast %35 : f32 to vector<1x256xf32>
    %37 = arith.mulf %36, %14 : vector<1x256xf32>
    %38 = arith.addf %13, %37 : vector<1x256xf32>
    %39 = vector.extract_strided_slice %1 {offsets = [1, 0], sizes = [1, 256], strides = [1, 1]} : vector<3x256xf32> to vector<1x256xf32>
    %c0_15 = arith.constant 0 : index
    %c9 = arith.constant 9 : index
    %40 = memref.load %arg2[%c0_15, %c9] : memref<6x27xf32, #tpu.memory_space<smem>>
    %41 = vector.broadcast %40 : f32 to vector<1x256xf32>
    %42 = arith.mulf %41, %39 : vector<1x256xf32>
    %43 = arith.addf %18, %42 : vector<1x256xf32>
    %c1_16 = arith.constant 1 : index
    %c9_17 = arith.constant 9 : index
    %44 = memref.load %arg2[%c1_16, %c9_17] : memref<6x27xf32, #tpu.memory_space<smem>>
    %45 = vector.broadcast %44 : f32 to vector<1x256xf32>
    %46 = arith.mulf %45, %39 : vector<1x256xf32>
    %47 = arith.addf %22, %46 : vector<1x256xf32>
    %c2_18 = arith.constant 2 : index
    %c9_19 = arith.constant 9 : index
    %48 = memref.load %arg2[%c2_18, %c9_19] : memref<6x27xf32, #tpu.memory_space<smem>>
    %49 = vector.broadcast %48 : f32 to vector<1x256xf32>
    %50 = arith.mulf %49, %39 : vector<1x256xf32>
    %51 = arith.addf %26, %50 : vector<1x256xf32>
    %c3_20 = arith.constant 3 : index
    %c9_21 = arith.constant 9 : index
    %52 = memref.load %arg2[%c3_20, %c9_21] : memref<6x27xf32, #tpu.memory_space<smem>>
    %53 = vector.broadcast %52 : f32 to vector<1x256xf32>
    %54 = arith.mulf %53, %39 : vector<1x256xf32>
    %55 = arith.addf %30, %54 : vector<1x256xf32>
    %c4_22 = arith.constant 4 : index
    %c9_23 = arith.constant 9 : index
    %56 = memref.load %arg2[%c4_22, %c9_23] : memref<6x27xf32, #tpu.memory_space<smem>>
    %57 = vector.broadcast %56 : f32 to vector<1x256xf32>
    %58 = arith.mulf %57, %39 : vector<1x256xf32>
    %59 = arith.addf %34, %58 : vector<1x256xf32>
    %c5_24 = arith.constant 5 : index
    %c9_25 = arith.constant 9 : index
    %60 = memref.load %arg2[%c5_24, %c9_25] : memref<6x27xf32, #tpu.memory_space<smem>>
    %61 = vector.broadcast %60 : f32 to vector<1x256xf32>
    %62 = arith.mulf %61, %39 : vector<1x256xf32>
    %63 = arith.addf %38, %62 : vector<1x256xf32>
    %64 = vector.extract_strided_slice %1 {offsets = [2, 0], sizes = [1, 256], strides = [1, 1]} : vector<3x256xf32> to vector<1x256xf32>
    %c0_26 = arith.constant 0 : index
    %c18 = arith.constant 18 : index
    %65 = memref.load %arg2[%c0_26, %c18] : memref<6x27xf32, #tpu.memory_space<smem>>
    %66 = vector.broadcast %65 : f32 to vector<1x256xf32>
    %67 = arith.mulf %66, %64 : vector<1x256xf32>
    %68 = arith.addf %43, %67 : vector<1x256xf32>
    %c1_27 = arith.constant 1 : index
    %c18_28 = arith.constant 18 : index
    %69 = memref.load %arg2[%c1_27, %c18_28] : memref<6x27xf32, #tpu.memory_space<smem>>
    %70 = vector.broadcast %69 : f32 to vector<1x256xf32>
    %71 = arith.mulf %70, %64 : vector<1x256xf32>
    %72 = arith.addf %47, %71 : vector<1x256xf32>
    %c2_29 = arith.constant 2 : index
    %c18_30 = arith.constant 18 : index
    %73 = memref.load %arg2[%c2_29, %c18_30] : memref<6x27xf32, #tpu.memory_space<smem>>
    %74 = vector.broadcast %73 : f32 to vector<1x256xf32>
    %75 = arith.mulf %74, %64 : vector<1x256xf32>
    %76 = arith.addf %51, %75 : vector<1x256xf32>
    %c3_31 = arith.constant 3 : index
    %c18_32 = arith.constant 18 : index
    %77 = memref.load %arg2[%c3_31, %c18_32] : memref<6x27xf32, #tpu.memory_space<smem>>
    %78 = vector.broadcast %77 : f32 to vector<1x256xf32>
    %79 = arith.mulf %78, %64 : vector<1x256xf32>
    %80 = arith.addf %55, %79 : vector<1x256xf32>
    %c4_33 = arith.constant 4 : index
    %c18_34 = arith.constant 18 : index
    %81 = memref.load %arg2[%c4_33, %c18_34] : memref<6x27xf32, #tpu.memory_space<smem>>
    %82 = vector.broadcast %81 : f32 to vector<1x256xf32>
    %83 = arith.mulf %82, %64 : vector<1x256xf32>
    %84 = arith.addf %59, %83 : vector<1x256xf32>
    %c5_35 = arith.constant 5 : index
    %c18_36 = arith.constant 18 : index
    %85 = memref.load %arg2[%c5_35, %c18_36] : memref<6x27xf32, #tpu.memory_space<smem>>
    %86 = vector.broadcast %85 : f32 to vector<1x256xf32>
    %87 = arith.mulf %86, %64 : vector<1x256xf32>
    %88 = arith.addf %63, %87 : vector<1x256xf32>
    %c255_i32 = arith.constant 255 : i32
    %89 = tpu.dynamic_rotate %1 by %c255_i32 dim 1 : vector<3x256xf32>, i32 -> vector<3x256xf32>
    %90 = vector.extract_strided_slice %89 {offsets = [0, 0], sizes = [1, 256], strides = [1, 1]} : vector<3x256xf32> to vector<1x256xf32>
    %c0_37 = arith.constant 0 : index
    %c1_38 = arith.constant 1 : index
    %91 = memref.load %arg2[%c0_37, %c1_38] : memref<6x27xf32, #tpu.memory_space<smem>>
    %92 = vector.broadcast %91 : f32 to vector<1x256xf32>
    %93 = arith.mulf %92, %90 : vector<1x256xf32>
    %94 = arith.addf %68, %93 : vector<1x256xf32>
    %c1_39 = arith.constant 1 : index
    %c1_40 = arith.constant 1 : index
    %95 = memref.load %arg2[%c1_39, %c1_40] : memref<6x27xf32, #tpu.memory_space<smem>>
    %96 = vector.broadcast %95 : f32 to vector<1x256xf32>
    %97 = arith.mulf %96, %90 : vector<1x256xf32>
    %98 = arith.addf %72, %97 : vector<1x256xf32>
    %c2_41 = arith.constant 2 : index
    %c1_42 = arith.constant 1 : index
    %99 = memref.load %arg2[%c2_41, %c1_42] : memref<6x27xf32, #tpu.memory_space<smem>>
    %100 = vector.broadcast %99 : f32 to vector<1x256xf32>
    %101 = arith.mulf %100, %90 : vector<1x256xf32>
    %102 = arith.addf %76, %101 : vector<1x256xf32>
    %c3_43 = arith.constant 3 : index
    %c1_44 = arith.constant 1 : index
    %103 = memref.load %arg2[%c3_43, %c1_44] : memref<6x27xf32, #tpu.memory_space<smem>>
    %104 = vector.broadcast %103 : f32 to vector<1x256xf32>
    %105 = arith.mulf %104, %90 : vector<1x256xf32>
    %106 = arith.addf %80, %105 : vector<1x256xf32>
    %c4_45 = arith.constant 4 : index
    %c1_46 = arith.constant 1 : index
    %107 = memref.load %arg2[%c4_45, %c1_46] : memref<6x27xf32, #tpu.memory_space<smem>>
    %108 = vector.broadcast %107 : f32 to vector<1x256xf32>
    %109 = arith.mulf %108, %90 : vector<1x256xf32>
    %110 = arith.addf %84, %109 : vector<1x256xf32>
    %c5_47 = arith.constant 5 : index
    %c1_48 = arith.constant 1 : index
    %111 = memref.load %arg2[%c5_47, %c1_48] : memref<6x27xf32, #tpu.memory_space<smem>>
    %112 = vector.broadcast %111 : f32 to vector<1x256xf32>
    %113 = arith.mulf %112, %90 : vector<1x256xf32>
    %114 = arith.addf %88, %113 : vector<1x256xf32>
    %115 = vector.extract_strided_slice %89 {offsets = [1, 0], sizes = [1, 256], strides = [1, 1]} : vector<3x256xf32> to vector<1x256xf32>
    %c0_49 = arith.constant 0 : index
    %c10 = arith.constant 10 : index
    %116 = memref.load %arg2[%c0_49, %c10] : memref<6x27xf32, #tpu.memory_space<smem>>
    %117 = vector.broadcast %116 : f32 to vector<1x256xf32>
    %118 = arith.mulf %117, %115 : vector<1x256xf32>
    %119 = arith.addf %94, %118 : vector<1x256xf32>
    %c1_50 = arith.constant 1 : index
    %c10_51 = arith.constant 10 : index
    %120 = memref.load %arg2[%c1_50, %c10_51] : memref<6x27xf32, #tpu.memory_space<smem>>
    %121 = vector.broadcast %120 : f32 to vector<1x256xf32>
    %122 = arith.mulf %121, %115 : vector<1x256xf32>
    %123 = arith.addf %98, %122 : vector<1x256xf32>
    %c2_52 = arith.constant 2 : index
    %c10_53 = arith.constant 10 : index
    %124 = memref.load %arg2[%c2_52, %c10_53] : memref<6x27xf32, #tpu.memory_space<smem>>
    %125 = vector.broadcast %124 : f32 to vector<1x256xf32>
    %126 = arith.mulf %125, %115 : vector<1x256xf32>
    %127 = arith.addf %102, %126 : vector<1x256xf32>
    %c3_54 = arith.constant 3 : index
    %c10_55 = arith.constant 10 : index
    %128 = memref.load %arg2[%c3_54, %c10_55] : memref<6x27xf32, #tpu.memory_space<smem>>
    %129 = vector.broadcast %128 : f32 to vector<1x256xf32>
    %130 = arith.mulf %129, %115 : vector<1x256xf32>
    %131 = arith.addf %106, %130 : vector<1x256xf32>
    %c4_56 = arith.constant 4 : index
    %c10_57 = arith.constant 10 : index
    %132 = memref.load %arg2[%c4_56, %c10_57] : memref<6x27xf32, #tpu.memory_space<smem>>
    %133 = vector.broadcast %132 : f32 to vector<1x256xf32>
    %134 = arith.mulf %133, %115 : vector<1x256xf32>
    %135 = arith.addf %110, %134 : vector<1x256xf32>
    %c5_58 = arith.constant 5 : index
    %c10_59 = arith.constant 10 : index
    %136 = memref.load %arg2[%c5_58, %c10_59] : memref<6x27xf32, #tpu.memory_space<smem>>
    %137 = vector.broadcast %136 : f32 to vector<1x256xf32>
    %138 = arith.mulf %137, %115 : vector<1x256xf32>
    %139 = arith.addf %114, %138 : vector<1x256xf32>
    %140 = vector.extract_strided_slice %89 {offsets = [2, 0], sizes = [1, 256], strides = [1, 1]} : vector<3x256xf32> to vector<1x256xf32>
    %c0_60 = arith.constant 0 : index
    %c19 = arith.constant 19 : index
    %141 = memref.load %arg2[%c0_60, %c19] : memref<6x27xf32, #tpu.memory_space<smem>>
    %142 = vector.broadcast %141 : f32 to vector<1x256xf32>
    %143 = arith.mulf %142, %140 : vector<1x256xf32>
    %144 = arith.addf %119, %143 : vector<1x256xf32>
    %c1_61 = arith.constant 1 : index
    %c19_62 = arith.constant 19 : index
    %145 = memref.load %arg2[%c1_61, %c19_62] : memref<6x27xf32, #tpu.memory_space<smem>>
    %146 = vector.broadcast %145 : f32 to vector<1x256xf32>
    %147 = arith.mulf %146, %140 : vector<1x256xf32>
    %148 = arith.addf %123, %147 : vector<1x256xf32>
    %c2_63 = arith.constant 2 : index
    %c19_64 = arith.constant 19 : index
    %149 = memref.load %arg2[%c2_63, %c19_64] : memref<6x27xf32, #tpu.memory_space<smem>>
    %150 = vector.broadcast %149 : f32 to vector<1x256xf32>
    %151 = arith.mulf %150, %140 : vector<1x256xf32>
    %152 = arith.addf %127, %151 : vector<1x256xf32>
    %c3_65 = arith.constant 3 : index
    %c19_66 = arith.constant 19 : index
    %153 = memref.load %arg2[%c3_65, %c19_66] : memref<6x27xf32, #tpu.memory_space<smem>>
    %154 = vector.broadcast %153 : f32 to vector<1x256xf32>
    %155 = arith.mulf %154, %140 : vector<1x256xf32>
    %156 = arith.addf %131, %155 : vector<1x256xf32>
    %c4_67 = arith.constant 4 : index
    %c19_68 = arith.constant 19 : index
    %157 = memref.load %arg2[%c4_67, %c19_68] : memref<6x27xf32, #tpu.memory_space<smem>>
    %158 = vector.broadcast %157 : f32 to vector<1x256xf32>
    %159 = arith.mulf %158, %140 : vector<1x256xf32>
    %160 = arith.addf %135, %159 : vector<1x256xf32>
    %c5_69 = arith.constant 5 : index
    %c19_70 = arith.constant 19 : index
    %161 = memref.load %arg2[%c5_69, %c19_70] : memref<6x27xf32, #tpu.memory_space<smem>>
    %162 = vector.broadcast %161 : f32 to vector<1x256xf32>
    %163 = arith.mulf %162, %140 : vector<1x256xf32>
    %164 = arith.addf %139, %163 : vector<1x256xf32>
    %c254_i32 = arith.constant 254 : i32
    %165 = tpu.dynamic_rotate %1 by %c254_i32 dim 1 : vector<3x256xf32>, i32 -> vector<3x256xf32>
    %166 = vector.extract_strided_slice %165 {offsets = [0, 0], sizes = [1, 256], strides = [1, 1]} : vector<3x256xf32> to vector<1x256xf32>
    %c0_71 = arith.constant 0 : index
    %c2_72 = arith.constant 2 : index
    %167 = memref.load %arg2[%c0_71, %c2_72] : memref<6x27xf32, #tpu.memory_space<smem>>
    %168 = vector.broadcast %167 : f32 to vector<1x256xf32>
    %169 = arith.mulf %168, %166 : vector<1x256xf32>
    %170 = arith.addf %144, %169 : vector<1x256xf32>
    %c1_73 = arith.constant 1 : index
    %c2_74 = arith.constant 2 : index
    %171 = memref.load %arg2[%c1_73, %c2_74] : memref<6x27xf32, #tpu.memory_space<smem>>
    %172 = vector.broadcast %171 : f32 to vector<1x256xf32>
    %173 = arith.mulf %172, %166 : vector<1x256xf32>
    %174 = arith.addf %148, %173 : vector<1x256xf32>
    %c2_75 = arith.constant 2 : index
    %c2_76 = arith.constant 2 : index
    %175 = memref.load %arg2[%c2_75, %c2_76] : memref<6x27xf32, #tpu.memory_space<smem>>
    %176 = vector.broadcast %175 : f32 to vector<1x256xf32>
    %177 = arith.mulf %176, %166 : vector<1x256xf32>
    %178 = arith.addf %152, %177 : vector<1x256xf32>
    %c3_77 = arith.constant 3 : index
    %c2_78 = arith.constant 2 : index
    %179 = memref.load %arg2[%c3_77, %c2_78] : memref<6x27xf32, #tpu.memory_space<smem>>
    %180 = vector.broadcast %179 : f32 to vector<1x256xf32>
    %181 = arith.mulf %180, %166 : vector<1x256xf32>
    %182 = arith.addf %156, %181 : vector<1x256xf32>
    %c4_79 = arith.constant 4 : index
    %c2_80 = arith.constant 2 : index
    %183 = memref.load %arg2[%c4_79, %c2_80] : memref<6x27xf32, #tpu.memory_space<smem>>
    %184 = vector.broadcast %183 : f32 to vector<1x256xf32>
    %185 = arith.mulf %184, %166 : vector<1x256xf32>
    %186 = arith.addf %160, %185 : vector<1x256xf32>
    %c5_81 = arith.constant 5 : index
    %c2_82 = arith.constant 2 : index
    %187 = memref.load %arg2[%c5_81, %c2_82] : memref<6x27xf32, #tpu.memory_space<smem>>
    %188 = vector.broadcast %187 : f32 to vector<1x256xf32>
    %189 = arith.mulf %188, %166 : vector<1x256xf32>
    %190 = arith.addf %164, %189 : vector<1x256xf32>
    %191 = vector.extract_strided_slice %165 {offsets = [1, 0], sizes = [1, 256], strides = [1, 1]} : vector<3x256xf32> to vector<1x256xf32>
    %c0_83 = arith.constant 0 : index
    %c11 = arith.constant 11 : index
    %192 = memref.load %arg2[%c0_83, %c11] : memref<6x27xf32, #tpu.memory_space<smem>>
    %193 = vector.broadcast %192 : f32 to vector<1x256xf32>
    %194 = arith.mulf %193, %191 : vector<1x256xf32>
    %195 = arith.addf %170, %194 : vector<1x256xf32>
    %c1_84 = arith.constant 1 : index
    %c11_85 = arith.constant 11 : index
    %196 = memref.load %arg2[%c1_84, %c11_85] : memref<6x27xf32, #tpu.memory_space<smem>>
    %197 = vector.broadcast %196 : f32 to vector<1x256xf32>
    %198 = arith.mulf %197, %191 : vector<1x256xf32>
    %199 = arith.addf %174, %198 : vector<1x256xf32>
    %c2_86 = arith.constant 2 : index
    %c11_87 = arith.constant 11 : index
    %200 = memref.load %arg2[%c2_86, %c11_87] : memref<6x27xf32, #tpu.memory_space<smem>>
    %201 = vector.broadcast %200 : f32 to vector<1x256xf32>
    %202 = arith.mulf %201, %191 : vector<1x256xf32>
    %203 = arith.addf %178, %202 : vector<1x256xf32>
    %c3_88 = arith.constant 3 : index
    %c11_89 = arith.constant 11 : index
    %204 = memref.load %arg2[%c3_88, %c11_89] : memref<6x27xf32, #tpu.memory_space<smem>>
    %205 = vector.broadcast %204 : f32 to vector<1x256xf32>
    %206 = arith.mulf %205, %191 : vector<1x256xf32>
    %207 = arith.addf %182, %206 : vector<1x256xf32>
    %c4_90 = arith.constant 4 : index
    %c11_91 = arith.constant 11 : index
    %208 = memref.load %arg2[%c4_90, %c11_91] : memref<6x27xf32, #tpu.memory_space<smem>>
    %209 = vector.broadcast %208 : f32 to vector<1x256xf32>
    %210 = arith.mulf %209, %191 : vector<1x256xf32>
    %211 = arith.addf %186, %210 : vector<1x256xf32>
    %c5_92 = arith.constant 5 : index
    %c11_93 = arith.constant 11 : index
    %212 = memref.load %arg2[%c5_92, %c11_93] : memref<6x27xf32, #tpu.memory_space<smem>>
    %213 = vector.broadcast %212 : f32 to vector<1x256xf32>
    %214 = arith.mulf %213, %191 : vector<1x256xf32>
    %215 = arith.addf %190, %214 : vector<1x256xf32>
    %216 = vector.extract_strided_slice %165 {offsets = [2, 0], sizes = [1, 256], strides = [1, 1]} : vector<3x256xf32> to vector<1x256xf32>
    %c0_94 = arith.constant 0 : index
    %c20 = arith.constant 20 : index
    %217 = memref.load %arg2[%c0_94, %c20] : memref<6x27xf32, #tpu.memory_space<smem>>
    %218 = vector.broadcast %217 : f32 to vector<1x256xf32>
    %219 = arith.mulf %218, %216 : vector<1x256xf32>
    %220 = arith.addf %195, %219 : vector<1x256xf32>
    %c1_95 = arith.constant 1 : index
    %c20_96 = arith.constant 20 : index
    %221 = memref.load %arg2[%c1_95, %c20_96] : memref<6x27xf32, #tpu.memory_space<smem>>
    %222 = vector.broadcast %221 : f32 to vector<1x256xf32>
    %223 = arith.mulf %222, %216 : vector<1x256xf32>
    %224 = arith.addf %199, %223 : vector<1x256xf32>
    %c2_97 = arith.constant 2 : index
    %c20_98 = arith.constant 20 : index
    %225 = memref.load %arg2[%c2_97, %c20_98] : memref<6x27xf32, #tpu.memory_space<smem>>
    %226 = vector.broadcast %225 : f32 to vector<1x256xf32>
    %227 = arith.mulf %226, %216 : vector<1x256xf32>
    %228 = arith.addf %203, %227 : vector<1x256xf32>
    %c3_99 = arith.constant 3 : index
    %c20_100 = arith.constant 20 : index
    %229 = memref.load %arg2[%c3_99, %c20_100] : memref<6x27xf32, #tpu.memory_space<smem>>
    %230 = vector.broadcast %229 : f32 to vector<1x256xf32>
    %231 = arith.mulf %230, %216 : vector<1x256xf32>
    %232 = arith.addf %207, %231 : vector<1x256xf32>
    %c4_101 = arith.constant 4 : index
    %c20_102 = arith.constant 20 : index
    %233 = memref.load %arg2[%c4_101, %c20_102] : memref<6x27xf32, #tpu.memory_space<smem>>
    %234 = vector.broadcast %233 : f32 to vector<1x256xf32>
    %235 = arith.mulf %234, %216 : vector<1x256xf32>
    %236 = arith.addf %211, %235 : vector<1x256xf32>
    %c5_103 = arith.constant 5 : index
    %c20_104 = arith.constant 20 : index
    %237 = memref.load %arg2[%c5_103, %c20_104] : memref<6x27xf32, #tpu.memory_space<smem>>
    %238 = vector.broadcast %237 : f32 to vector<1x256xf32>
    %239 = arith.mulf %238, %216 : vector<1x256xf32>
    %240 = arith.addf %215, %239 : vector<1x256xf32>
    %c240_i32 = arith.constant 240 : i32
    %241 = tpu.dynamic_rotate %1 by %c240_i32 dim 1 : vector<3x256xf32>, i32 -> vector<3x256xf32>
    %242 = vector.extract_strided_slice %241 {offsets = [0, 0], sizes = [1, 256], strides = [1, 1]} : vector<3x256xf32> to vector<1x256xf32>
    %c0_105 = arith.constant 0 : index
    %c3_106 = arith.constant 3 : index
    %243 = memref.load %arg2[%c0_105, %c3_106] : memref<6x27xf32, #tpu.memory_space<smem>>
    %244 = vector.broadcast %243 : f32 to vector<1x256xf32>
    %245 = arith.mulf %244, %242 : vector<1x256xf32>
    %246 = arith.addf %220, %245 : vector<1x256xf32>
    %c1_107 = arith.constant 1 : index
    %c3_108 = arith.constant 3 : index
    %247 = memref.load %arg2[%c1_107, %c3_108] : memref<6x27xf32, #tpu.memory_space<smem>>
    %248 = vector.broadcast %247 : f32 to vector<1x256xf32>
    %249 = arith.mulf %248, %242 : vector<1x256xf32>
    %250 = arith.addf %224, %249 : vector<1x256xf32>
    %c2_109 = arith.constant 2 : index
    %c3_110 = arith.constant 3 : index
    %251 = memref.load %arg2[%c2_109, %c3_110] : memref<6x27xf32, #tpu.memory_space<smem>>
    %252 = vector.broadcast %251 : f32 to vector<1x256xf32>
    %253 = arith.mulf %252, %242 : vector<1x256xf32>
    %254 = arith.addf %228, %253 : vector<1x256xf32>
    %c3_111 = arith.constant 3 : index
    %c3_112 = arith.constant 3 : index
    %255 = memref.load %arg2[%c3_111, %c3_112] : memref<6x27xf32, #tpu.memory_space<smem>>
    %256 = vector.broadcast %255 : f32 to vector<1x256xf32>
    %257 = arith.mulf %256, %242 : vector<1x256xf32>
    %258 = arith.addf %232, %257 : vector<1x256xf32>
    %c4_113 = arith.constant 4 : index
    %c3_114 = arith.constant 3 : index
    %259 = memref.load %arg2[%c4_113, %c3_114] : memref<6x27xf32, #tpu.memory_space<smem>>
    %260 = vector.broadcast %259 : f32 to vector<1x256xf32>
    %261 = arith.mulf %260, %242 : vector<1x256xf32>
    %262 = arith.addf %236, %261 : vector<1x256xf32>
    %c5_115 = arith.constant 5 : index
    %c3_116 = arith.constant 3 : index
    %263 = memref.load %arg2[%c5_115, %c3_116] : memref<6x27xf32, #tpu.memory_space<smem>>
    %264 = vector.broadcast %263 : f32 to vector<1x256xf32>
    %265 = arith.mulf %264, %242 : vector<1x256xf32>
    %266 = arith.addf %240, %265 : vector<1x256xf32>
    %267 = vector.extract_strided_slice %241 {offsets = [1, 0], sizes = [1, 256], strides = [1, 1]} : vector<3x256xf32> to vector<1x256xf32>
    %c0_117 = arith.constant 0 : index
    %c12 = arith.constant 12 : index
    %268 = memref.load %arg2[%c0_117, %c12] : memref<6x27xf32, #tpu.memory_space<smem>>
    %269 = vector.broadcast %268 : f32 to vector<1x256xf32>
    %270 = arith.mulf %269, %267 : vector<1x256xf32>
    %271 = arith.addf %246, %270 : vector<1x256xf32>
    %c1_118 = arith.constant 1 : index
    %c12_119 = arith.constant 12 : index
    %272 = memref.load %arg2[%c1_118, %c12_119] : memref<6x27xf32, #tpu.memory_space<smem>>
    %273 = vector.broadcast %272 : f32 to vector<1x256xf32>
    %274 = arith.mulf %273, %267 : vector<1x256xf32>
    %275 = arith.addf %250, %274 : vector<1x256xf32>
    %c2_120 = arith.constant 2 : index
    %c12_121 = arith.constant 12 : index
    %276 = memref.load %arg2[%c2_120, %c12_121] : memref<6x27xf32, #tpu.memory_space<smem>>
    %277 = vector.broadcast %276 : f32 to vector<1x256xf32>
    %278 = arith.mulf %277, %267 : vector<1x256xf32>
    %279 = arith.addf %254, %278 : vector<1x256xf32>
    %c3_122 = arith.constant 3 : index
    %c12_123 = arith.constant 12 : index
    %280 = memref.load %arg2[%c3_122, %c12_123] : memref<6x27xf32, #tpu.memory_space<smem>>
    %281 = vector.broadcast %280 : f32 to vector<1x256xf32>
    %282 = arith.mulf %281, %267 : vector<1x256xf32>
    %283 = arith.addf %258, %282 : vector<1x256xf32>
    %c4_124 = arith.constant 4 : index
    %c12_125 = arith.constant 12 : index
    %284 = memref.load %arg2[%c4_124, %c12_125] : memref<6x27xf32, #tpu.memory_space<smem>>
    %285 = vector.broadcast %284 : f32 to vector<1x256xf32>
    %286 = arith.mulf %285, %267 : vector<1x256xf32>
    %287 = arith.addf %262, %286 : vector<1x256xf32>
    %c5_126 = arith.constant 5 : index
    %c12_127 = arith.constant 12 : index
    %288 = memref.load %arg2[%c5_126, %c12_127] : memref<6x27xf32, #tpu.memory_space<smem>>
    %289 = vector.broadcast %288 : f32 to vector<1x256xf32>
    %290 = arith.mulf %289, %267 : vector<1x256xf32>
    %291 = arith.addf %266, %290 : vector<1x256xf32>
    %292 = vector.extract_strided_slice %241 {offsets = [2, 0], sizes = [1, 256], strides = [1, 1]} : vector<3x256xf32> to vector<1x256xf32>
    %c0_128 = arith.constant 0 : index
    %c21 = arith.constant 21 : index
    %293 = memref.load %arg2[%c0_128, %c21] : memref<6x27xf32, #tpu.memory_space<smem>>
    %294 = vector.broadcast %293 : f32 to vector<1x256xf32>
    %295 = arith.mulf %294, %292 : vector<1x256xf32>
    %296 = arith.addf %271, %295 : vector<1x256xf32>
    %c1_129 = arith.constant 1 : index
    %c21_130 = arith.constant 21 : index
    %297 = memref.load %arg2[%c1_129, %c21_130] : memref<6x27xf32, #tpu.memory_space<smem>>
    %298 = vector.broadcast %297 : f32 to vector<1x256xf32>
    %299 = arith.mulf %298, %292 : vector<1x256xf32>
    %300 = arith.addf %275, %299 : vector<1x256xf32>
    %c2_131 = arith.constant 2 : index
    %c21_132 = arith.constant 21 : index
    %301 = memref.load %arg2[%c2_131, %c21_132] : memref<6x27xf32, #tpu.memory_space<smem>>
    %302 = vector.broadcast %301 : f32 to vector<1x256xf32>
    %303 = arith.mulf %302, %292 : vector<1x256xf32>
    %304 = arith.addf %279, %303 : vector<1x256xf32>
    %c3_133 = arith.constant 3 : index
    %c21_134 = arith.constant 21 : index
    %305 = memref.load %arg2[%c3_133, %c21_134] : memref<6x27xf32, #tpu.memory_space<smem>>
    %306 = vector.broadcast %305 : f32 to vector<1x256xf32>
    %307 = arith.mulf %306, %292 : vector<1x256xf32>
    %308 = arith.addf %283, %307 : vector<1x256xf32>
    %c4_135 = arith.constant 4 : index
    %c21_136 = arith.constant 21 : index
    %309 = memref.load %arg2[%c4_135, %c21_136] : memref<6x27xf32, #tpu.memory_space<smem>>
    %310 = vector.broadcast %309 : f32 to vector<1x256xf32>
    %311 = arith.mulf %310, %292 : vector<1x256xf32>
    %312 = arith.addf %287, %311 : vector<1x256xf32>
    %c5_137 = arith.constant 5 : index
    %c21_138 = arith.constant 21 : index
    %313 = memref.load %arg2[%c5_137, %c21_138] : memref<6x27xf32, #tpu.memory_space<smem>>
    %314 = vector.broadcast %313 : f32 to vector<1x256xf32>
    %315 = arith.mulf %314, %292 : vector<1x256xf32>
    %316 = arith.addf %291, %315 : vector<1x256xf32>
    %c239_i32 = arith.constant 239 : i32
    %317 = tpu.dynamic_rotate %1 by %c239_i32 dim 1 : vector<3x256xf32>, i32 -> vector<3x256xf32>
    %318 = vector.extract_strided_slice %317 {offsets = [0, 0], sizes = [1, 256], strides = [1, 1]} : vector<3x256xf32> to vector<1x256xf32>
    %c0_139 = arith.constant 0 : index
    %c4_140 = arith.constant 4 : index
    %319 = memref.load %arg2[%c0_139, %c4_140] : memref<6x27xf32, #tpu.memory_space<smem>>
    %320 = vector.broadcast %319 : f32 to vector<1x256xf32>
    %321 = arith.mulf %320, %318 : vector<1x256xf32>
    %322 = arith.addf %296, %321 : vector<1x256xf32>
    %c1_141 = arith.constant 1 : index
    %c4_142 = arith.constant 4 : index
    %323 = memref.load %arg2[%c1_141, %c4_142] : memref<6x27xf32, #tpu.memory_space<smem>>
    %324 = vector.broadcast %323 : f32 to vector<1x256xf32>
    %325 = arith.mulf %324, %318 : vector<1x256xf32>
    %326 = arith.addf %300, %325 : vector<1x256xf32>
    %c2_143 = arith.constant 2 : index
    %c4_144 = arith.constant 4 : index
    %327 = memref.load %arg2[%c2_143, %c4_144] : memref<6x27xf32, #tpu.memory_space<smem>>
    %328 = vector.broadcast %327 : f32 to vector<1x256xf32>
    %329 = arith.mulf %328, %318 : vector<1x256xf32>
    %330 = arith.addf %304, %329 : vector<1x256xf32>
    %c3_145 = arith.constant 3 : index
    %c4_146 = arith.constant 4 : index
    %331 = memref.load %arg2[%c3_145, %c4_146] : memref<6x27xf32, #tpu.memory_space<smem>>
    %332 = vector.broadcast %331 : f32 to vector<1x256xf32>
    %333 = arith.mulf %332, %318 : vector<1x256xf32>
    %334 = arith.addf %308, %333 : vector<1x256xf32>
    %c4_147 = arith.constant 4 : index
    %c4_148 = arith.constant 4 : index
    %335 = memref.load %arg2[%c4_147, %c4_148] : memref<6x27xf32, #tpu.memory_space<smem>>
    %336 = vector.broadcast %335 : f32 to vector<1x256xf32>
    %337 = arith.mulf %336, %318 : vector<1x256xf32>
    %338 = arith.addf %312, %337 : vector<1x256xf32>
    %c5_149 = arith.constant 5 : index
    %c4_150 = arith.constant 4 : index
    %339 = memref.load %arg2[%c5_149, %c4_150] : memref<6x27xf32, #tpu.memory_space<smem>>
    %340 = vector.broadcast %339 : f32 to vector<1x256xf32>
    %341 = arith.mulf %340, %318 : vector<1x256xf32>
    %342 = arith.addf %316, %341 : vector<1x256xf32>
    %343 = vector.extract_strided_slice %317 {offsets = [1, 0], sizes = [1, 256], strides = [1, 1]} : vector<3x256xf32> to vector<1x256xf32>
    %c0_151 = arith.constant 0 : index
    %c13 = arith.constant 13 : index
    %344 = memref.load %arg2[%c0_151, %c13] : memref<6x27xf32, #tpu.memory_space<smem>>
    %345 = vector.broadcast %344 : f32 to vector<1x256xf32>
    %346 = arith.mulf %345, %343 : vector<1x256xf32>
    %347 = arith.addf %322, %346 : vector<1x256xf32>
    %c1_152 = arith.constant 1 : index
    %c13_153 = arith.constant 13 : index
    %348 = memref.load %arg2[%c1_152, %c13_153] : memref<6x27xf32, #tpu.memory_space<smem>>
    %349 = vector.broadcast %348 : f32 to vector<1x256xf32>
    %350 = arith.mulf %349, %343 : vector<1x256xf32>
    %351 = arith.addf %326, %350 : vector<1x256xf32>
    %c2_154 = arith.constant 2 : index
    %c13_155 = arith.constant 13 : index
    %352 = memref.load %arg2[%c2_154, %c13_155] : memref<6x27xf32, #tpu.memory_space<smem>>
    %353 = vector.broadcast %352 : f32 to vector<1x256xf32>
    %354 = arith.mulf %353, %343 : vector<1x256xf32>
    %355 = arith.addf %330, %354 : vector<1x256xf32>
    %c3_156 = arith.constant 3 : index
    %c13_157 = arith.constant 13 : index
    %356 = memref.load %arg2[%c3_156, %c13_157] : memref<6x27xf32, #tpu.memory_space<smem>>
    %357 = vector.broadcast %356 : f32 to vector<1x256xf32>
    %358 = arith.mulf %357, %343 : vector<1x256xf32>
    %359 = arith.addf %334, %358 : vector<1x256xf32>
    %c4_158 = arith.constant 4 : index
    %c13_159 = arith.constant 13 : index
    %360 = memref.load %arg2[%c4_158, %c13_159] : memref<6x27xf32, #tpu.memory_space<smem>>
    %361 = vector.broadcast %360 : f32 to vector<1x256xf32>
    %362 = arith.mulf %361, %343 : vector<1x256xf32>
    %363 = arith.addf %338, %362 : vector<1x256xf32>
    %c5_160 = arith.constant 5 : index
    %c13_161 = arith.constant 13 : index
    %364 = memref.load %arg2[%c5_160, %c13_161] : memref<6x27xf32, #tpu.memory_space<smem>>
    %365 = vector.broadcast %364 : f32 to vector<1x256xf32>
    %366 = arith.mulf %365, %343 : vector<1x256xf32>
    %367 = arith.addf %342, %366 : vector<1x256xf32>
    %368 = vector.extract_strided_slice %317 {offsets = [2, 0], sizes = [1, 256], strides = [1, 1]} : vector<3x256xf32> to vector<1x256xf32>
    %c0_162 = arith.constant 0 : index
    %c22 = arith.constant 22 : index
    %369 = memref.load %arg2[%c0_162, %c22] : memref<6x27xf32, #tpu.memory_space<smem>>
    %370 = vector.broadcast %369 : f32 to vector<1x256xf32>
    %371 = arith.mulf %370, %368 : vector<1x256xf32>
    %372 = arith.addf %347, %371 : vector<1x256xf32>
    %c1_163 = arith.constant 1 : index
    %c22_164 = arith.constant 22 : index
    %373 = memref.load %arg2[%c1_163, %c22_164] : memref<6x27xf32, #tpu.memory_space<smem>>
    %374 = vector.broadcast %373 : f32 to vector<1x256xf32>
    %375 = arith.mulf %374, %368 : vector<1x256xf32>
    %376 = arith.addf %351, %375 : vector<1x256xf32>
    %c2_165 = arith.constant 2 : index
    %c22_166 = arith.constant 22 : index
    %377 = memref.load %arg2[%c2_165, %c22_166] : memref<6x27xf32, #tpu.memory_space<smem>>
    %378 = vector.broadcast %377 : f32 to vector<1x256xf32>
    %379 = arith.mulf %378, %368 : vector<1x256xf32>
    %380 = arith.addf %355, %379 : vector<1x256xf32>
    %c3_167 = arith.constant 3 : index
    %c22_168 = arith.constant 22 : index
    %381 = memref.load %arg2[%c3_167, %c22_168] : memref<6x27xf32, #tpu.memory_space<smem>>
    %382 = vector.broadcast %381 : f32 to vector<1x256xf32>
    %383 = arith.mulf %382, %368 : vector<1x256xf32>
    %384 = arith.addf %359, %383 : vector<1x256xf32>
    %c4_169 = arith.constant 4 : index
    %c22_170 = arith.constant 22 : index
    %385 = memref.load %arg2[%c4_169, %c22_170] : memref<6x27xf32, #tpu.memory_space<smem>>
    %386 = vector.broadcast %385 : f32 to vector<1x256xf32>
    %387 = arith.mulf %386, %368 : vector<1x256xf32>
    %388 = arith.addf %363, %387 : vector<1x256xf32>
    %c5_171 = arith.constant 5 : index
    %c22_172 = arith.constant 22 : index
    %389 = memref.load %arg2[%c5_171, %c22_172] : memref<6x27xf32, #tpu.memory_space<smem>>
    %390 = vector.broadcast %389 : f32 to vector<1x256xf32>
    %391 = arith.mulf %390, %368 : vector<1x256xf32>
    %392 = arith.addf %367, %391 : vector<1x256xf32>
    %c238_i32 = arith.constant 238 : i32
    %393 = tpu.dynamic_rotate %1 by %c238_i32 dim 1 : vector<3x256xf32>, i32 -> vector<3x256xf32>
    %394 = vector.extract_strided_slice %393 {offsets = [0, 0], sizes = [1, 256], strides = [1, 1]} : vector<3x256xf32> to vector<1x256xf32>
    %c0_173 = arith.constant 0 : index
    %c5_174 = arith.constant 5 : index
    %395 = memref.load %arg2[%c0_173, %c5_174] : memref<6x27xf32, #tpu.memory_space<smem>>
    %396 = vector.broadcast %395 : f32 to vector<1x256xf32>
    %397 = arith.mulf %396, %394 : vector<1x256xf32>
    %398 = arith.addf %372, %397 : vector<1x256xf32>
    %c1_175 = arith.constant 1 : index
    %c5_176 = arith.constant 5 : index
    %399 = memref.load %arg2[%c1_175, %c5_176] : memref<6x27xf32, #tpu.memory_space<smem>>
    %400 = vector.broadcast %399 : f32 to vector<1x256xf32>
    %401 = arith.mulf %400, %394 : vector<1x256xf32>
    %402 = arith.addf %376, %401 : vector<1x256xf32>
    %c2_177 = arith.constant 2 : index
    %c5_178 = arith.constant 5 : index
    %403 = memref.load %arg2[%c2_177, %c5_178] : memref<6x27xf32, #tpu.memory_space<smem>>
    %404 = vector.broadcast %403 : f32 to vector<1x256xf32>
    %405 = arith.mulf %404, %394 : vector<1x256xf32>
    %406 = arith.addf %380, %405 : vector<1x256xf32>
    %c3_179 = arith.constant 3 : index
    %c5_180 = arith.constant 5 : index
    %407 = memref.load %arg2[%c3_179, %c5_180] : memref<6x27xf32, #tpu.memory_space<smem>>
    %408 = vector.broadcast %407 : f32 to vector<1x256xf32>
    %409 = arith.mulf %408, %394 : vector<1x256xf32>
    %410 = arith.addf %384, %409 : vector<1x256xf32>
    %c4_181 = arith.constant 4 : index
    %c5_182 = arith.constant 5 : index
    %411 = memref.load %arg2[%c4_181, %c5_182] : memref<6x27xf32, #tpu.memory_space<smem>>
    %412 = vector.broadcast %411 : f32 to vector<1x256xf32>
    %413 = arith.mulf %412, %394 : vector<1x256xf32>
    %414 = arith.addf %388, %413 : vector<1x256xf32>
    %c5_183 = arith.constant 5 : index
    %c5_184 = arith.constant 5 : index
    %415 = memref.load %arg2[%c5_183, %c5_184] : memref<6x27xf32, #tpu.memory_space<smem>>
    %416 = vector.broadcast %415 : f32 to vector<1x256xf32>
    %417 = arith.mulf %416, %394 : vector<1x256xf32>
    %418 = arith.addf %392, %417 : vector<1x256xf32>
    %419 = vector.extract_strided_slice %393 {offsets = [1, 0], sizes = [1, 256], strides = [1, 1]} : vector<3x256xf32> to vector<1x256xf32>
    %c0_185 = arith.constant 0 : index
    %c14 = arith.constant 14 : index
    %420 = memref.load %arg2[%c0_185, %c14] : memref<6x27xf32, #tpu.memory_space<smem>>
    %421 = vector.broadcast %420 : f32 to vector<1x256xf32>
    %422 = arith.mulf %421, %419 : vector<1x256xf32>
    %423 = arith.addf %398, %422 : vector<1x256xf32>
    %c1_186 = arith.constant 1 : index
    %c14_187 = arith.constant 14 : index
    %424 = memref.load %arg2[%c1_186, %c14_187] : memref<6x27xf32, #tpu.memory_space<smem>>
    %425 = vector.broadcast %424 : f32 to vector<1x256xf32>
    %426 = arith.mulf %425, %419 : vector<1x256xf32>
    %427 = arith.addf %402, %426 : vector<1x256xf32>
    %c2_188 = arith.constant 2 : index
    %c14_189 = arith.constant 14 : index
    %428 = memref.load %arg2[%c2_188, %c14_189] : memref<6x27xf32, #tpu.memory_space<smem>>
    %429 = vector.broadcast %428 : f32 to vector<1x256xf32>
    %430 = arith.mulf %429, %419 : vector<1x256xf32>
    %431 = arith.addf %406, %430 : vector<1x256xf32>
    %c3_190 = arith.constant 3 : index
    %c14_191 = arith.constant 14 : index
    %432 = memref.load %arg2[%c3_190, %c14_191] : memref<6x27xf32, #tpu.memory_space<smem>>
    %433 = vector.broadcast %432 : f32 to vector<1x256xf32>
    %434 = arith.mulf %433, %419 : vector<1x256xf32>
    %435 = arith.addf %410, %434 : vector<1x256xf32>
    %c4_192 = arith.constant 4 : index
    %c14_193 = arith.constant 14 : index
    %436 = memref.load %arg2[%c4_192, %c14_193] : memref<6x27xf32, #tpu.memory_space<smem>>
    %437 = vector.broadcast %436 : f32 to vector<1x256xf32>
    %438 = arith.mulf %437, %419 : vector<1x256xf32>
    %439 = arith.addf %414, %438 : vector<1x256xf32>
    %c5_194 = arith.constant 5 : index
    %c14_195 = arith.constant 14 : index
    %440 = memref.load %arg2[%c5_194, %c14_195] : memref<6x27xf32, #tpu.memory_space<smem>>
    %441 = vector.broadcast %440 : f32 to vector<1x256xf32>
    %442 = arith.mulf %441, %419 : vector<1x256xf32>
    %443 = arith.addf %418, %442 : vector<1x256xf32>
    %444 = vector.extract_strided_slice %393 {offsets = [2, 0], sizes = [1, 256], strides = [1, 1]} : vector<3x256xf32> to vector<1x256xf32>
    %c0_196 = arith.constant 0 : index
    %c23 = arith.constant 23 : index
    %445 = memref.load %arg2[%c0_196, %c23] : memref<6x27xf32, #tpu.memory_space<smem>>
    %446 = vector.broadcast %445 : f32 to vector<1x256xf32>
    %447 = arith.mulf %446, %444 : vector<1x256xf32>
    %448 = arith.addf %423, %447 : vector<1x256xf32>
    %c1_197 = arith.constant 1 : index
    %c23_198 = arith.constant 23 : index
    %449 = memref.load %arg2[%c1_197, %c23_198] : memref<6x27xf32, #tpu.memory_space<smem>>
    %450 = vector.broadcast %449 : f32 to vector<1x256xf32>
    %451 = arith.mulf %450, %444 : vector<1x256xf32>
    %452 = arith.addf %427, %451 : vector<1x256xf32>
    %c2_199 = arith.constant 2 : index
    %c23_200 = arith.constant 23 : index
    %453 = memref.load %arg2[%c2_199, %c23_200] : memref<6x27xf32, #tpu.memory_space<smem>>
    %454 = vector.broadcast %453 : f32 to vector<1x256xf32>
    %455 = arith.mulf %454, %444 : vector<1x256xf32>
    %456 = arith.addf %431, %455 : vector<1x256xf32>
    %c3_201 = arith.constant 3 : index
    %c23_202 = arith.constant 23 : index
    %457 = memref.load %arg2[%c3_201, %c23_202] : memref<6x27xf32, #tpu.memory_space<smem>>
    %458 = vector.broadcast %457 : f32 to vector<1x256xf32>
    %459 = arith.mulf %458, %444 : vector<1x256xf32>
    %460 = arith.addf %435, %459 : vector<1x256xf32>
    %c4_203 = arith.constant 4 : index
    %c23_204 = arith.constant 23 : index
    %461 = memref.load %arg2[%c4_203, %c23_204] : memref<6x27xf32, #tpu.memory_space<smem>>
    %462 = vector.broadcast %461 : f32 to vector<1x256xf32>
    %463 = arith.mulf %462, %444 : vector<1x256xf32>
    %464 = arith.addf %439, %463 : vector<1x256xf32>
    %c5_205 = arith.constant 5 : index
    %c23_206 = arith.constant 23 : index
    %465 = memref.load %arg2[%c5_205, %c23_206] : memref<6x27xf32, #tpu.memory_space<smem>>
    %466 = vector.broadcast %465 : f32 to vector<1x256xf32>
    %467 = arith.mulf %466, %444 : vector<1x256xf32>
    %468 = arith.addf %443, %467 : vector<1x256xf32>
    %c224_i32 = arith.constant 224 : i32
    %469 = tpu.dynamic_rotate %1 by %c224_i32 dim 1 : vector<3x256xf32>, i32 -> vector<3x256xf32>
    %470 = vector.extract_strided_slice %469 {offsets = [0, 0], sizes = [1, 256], strides = [1, 1]} : vector<3x256xf32> to vector<1x256xf32>
    %c0_207 = arith.constant 0 : index
    %c6 = arith.constant 6 : index
    %471 = memref.load %arg2[%c0_207, %c6] : memref<6x27xf32, #tpu.memory_space<smem>>
    %472 = vector.broadcast %471 : f32 to vector<1x256xf32>
    %473 = arith.mulf %472, %470 : vector<1x256xf32>
    %474 = arith.addf %448, %473 : vector<1x256xf32>
    %c1_208 = arith.constant 1 : index
    %c6_209 = arith.constant 6 : index
    %475 = memref.load %arg2[%c1_208, %c6_209] : memref<6x27xf32, #tpu.memory_space<smem>>
    %476 = vector.broadcast %475 : f32 to vector<1x256xf32>
    %477 = arith.mulf %476, %470 : vector<1x256xf32>
    %478 = arith.addf %452, %477 : vector<1x256xf32>
    %c2_210 = arith.constant 2 : index
    %c6_211 = arith.constant 6 : index
    %479 = memref.load %arg2[%c2_210, %c6_211] : memref<6x27xf32, #tpu.memory_space<smem>>
    %480 = vector.broadcast %479 : f32 to vector<1x256xf32>
    %481 = arith.mulf %480, %470 : vector<1x256xf32>
    %482 = arith.addf %456, %481 : vector<1x256xf32>
    %c3_212 = arith.constant 3 : index
    %c6_213 = arith.constant 6 : index
    %483 = memref.load %arg2[%c3_212, %c6_213] : memref<6x27xf32, #tpu.memory_space<smem>>
    %484 = vector.broadcast %483 : f32 to vector<1x256xf32>
    %485 = arith.mulf %484, %470 : vector<1x256xf32>
    %486 = arith.addf %460, %485 : vector<1x256xf32>
    %c4_214 = arith.constant 4 : index
    %c6_215 = arith.constant 6 : index
    %487 = memref.load %arg2[%c4_214, %c6_215] : memref<6x27xf32, #tpu.memory_space<smem>>
    %488 = vector.broadcast %487 : f32 to vector<1x256xf32>
    %489 = arith.mulf %488, %470 : vector<1x256xf32>
    %490 = arith.addf %464, %489 : vector<1x256xf32>
    %c5_216 = arith.constant 5 : index
    %c6_217 = arith.constant 6 : index
    %491 = memref.load %arg2[%c5_216, %c6_217] : memref<6x27xf32, #tpu.memory_space<smem>>
    %492 = vector.broadcast %491 : f32 to vector<1x256xf32>
    %493 = arith.mulf %492, %470 : vector<1x256xf32>
    %494 = arith.addf %468, %493 : vector<1x256xf32>
    %495 = vector.extract_strided_slice %469 {offsets = [1, 0], sizes = [1, 256], strides = [1, 1]} : vector<3x256xf32> to vector<1x256xf32>
    %c0_218 = arith.constant 0 : index
    %c15 = arith.constant 15 : index
    %496 = memref.load %arg2[%c0_218, %c15] : memref<6x27xf32, #tpu.memory_space<smem>>
    %497 = vector.broadcast %496 : f32 to vector<1x256xf32>
    %498 = arith.mulf %497, %495 : vector<1x256xf32>
    %499 = arith.addf %474, %498 : vector<1x256xf32>
    %c1_219 = arith.constant 1 : index
    %c15_220 = arith.constant 15 : index
    %500 = memref.load %arg2[%c1_219, %c15_220] : memref<6x27xf32, #tpu.memory_space<smem>>
    %501 = vector.broadcast %500 : f32 to vector<1x256xf32>
    %502 = arith.mulf %501, %495 : vector<1x256xf32>
    %503 = arith.addf %478, %502 : vector<1x256xf32>
    %c2_221 = arith.constant 2 : index
    %c15_222 = arith.constant 15 : index
    %504 = memref.load %arg2[%c2_221, %c15_222] : memref<6x27xf32, #tpu.memory_space<smem>>
    %505 = vector.broadcast %504 : f32 to vector<1x256xf32>
    %506 = arith.mulf %505, %495 : vector<1x256xf32>
    %507 = arith.addf %482, %506 : vector<1x256xf32>
    %c3_223 = arith.constant 3 : index
    %c15_224 = arith.constant 15 : index
    %508 = memref.load %arg2[%c3_223, %c15_224] : memref<6x27xf32, #tpu.memory_space<smem>>
    %509 = vector.broadcast %508 : f32 to vector<1x256xf32>
    %510 = arith.mulf %509, %495 : vector<1x256xf32>
    %511 = arith.addf %486, %510 : vector<1x256xf32>
    %c4_225 = arith.constant 4 : index
    %c15_226 = arith.constant 15 : index
    %512 = memref.load %arg2[%c4_225, %c15_226] : memref<6x27xf32, #tpu.memory_space<smem>>
    %513 = vector.broadcast %512 : f32 to vector<1x256xf32>
    %514 = arith.mulf %513, %495 : vector<1x256xf32>
    %515 = arith.addf %490, %514 : vector<1x256xf32>
    %c5_227 = arith.constant 5 : index
    %c15_228 = arith.constant 15 : index
    %516 = memref.load %arg2[%c5_227, %c15_228] : memref<6x27xf32, #tpu.memory_space<smem>>
    %517 = vector.broadcast %516 : f32 to vector<1x256xf32>
    %518 = arith.mulf %517, %495 : vector<1x256xf32>
    %519 = arith.addf %494, %518 : vector<1x256xf32>
    %520 = vector.extract_strided_slice %469 {offsets = [2, 0], sizes = [1, 256], strides = [1, 1]} : vector<3x256xf32> to vector<1x256xf32>
    %c0_229 = arith.constant 0 : index
    %c24 = arith.constant 24 : index
    %521 = memref.load %arg2[%c0_229, %c24] : memref<6x27xf32, #tpu.memory_space<smem>>
    %522 = vector.broadcast %521 : f32 to vector<1x256xf32>
    %523 = arith.mulf %522, %520 : vector<1x256xf32>
    %524 = arith.addf %499, %523 : vector<1x256xf32>
    %c1_230 = arith.constant 1 : index
    %c24_231 = arith.constant 24 : index
    %525 = memref.load %arg2[%c1_230, %c24_231] : memref<6x27xf32, #tpu.memory_space<smem>>
    %526 = vector.broadcast %525 : f32 to vector<1x256xf32>
    %527 = arith.mulf %526, %520 : vector<1x256xf32>
    %528 = arith.addf %503, %527 : vector<1x256xf32>
    %c2_232 = arith.constant 2 : index
    %c24_233 = arith.constant 24 : index
    %529 = memref.load %arg2[%c2_232, %c24_233] : memref<6x27xf32, #tpu.memory_space<smem>>
    %530 = vector.broadcast %529 : f32 to vector<1x256xf32>
    %531 = arith.mulf %530, %520 : vector<1x256xf32>
    %532 = arith.addf %507, %531 : vector<1x256xf32>
    %c3_234 = arith.constant 3 : index
    %c24_235 = arith.constant 24 : index
    %533 = memref.load %arg2[%c3_234, %c24_235] : memref<6x27xf32, #tpu.memory_space<smem>>
    %534 = vector.broadcast %533 : f32 to vector<1x256xf32>
    %535 = arith.mulf %534, %520 : vector<1x256xf32>
    %536 = arith.addf %511, %535 : vector<1x256xf32>
    %c4_236 = arith.constant 4 : index
    %c24_237 = arith.constant 24 : index
    %537 = memref.load %arg2[%c4_236, %c24_237] : memref<6x27xf32, #tpu.memory_space<smem>>
    %538 = vector.broadcast %537 : f32 to vector<1x256xf32>
    %539 = arith.mulf %538, %520 : vector<1x256xf32>
    %540 = arith.addf %515, %539 : vector<1x256xf32>
    %c5_238 = arith.constant 5 : index
    %c24_239 = arith.constant 24 : index
    %541 = memref.load %arg2[%c5_238, %c24_239] : memref<6x27xf32, #tpu.memory_space<smem>>
    %542 = vector.broadcast %541 : f32 to vector<1x256xf32>
    %543 = arith.mulf %542, %520 : vector<1x256xf32>
    %544 = arith.addf %519, %543 : vector<1x256xf32>
    %c223_i32 = arith.constant 223 : i32
    %545 = tpu.dynamic_rotate %1 by %c223_i32 dim 1 : vector<3x256xf32>, i32 -> vector<3x256xf32>
    %546 = vector.extract_strided_slice %545 {offsets = [0, 0], sizes = [1, 256], strides = [1, 1]} : vector<3x256xf32> to vector<1x256xf32>
    %c0_240 = arith.constant 0 : index
    %c7 = arith.constant 7 : index
    %547 = memref.load %arg2[%c0_240, %c7] : memref<6x27xf32, #tpu.memory_space<smem>>
    %548 = vector.broadcast %547 : f32 to vector<1x256xf32>
    %549 = arith.mulf %548, %546 : vector<1x256xf32>
    %550 = arith.addf %524, %549 : vector<1x256xf32>
    %c1_241 = arith.constant 1 : index
    %c7_242 = arith.constant 7 : index
    %551 = memref.load %arg2[%c1_241, %c7_242] : memref<6x27xf32, #tpu.memory_space<smem>>
    %552 = vector.broadcast %551 : f32 to vector<1x256xf32>
    %553 = arith.mulf %552, %546 : vector<1x256xf32>
    %554 = arith.addf %528, %553 : vector<1x256xf32>
    %c2_243 = arith.constant 2 : index
    %c7_244 = arith.constant 7 : index
    %555 = memref.load %arg2[%c2_243, %c7_244] : memref<6x27xf32, #tpu.memory_space<smem>>
    %556 = vector.broadcast %555 : f32 to vector<1x256xf32>
    %557 = arith.mulf %556, %546 : vector<1x256xf32>
    %558 = arith.addf %532, %557 : vector<1x256xf32>
    %c3_245 = arith.constant 3 : index
    %c7_246 = arith.constant 7 : index
    %559 = memref.load %arg2[%c3_245, %c7_246] : memref<6x27xf32, #tpu.memory_space<smem>>
    %560 = vector.broadcast %559 : f32 to vector<1x256xf32>
    %561 = arith.mulf %560, %546 : vector<1x256xf32>
    %562 = arith.addf %536, %561 : vector<1x256xf32>
    %c4_247 = arith.constant 4 : index
    %c7_248 = arith.constant 7 : index
    %563 = memref.load %arg2[%c4_247, %c7_248] : memref<6x27xf32, #tpu.memory_space<smem>>
    %564 = vector.broadcast %563 : f32 to vector<1x256xf32>
    %565 = arith.mulf %564, %546 : vector<1x256xf32>
    %566 = arith.addf %540, %565 : vector<1x256xf32>
    %c5_249 = arith.constant 5 : index
    %c7_250 = arith.constant 7 : index
    %567 = memref.load %arg2[%c5_249, %c7_250] : memref<6x27xf32, #tpu.memory_space<smem>>
    %568 = vector.broadcast %567 : f32 to vector<1x256xf32>
    %569 = arith.mulf %568, %546 : vector<1x256xf32>
    %570 = arith.addf %544, %569 : vector<1x256xf32>
    %571 = vector.extract_strided_slice %545 {offsets = [1, 0], sizes = [1, 256], strides = [1, 1]} : vector<3x256xf32> to vector<1x256xf32>
    %c0_251 = arith.constant 0 : index
    %c16 = arith.constant 16 : index
    %572 = memref.load %arg2[%c0_251, %c16] : memref<6x27xf32, #tpu.memory_space<smem>>
    %573 = vector.broadcast %572 : f32 to vector<1x256xf32>
    %574 = arith.mulf %573, %571 : vector<1x256xf32>
    %575 = arith.addf %550, %574 : vector<1x256xf32>
    %c1_252 = arith.constant 1 : index
    %c16_253 = arith.constant 16 : index
    %576 = memref.load %arg2[%c1_252, %c16_253] : memref<6x27xf32, #tpu.memory_space<smem>>
    %577 = vector.broadcast %576 : f32 to vector<1x256xf32>
    %578 = arith.mulf %577, %571 : vector<1x256xf32>
    %579 = arith.addf %554, %578 : vector<1x256xf32>
    %c2_254 = arith.constant 2 : index
    %c16_255 = arith.constant 16 : index
    %580 = memref.load %arg2[%c2_254, %c16_255] : memref<6x27xf32, #tpu.memory_space<smem>>
    %581 = vector.broadcast %580 : f32 to vector<1x256xf32>
    %582 = arith.mulf %581, %571 : vector<1x256xf32>
    %583 = arith.addf %558, %582 : vector<1x256xf32>
    %c3_256 = arith.constant 3 : index
    %c16_257 = arith.constant 16 : index
    %584 = memref.load %arg2[%c3_256, %c16_257] : memref<6x27xf32, #tpu.memory_space<smem>>
    %585 = vector.broadcast %584 : f32 to vector<1x256xf32>
    %586 = arith.mulf %585, %571 : vector<1x256xf32>
    %587 = arith.addf %562, %586 : vector<1x256xf32>
    %c4_258 = arith.constant 4 : index
    %c16_259 = arith.constant 16 : index
    %588 = memref.load %arg2[%c4_258, %c16_259] : memref<6x27xf32, #tpu.memory_space<smem>>
    %589 = vector.broadcast %588 : f32 to vector<1x256xf32>
    %590 = arith.mulf %589, %571 : vector<1x256xf32>
    %591 = arith.addf %566, %590 : vector<1x256xf32>
    %c5_260 = arith.constant 5 : index
    %c16_261 = arith.constant 16 : index
    %592 = memref.load %arg2[%c5_260, %c16_261] : memref<6x27xf32, #tpu.memory_space<smem>>
    %593 = vector.broadcast %592 : f32 to vector<1x256xf32>
    %594 = arith.mulf %593, %571 : vector<1x256xf32>
    %595 = arith.addf %570, %594 : vector<1x256xf32>
    %596 = vector.extract_strided_slice %545 {offsets = [2, 0], sizes = [1, 256], strides = [1, 1]} : vector<3x256xf32> to vector<1x256xf32>
    %c0_262 = arith.constant 0 : index
    %c25 = arith.constant 25 : index
    %597 = memref.load %arg2[%c0_262, %c25] : memref<6x27xf32, #tpu.memory_space<smem>>
    %598 = vector.broadcast %597 : f32 to vector<1x256xf32>
    %599 = arith.mulf %598, %596 : vector<1x256xf32>
    %600 = arith.addf %575, %599 : vector<1x256xf32>
    %c1_263 = arith.constant 1 : index
    %c25_264 = arith.constant 25 : index
    %601 = memref.load %arg2[%c1_263, %c25_264] : memref<6x27xf32, #tpu.memory_space<smem>>
    %602 = vector.broadcast %601 : f32 to vector<1x256xf32>
    %603 = arith.mulf %602, %596 : vector<1x256xf32>
    %604 = arith.addf %579, %603 : vector<1x256xf32>
    %c2_265 = arith.constant 2 : index
    %c25_266 = arith.constant 25 : index
    %605 = memref.load %arg2[%c2_265, %c25_266] : memref<6x27xf32, #tpu.memory_space<smem>>
    %606 = vector.broadcast %605 : f32 to vector<1x256xf32>
    %607 = arith.mulf %606, %596 : vector<1x256xf32>
    %608 = arith.addf %583, %607 : vector<1x256xf32>
    %c3_267 = arith.constant 3 : index
    %c25_268 = arith.constant 25 : index
    %609 = memref.load %arg2[%c3_267, %c25_268] : memref<6x27xf32, #tpu.memory_space<smem>>
    %610 = vector.broadcast %609 : f32 to vector<1x256xf32>
    %611 = arith.mulf %610, %596 : vector<1x256xf32>
    %612 = arith.addf %587, %611 : vector<1x256xf32>
    %c4_269 = arith.constant 4 : index
    %c25_270 = arith.constant 25 : index
    %613 = memref.load %arg2[%c4_269, %c25_270] : memref<6x27xf32, #tpu.memory_space<smem>>
    %614 = vector.broadcast %613 : f32 to vector<1x256xf32>
    %615 = arith.mulf %614, %596 : vector<1x256xf32>
    %616 = arith.addf %591, %615 : vector<1x256xf32>
    %c5_271 = arith.constant 5 : index
    %c25_272 = arith.constant 25 : index
    %617 = memref.load %arg2[%c5_271, %c25_272] : memref<6x27xf32, #tpu.memory_space<smem>>
    %618 = vector.broadcast %617 : f32 to vector<1x256xf32>
    %619 = arith.mulf %618, %596 : vector<1x256xf32>
    %620 = arith.addf %595, %619 : vector<1x256xf32>
    %c222_i32 = arith.constant 222 : i32
    %621 = tpu.dynamic_rotate %1 by %c222_i32 dim 1 : vector<3x256xf32>, i32 -> vector<3x256xf32>
    %622 = vector.extract_strided_slice %621 {offsets = [0, 0], sizes = [1, 256], strides = [1, 1]} : vector<3x256xf32> to vector<1x256xf32>
    %c0_273 = arith.constant 0 : index
    %c8 = arith.constant 8 : index
    %623 = memref.load %arg2[%c0_273, %c8] : memref<6x27xf32, #tpu.memory_space<smem>>
    %624 = vector.broadcast %623 : f32 to vector<1x256xf32>
    %625 = arith.mulf %624, %622 : vector<1x256xf32>
    %626 = arith.addf %600, %625 : vector<1x256xf32>
    %c1_274 = arith.constant 1 : index
    %c8_275 = arith.constant 8 : index
    %627 = memref.load %arg2[%c1_274, %c8_275] : memref<6x27xf32, #tpu.memory_space<smem>>
    %628 = vector.broadcast %627 : f32 to vector<1x256xf32>
    %629 = arith.mulf %628, %622 : vector<1x256xf32>
    %630 = arith.addf %604, %629 : vector<1x256xf32>
    %c2_276 = arith.constant 2 : index
    %c8_277 = arith.constant 8 : index
    %631 = memref.load %arg2[%c2_276, %c8_277] : memref<6x27xf32, #tpu.memory_space<smem>>
    %632 = vector.broadcast %631 : f32 to vector<1x256xf32>
    %633 = arith.mulf %632, %622 : vector<1x256xf32>
    %634 = arith.addf %608, %633 : vector<1x256xf32>
    %c3_278 = arith.constant 3 : index
    %c8_279 = arith.constant 8 : index
    %635 = memref.load %arg2[%c3_278, %c8_279] : memref<6x27xf32, #tpu.memory_space<smem>>
    %636 = vector.broadcast %635 : f32 to vector<1x256xf32>
    %637 = arith.mulf %636, %622 : vector<1x256xf32>
    %638 = arith.addf %612, %637 : vector<1x256xf32>
    %c4_280 = arith.constant 4 : index
    %c8_281 = arith.constant 8 : index
    %639 = memref.load %arg2[%c4_280, %c8_281] : memref<6x27xf32, #tpu.memory_space<smem>>
    %640 = vector.broadcast %639 : f32 to vector<1x256xf32>
    %641 = arith.mulf %640, %622 : vector<1x256xf32>
    %642 = arith.addf %616, %641 : vector<1x256xf32>
    %c5_282 = arith.constant 5 : index
    %c8_283 = arith.constant 8 : index
    %643 = memref.load %arg2[%c5_282, %c8_283] : memref<6x27xf32, #tpu.memory_space<smem>>
    %644 = vector.broadcast %643 : f32 to vector<1x256xf32>
    %645 = arith.mulf %644, %622 : vector<1x256xf32>
    %646 = arith.addf %620, %645 : vector<1x256xf32>
    %647 = vector.extract_strided_slice %621 {offsets = [1, 0], sizes = [1, 256], strides = [1, 1]} : vector<3x256xf32> to vector<1x256xf32>
    %c0_284 = arith.constant 0 : index
    %c17 = arith.constant 17 : index
    %648 = memref.load %arg2[%c0_284, %c17] : memref<6x27xf32, #tpu.memory_space<smem>>
    %649 = vector.broadcast %648 : f32 to vector<1x256xf32>
    %650 = arith.mulf %649, %647 : vector<1x256xf32>
    %651 = arith.addf %626, %650 : vector<1x256xf32>
    %c1_285 = arith.constant 1 : index
    %c17_286 = arith.constant 17 : index
    %652 = memref.load %arg2[%c1_285, %c17_286] : memref<6x27xf32, #tpu.memory_space<smem>>
    %653 = vector.broadcast %652 : f32 to vector<1x256xf32>
    %654 = arith.mulf %653, %647 : vector<1x256xf32>
    %655 = arith.addf %630, %654 : vector<1x256xf32>
    %c2_287 = arith.constant 2 : index
    %c17_288 = arith.constant 17 : index
    %656 = memref.load %arg2[%c2_287, %c17_288] : memref<6x27xf32, #tpu.memory_space<smem>>
    %657 = vector.broadcast %656 : f32 to vector<1x256xf32>
    %658 = arith.mulf %657, %647 : vector<1x256xf32>
    %659 = arith.addf %634, %658 : vector<1x256xf32>
    %c3_289 = arith.constant 3 : index
    %c17_290 = arith.constant 17 : index
    %660 = memref.load %arg2[%c3_289, %c17_290] : memref<6x27xf32, #tpu.memory_space<smem>>
    %661 = vector.broadcast %660 : f32 to vector<1x256xf32>
    %662 = arith.mulf %661, %647 : vector<1x256xf32>
    %663 = arith.addf %638, %662 : vector<1x256xf32>
    %c4_291 = arith.constant 4 : index
    %c17_292 = arith.constant 17 : index
    %664 = memref.load %arg2[%c4_291, %c17_292] : memref<6x27xf32, #tpu.memory_space<smem>>
    %665 = vector.broadcast %664 : f32 to vector<1x256xf32>
    %666 = arith.mulf %665, %647 : vector<1x256xf32>
    %667 = arith.addf %642, %666 : vector<1x256xf32>
    %c5_293 = arith.constant 5 : index
    %c17_294 = arith.constant 17 : index
    %668 = memref.load %arg2[%c5_293, %c17_294] : memref<6x27xf32, #tpu.memory_space<smem>>
    %669 = vector.broadcast %668 : f32 to vector<1x256xf32>
    %670 = arith.mulf %669, %647 : vector<1x256xf32>
    %671 = arith.addf %646, %670 : vector<1x256xf32>
    %672 = vector.extract_strided_slice %621 {offsets = [2, 0], sizes = [1, 256], strides = [1, 1]} : vector<3x256xf32> to vector<1x256xf32>
    %c0_295 = arith.constant 0 : index
    %c26 = arith.constant 26 : index
    %673 = memref.load %arg2[%c0_295, %c26] : memref<6x27xf32, #tpu.memory_space<smem>>
    %674 = vector.broadcast %673 : f32 to vector<1x256xf32>
    %675 = arith.mulf %674, %672 : vector<1x256xf32>
    %676 = arith.addf %651, %675 : vector<1x256xf32>
    %c1_296 = arith.constant 1 : index
    %c26_297 = arith.constant 26 : index
    %677 = memref.load %arg2[%c1_296, %c26_297] : memref<6x27xf32, #tpu.memory_space<smem>>
    %678 = vector.broadcast %677 : f32 to vector<1x256xf32>
    %679 = arith.mulf %678, %672 : vector<1x256xf32>
    %680 = arith.addf %655, %679 : vector<1x256xf32>
    %c2_298 = arith.constant 2 : index
    %c26_299 = arith.constant 26 : index
    %681 = memref.load %arg2[%c2_298, %c26_299] : memref<6x27xf32, #tpu.memory_space<smem>>
    %682 = vector.broadcast %681 : f32 to vector<1x256xf32>
    %683 = arith.mulf %682, %672 : vector<1x256xf32>
    %684 = arith.addf %659, %683 : vector<1x256xf32>
    %c3_300 = arith.constant 3 : index
    %c26_301 = arith.constant 26 : index
    %685 = memref.load %arg2[%c3_300, %c26_301] : memref<6x27xf32, #tpu.memory_space<smem>>
    %686 = vector.broadcast %685 : f32 to vector<1x256xf32>
    %687 = arith.mulf %686, %672 : vector<1x256xf32>
    %688 = arith.addf %663, %687 : vector<1x256xf32>
    %c4_302 = arith.constant 4 : index
    %c26_303 = arith.constant 26 : index
    %689 = memref.load %arg2[%c4_302, %c26_303] : memref<6x27xf32, #tpu.memory_space<smem>>
    %690 = vector.broadcast %689 : f32 to vector<1x256xf32>
    %691 = arith.mulf %690, %672 : vector<1x256xf32>
    %692 = arith.addf %667, %691 : vector<1x256xf32>
    %c5_304 = arith.constant 5 : index
    %c26_305 = arith.constant 26 : index
    %693 = memref.load %arg2[%c5_304, %c26_305] : memref<6x27xf32, #tpu.memory_space<smem>>
    %694 = vector.broadcast %693 : f32 to vector<1x256xf32>
    %695 = arith.mulf %694, %672 : vector<1x256xf32>
    %696 = arith.addf %671, %695 : vector<1x256xf32>
    %697 = tpu.concatenate %676, %680, %684, %688, %692, %696 in 0 : vector<1x256xf32>, vector<1x256xf32>, vector<1x256xf32>, vector<1x256xf32>, vector<1x256xf32>, vector<1x256xf32> -> vector<6x256xf32>
    %c0_306 = arith.constant 0 : index
    %c0_307 = arith.constant 0 : index
    %c0_308 = arith.constant 0 : index
    %698 = vector.load %arg4[%c0_306, %c0_307, %c0_308] : memref<1x6x256xf32, #tpu.memory_space<vmem>>, vector<1x6x256xf32>
    %699 = vector.shape_cast %698 : vector<1x6x256xf32> to vector<6x256xf32>
    %700 = vector.shape_cast %697 : vector<6x256xf32> to vector<1x6x256xf32>
    tpu.vector_store %arg4[%c0_306, %c0_307, %c0_308], %700 {strides = array<i32>} : memref<1x6x256xf32, #tpu.memory_space<vmem>>, vector<1x6x256xf32>,
    return
  }
  func.func @transform_0(%arg0: i32) -> (i32, i32, i32) {
    %c0_i32 = arith.constant 0 : i32
    %c0_i32_0 = arith.constant 0 : i32
    %c0_i32_1 = arith.constant 0 : i32
    return %arg0, %c0_i32, %c0_i32_0 : i32, i32, i32
  }
  func.func @transform_1(%arg0: i32) -> (i32, i32) {
    %c0_i32 = arith.constant 0 : i32
    %c0_i32_0 = arith.constant 0 : i32
    %c0_i32_1 = arith.constant 0 : i32
    return %c0_i32, %c0_i32_0 : i32, i32
  }
  func.func @transform_2(%arg0: i32) -> i32 {
    %c0_i32 = arith.constant 0 : i32
    %c0_i32_0 = arith.constant 0 : i32
    return %c0_i32 : i32
  }
  func.func @transform_3(%arg0: i32) -> (i32, i32, i32) {
    %c0_i32 = arith.constant 0 : i32
    %c0_i32_0 = arith.constant 0 : i32
    %c0_i32_1 = arith.constant 0 : i32
    return %arg0, %c0_i32, %c0_i32_0 : i32, i32, i32
  }
}

</mosaic_0001>

<bundles_post_ra>
// kernel: conv2d_forward.1
= control target key start
LH: loop header
LB: loop body
LE: loop exit
PB: predicated region body
PF: predicated region fallthrough
CT: control target
= control target key end

     0   :  { %s3843_s0 = inlined_call_operand.vmem [shape: f32[2,3,256], index: 0, kind: input, shape index: {}]   ;;  %s3844_s1 = inlined_call_operand.vmem [shape: f32[6,27], index: 1, kind: input, shape index: {}]   ;;  %s3845_s2 = inlined_call_operand.vmem [shape: f32[6], index: 2, kind: input, shape index: {}]   ;;  %s3846_s3 = inlined_call_operand.vmem [shape: f32[2,6,256], index: 3, kind: output, shape index: {}]  }
   0x1   :  { %3939 = sst [smem:[#allocation86_spill]] %s3843_s0 }
   0x2   :  { %3940 = sst [smem:[#allocation87_spill]] %s3844_s1 }
   0x3   :  { %3941 = sst [smem:[#allocation88_spill]] %s3845_s2 }
   0x4   :  { %3942 = sst [smem:[#allocation89_spill]] %s3846_s3 }
   0x5   :  { %8 = vsyncpa [#allocation3], 0 }
   0x6   :  { %9 = vsyncpa [#allocation5], 0  ;;  %s2445_s12 = smov 0  }
   0x7 LB: > { %3943 = sst [smem:[#allocation8_spill]] %s2413_s12  ;;  %s2451_s13 = sadd.s32 4294967295, %s2413_s12   ;;  %s2413_s12 = sphi %s2445_s12, %s15_s12  }
   0x8   : > { %p2042_p0 = scmp.ge.s32.totalorder %s2413_s12, 1  ;;  %p114_p1 = scmp.lt.s32.totalorder %s2413_s12, 3 }
   0x9   : > { %s3944_s1 = sld [smem:[#allocation87_spill]]  ;;  %p3847_p3 = scmp.eq.s32.totalorder %s2451_s13, 0 }
   0xa   : > { %p2458_p2 = pnand %p2042_p0, %p114_p1  ;;  %s3946_s2 = sld [smem:[#allocation88_spill]] }
   0xc   : > { %s3945_s17 = scalar_select %p2458_p2, 1, 0 }
   0xd   : > { %p2339_p4 = pneg %p2458_p2 }
   0xf   : > { %s127_s16 = sshll.u32 %s3944_s1, 4  ;;  %p2470_p5 = pnand %p3847_p3, %p2339_p4  ;;  %s128_s16 = int_to_ptr.vmem [resolvable:$true] %s127_s16 }
  0x10   : > { %s138_s20 = sshll.u32 %s3946_s2, 4  ;;  %s2369_s22 = scalar_lea.vmem %s128_s16, 128  ;;  %s139_s20 = int_to_ptr.vmem [resolvable:$true] %s138_s20 }
  0x11   : > { %p2370_p6 = scmp.ne.s32.totalorder %s128_s16, %s2369_s22  ;;  %p2371_p7 = pneg %p2470_p5 }
  0x12   : > { %p2377_p10 = scmp.lt.s32.totalorder %s128_s16, %s128_s16  ;;  %p2378_p11 = scmp.lt.s32.totalorder %s2369_s22, %s2369_s22 }
  0x13   : > { %p2372_p8 = pnand %p2371_p7, %p2370_p6 }
  0x14   : > { %p2379_p12 = por %p2378_p11, %p2377_p10 }
  0x15   : > { %p2373_p9 = pneg %p2372_p8 }
  0x17   : > { %p2380_p13 = pnand %p2379_p12, %p2373_p9 }
  0x19   : > { %2383 = shalt.err (!%p2380_p13)
}
  0x1a   : > { %s2415_s23 = smov [#allocation2]   ;;  %s2384_s24 = scalar_lea.vmem %s139_s20, 16 }
  0x1b   : > { %2342 = dma.vmem_to_smem (!%p2470_p5), %s128_s16, 128, %s2415_s23, [#allocation3]  }
  0x1c   : > { %p2385_p0 = scmp.ne.s32.totalorder %s139_s20, %s2384_s24  ;;  %p2392_p3 = scmp.lt.s32.totalorder %s139_s20, %s139_s20 }
  0x1d   : > { %p2393_p2 = scmp.lt.s32.totalorder %s2384_s24, %s2384_s24 }
  0x1e   : > { %p2387_p1 = pnand %p2385_p0, %p2371_p7 }
  0x1f   : > { %p2394_p6 = por %p2393_p2, %p2392_p3 }
  0x20   : > { %p2388_p4 = pneg %p2387_p1 }
  0x22   : > { %p2395_p8 = pnand %p2394_p6, %p2388_p4 }
  0x24   : > { %2398 = shalt.err (!%p2395_p8)
}
  0x25   : > { %s2416_s25 = smov [#allocation4]   ;;  %p3948_p9 = scmp.ne.s32.totalorder %s3945_s17, 0 }
  0x26   : > { %2345 = dma.vmem_to_smem (!%p2470_p5), %s139_s20, 16, %s2416_s25, [#allocation5]  }
  0x27   : > { %159 = sbr.rel (%p3948_p9) target bundleno = 483 (0x1e3), region = 32 }
  0x2c   : > { %p3949_p10 = scmp.eq.s32.totalorder %s2451_s13, 0 }
  0x2e   : > { %2404 = dma.done.wait (%p3949_p10), [#allocation3], 128   ;;  %p3950_p11 = pmov %p3949_p10 }
  0x2f   : > { %p3951_p7 = pmov %p3949_p10 }
  0x30   : > { %2406 = vsyncadd (%p3950_p11), [#allocation3], 4294967168 }
  0x31   : > { %2408 = dma.done.wait (%p3951_p7), [#allocation5], 16   ;;  %p3952_p2 = pmov %p3951_p7 }
  0x33   : > { %2410 = vsyncadd (%p3952_p2), [#allocation5], 4294967280 }
  0x34   : > { %169 = sfence }
  0x35   : > { %p188_p3 = scmp.lt.s32.totalorder %s2451_s13, 1  ;;  %s3954_s0 = sld [smem:[#allocation86_spill]]  ;;  %v338_v8 = vlaneseq  ;;  %vm1946_vm8 = vcmask 1040384   ;;  %vm1949_vm9 = vcmask 1041408   ;;  %vm1952_vm10 = vcmask 1042432  }
  0x36   : > { %s2417_s30 = smov 127   ;;  %s2418_s4 = smov 126   ;;  %vm1955_vm11 = vcmask 1043456   ;;  %vm1958_vm12 = vcmask 1044480  }
  0x37   : > { %s4274_s13 = smov (!%p188_p3, %s2451_s13), 1  ;;  %s2504_s5 = sld [smem:[#allocation4]]  ;;  %v1882_v57 = vshrl.u32 %v338_v8, 7 }
  0x38   : > { %3953 = sst [smem:[#allocation9_spill]] %s4274_s13  ;;  %s2329_s26 = sshll.u32 %s4274_s13, 3 }
  0x39   : > { %s2506_s6 = sld [smem:[#allocation4 + $0x1]]  ;;  %s2419_s11 = smov 112  }
  0x3a   : > { %s2508_s7 = sld [smem:[#allocation4 + $0x2]]  ;;  %s2420_s18 = smov 111  }
  0x3b   : > { %s192_s29 = scalar_lea.vmem %s3954_s0, %s2329_s26  ;;  %s2510_s8 = sld [smem:[#allocation4 + $0x3]] }
  0x3c   : > { %v2498_v0 = vld [vmem:[%s192_s29] sm:$0x77]  ;;  %s2512_s9 = sld [smem:[#allocation4 + $0x4]]  ;;  %s2421_s23 = smov 110  }
  0x3d   : > { %334 = vrot.lane.b32.xlu0 %v2498_v0, %s2417_s30  ;;  %529 = vrot.lane.b32.xlu1 %v2498_v0, %s2418_s4  ;;  %v332_v1 = vcombine.high %v2498_v0, %v2498_v0  ;;  %s2514_s10 = sld [smem:[#allocation4 + $0x5]]  ;;  %s2422_s28 = smov 96   ;;  %v200_v7 = vstv %s2504_s5 }
  0x3e   : > { %s2517_s14 = sld [smem:[#allocation2]] }
  0x3f   : > { %s2519_s15 = sld [smem:[#allocation2 + $0x80]]  ;;  %v202_v10 = vstv %s2506_s6 }
  0x40   : > { %s2521_s16 = sld [smem:[#allocation2 + $0x100]]  ;;  %v204_v11 = vstv %s2508_s7 }
  0x41   : > { %336 = vrot.lane.b32.xlu0 %v332_v1, %s2417_s30  ;;  %531 = vrot.lane.b32.xlu1 %v332_v1, %s2418_s4  ;;  %s2523_s17 = sld [smem:[#allocation2 + $0x180]]  ;;  %v206_v12 = vstv %s2510_s8 }
  0x42   : > { %s2526_s19 = sld [smem:[#allocation2 + $0x200]]  ;;  %v208_v14 = vstv %s2512_s9 }
  0x43   : > { %s2528_s20 = sld [smem:[#allocation2 + $0x280]]  ;;  %v210_v18 = vstv %s2514_s10 }
  0x44   : > { %s2530_s21 = sld [smem:[#allocation2 + $0x9]]  ;;  %v212_v2 = vstv %s2517_s14 }
  0x45   : > { %724 = vrot.lane.b32.xlu1 %v332_v1, %s2419_s11  ;;  %722 = vrot.lane.b32.xlu0 %v2498_v0, %s2419_s11  ;;  %s2532_s22 = sld [smem:[#allocation2 + $0x89]]  ;;  %v216_v3 = vstv %s2519_s15  ;;  %v213_v6 = vmul.f32 %v212_v2, %v2498_v0 }
  0x46   : > { %s2535_s24 = sld [smem:[#allocation2 + $0x109]]  ;;  %v220_v4 = vstv %s2521_s16  ;;  %v217_v9 = vmul.f32 %v216_v3, %v2498_v0 }
  0x47   : > { %s2537_s25 = sld [smem:[#allocation2 + $0x189]]  ;;  %v224_v5 = vstv %s2523_s17  ;;  %v221_v13 = vmul.f32 %v220_v4, %v2498_v0  ;;  %v214_v21 = vadd.f32 %v213_v6, %v200_v7  ;;  %v2740_v4 = vand.u32 127, %v338_v8 }
  0x48   : > { %s2539_s26 = sld [smem:[#allocation2 + $0x209]]  ;;  %v228_v15 = vstv %s2526_s19  ;;  %v225_v17 = vmul.f32 %v224_v5, %v2498_v0  ;;  %v218_v25 = vadd.f32 %v217_v9, %v202_v10  ;;  %v2745_v9 = vsub.s32 0, %v1882_v57 }
  0x49   : > { %917 = vrot.lane.b32.xlu1 %v332_v1, %s2420_s18  ;;  %915 = vrot.lane.b32.xlu0 %v2498_v0, %s2420_s18  ;;  %s2541_s27 = sld [smem:[#allocation2 + $0x289]]  ;;  %s2423_s18 = smov 95   ;;  %v232_v22 = vstv %s2528_s20  ;;  %v222_v27 = vadd.f32 %v221_v13, %v204_v11  ;;  %v229_v28 = vmul.f32 %v228_v15, %v2498_v0  ;;  %v2747_v10 = vsub.s32 4, %v1882_v57 }
  0x4a   : > { %s2544_s29 = sld [smem:[#allocation2 + $0x12]]  ;;  %v236_v16 = vstv %s2530_s21  ;;  %v226_v31 = vadd.f32 %v225_v17, %v206_v12  ;;  %v233_v40 = vmul.f32 %v232_v22, %v2498_v0  ;;  %vm340_vm0 = vcmp.lt.s32.totalorder %v2740_v4, 127 }
  0x4b   : > { %s2546_s30 = sld [smem:[#allocation2 + $0x92]]  ;;  %v244_v19 = vstv %s2532_s22  ;;  %v237_v29 = vmul.f32 %v236_v16, %v2498_v0  ;;  %v230_v43 = vadd.f32 %v229_v28, %v208_v14  ;;  %vm533_vm1 = vcmp.lt.s32.totalorder %v2740_v4, 126 }
  0x4c   : > { %s2548_s4 = sld [smem:[#allocation2 + $0x112]]  ;;  %v252_v20 = vstv %s2535_s24  ;;  %v245_v32 = vmul.f32 %v244_v19, %v2498_v0  ;;  %v234_v54 = vadd.f32 %v233_v40, %v210_v18  ;;  %vm726_vm2 = vcmp.lt.s32.totalorder %v2740_v4, 112 }
  0x4d   : > { %1110 = vrot.lane.b32.xlu1 %v332_v1, %s2421_s23  ;;  %1108 = vrot.lane.b32.xlu0 %v2498_v0, %s2421_s23  ;;  %s2550_s11 = sld [smem:[#allocation2 + $0x192]]  ;;  %v260_v23 = vstv %s2537_s25  ;;  %v253_v33 = vmul.f32 %v252_v20, %v2498_v0  ;;  %v2064_v44 = vrot.slane %v237_v29, 9  ;;  %vm919_vm3 = vcmp.lt.s32.totalorder %v2740_v4, 111 }
  0x4e   : > { %s2553_s23 = sld [smem:[#allocation2 + $0x212]]  ;;  %v268_v24 = vstv %s2539_s26  ;;  %v261_v36 = vmul.f32 %v260_v23, %v2498_v0  ;;  %v2066_v46 = vrot.slane %v245_v32, 9  ;;  %vm1112_vm4 = vcmp.lt.s32.totalorder %v2740_v4, 110 }
  0x4f   : > { %s2555_s0 = sld [smem:[#allocation2 + $0x292]]  ;;  %v276_v26 = vstv %s2541_s27  ;;  %v269_v37 = vmul.f32 %v268_v24, %v2498_v0  ;;  %v2068_v47 = vrot.slane %v253_v33, 9  ;;  %v242_v58 = vadd.f32 %v2064_v44, %v214_v21 }
  0x50   : > { %s2557_s1 = sld [smem:[#allocation2 + $0x1]]  ;;  %v284_v30 = vstv %s2544_s29  ;;  %v277_v41 = vmul.f32 %v276_v26, %v2498_v0  ;;  %v2070_v50 = vrot.slane %v261_v36, 9  ;;  %v250_v60 = vadd.f32 %v2066_v46, %v218_v25 }
  0x51   : > { %1303 = vrot.lane.b32.xlu1 %v332_v1, %s2422_s28  ;;  %1301 = vrot.lane.b32.xlu0 %v2498_v0, %s2422_s28  ;;  %s2559_s2 = sld [smem:[#allocation2 + $0x81]]  ;;  %s2424_s28 = smov 94   ;;  %v292_v34 = vstv %s2546_s30  ;;  %v285_v45 = vmul.f32 %v284_v30, %v2498_v0  ;;  %v2072_v51 = vrot.slane %v269_v37, 9  ;;  %v258_v61 = vadd.f32 %v2068_v47, %v222_v27 }
  0x52   : > { %3955 = sst [smem:[#allocation10_spill]] %s2548_s4  ;;  %v293_v48 = vmul.f32 %v292_v34, %v2498_v0  ;;  %v2074_v55 = vrot.slane %v277_v41, 9  ;;  %vm1305_vm5 = vcmp.lt.s32.totalorder %v2740_v4, 96  ;;  %vm1498_vm6 = vcmp.lt.s32.totalorder %v2740_v4, 95 }
  0x53   : > { %3956 = sst [smem:[#allocation11_spill]] %s2550_s11  ;;  %v2076_v59 = vrot.slane %v285_v45, 10  ;;  %v274_v2 = vadd.f32 %v2072_v51, %v230_v43  ;;  %vm1691_vm7 = vcmp.lt.s32.totalorder %v2740_v4, 94 }
  0x54   : > { %3957 = sst [smem:[#allocation12_spill]] %s2553_s23  ;;  %v2078_v62 = vrot.slane %v293_v48, 10  ;;  %v282_v5 = vadd.f32 %v2074_v55, %v234_v54 }
  0x55   : > { %1496 = vrot.lane.b32.xlu1 %v332_v1, %s2423_s18  ;;  %1494 = vrot.lane.b32.xlu0 %v2498_v0, %s2423_s18  ;;  %3958 = sst [smem:[#allocation13_spill]] %s2555_s0  ;;  %v2749_v11 = vadd.f32 %v2076_v59, %v242_v58 }
  0x56   : > { %3959 = sst [smem:[#allocation14_spill]] %s2557_s1  ;;  %v2755_v13 = vadd.f32 %v2078_v62, %v250_v60 }
  0x57   : > { %3960 = sst [smem:[#allocation15_spill]] %s2559_s2 }
  0x58   : > { %s2562_s12 = sld [smem:[#allocation2 + $0x101]] }
  0x59   : > { %1689 = vrot.lane.b32.xlu1 %v332_v1, %s2424_s28  ;;  %1687 = vrot.lane.b32.xlu0 %v2498_v0, %s2424_s28  ;;  %s2564_s3 = sld [smem:[#allocation2 + $0x181]]  ;;  %v266_v1 = vadd.f32 %v2070_v50, %v226_v31 }
  0x5a   : > { %s2566_s13 = sld [smem:[#allocation2 + $0x201]] }
  0x5b   : > { %s2568_s11 = sld [smem:[#allocation2 + $0x281]] }
  0x5c   : > { %s2570_s18 = sld [smem:[#allocation2 + $0xa]] }
  0x5d   : > { %s2572_s23 = sld [smem:[#allocation2 + $0x8a]] }
  0x5e   : > { %3961 = sst [smem:[#allocation16_spill]] %s2562_s12 }
  0x5f   : > { %3962 = sst [smem:[#allocation17_spill]] %s2564_s3 }
  0x60   : > { %3963 = sst [smem:[#allocation18_spill]] %s2566_s13 }
  0x61   : > { %3964 = sst [smem:[#allocation19_spill]] %s2568_s11 }
  0x62   : > { %3965 = sst [smem:[#allocation20_spill]] %s2570_s18 }
  0x63   : > { %3966 = sst [smem:[#allocation21_spill]] %s2572_s23 }
  0x64   : > { %s2574_s0 = sld [smem:[#allocation2 + $0x10a]] }
  0x65   : > { %s2576_s1 = sld [smem:[#allocation2 + $0x18a]] }
  0x66   : > { %s2578_s2 = sld [smem:[#allocation2 + $0x20a]] }
  0x67   : > { %s2580_s4 = sld [smem:[#allocation2 + $0x28a]] }
  0x68   : > { %s2582_s28 = sld [smem:[#allocation2 + $0x13]] }
  0x69   : > { %s2584_s12 = sld [smem:[#allocation2 + $0x93]] }
  0x6a   : > { %3967 = sst [smem:[#allocation22_spill]] %s2574_s0 }
  0x6b   : > { %3968 = sst [smem:[#allocation23_spill]] %s2576_s1 }
  0x6c   : > { %3969 = sst [smem:[#allocation24_spill]] %s2578_s2 }
  0x6d   : > { %3970 = sst [smem:[#allocation25_spill]] %s2580_s4 }
  0x6e   : > { %3971 = sst [smem:[#allocation26_spill]] %s2582_s28 }
  0x6f   : > { %3972 = sst [smem:[#allocation27_spill]] %s2584_s12 }
  0x70   : > { %s2586_s3 = sld [smem:[#allocation2 + $0x113]] }
  0x71   : > { %s2588_s13 = sld [smem:[#allocation2 + $0x193]] }
  0x72   : > { %s2590_s11 = sld [smem:[#allocation2 + $0x213]] }
  0x73   : > { %s2592_s18 = sld [smem:[#allocation2 + $0x293]] }
  0x74   : > { %s2594_s23 = sld [smem:[#allocation2 + $0x2]] }
  0x75   : > { %s2596_s0 = sld [smem:[#allocation2 + $0x82]] }
  0x76   : > { %3973 = sst [smem:[#allocation28_spill]] %s2586_s3 }
  0x77   : > { %3974 = sst [smem:[#allocation29_spill]] %s2588_s13 }
  0x78   : > { %3975 = sst [smem:[#allocation30_spill]] %s2590_s11 }
  0x79   : > { %3976 = sst [smem:[#allocation31_spill]] %s2592_s18 }
  0x7a   : > { %3977 = sst [smem:[#allocation32_spill]] %s2594_s23 }
  0x7b   : > { %3978 = sst [smem:[#allocation33_spill]] %s2596_s0 }
  0x7c   : > { %s2598_s1 = sld [smem:[#allocation2 + $0x102]] }
  0x7d   : > { %s2600_s2 = sld [smem:[#allocation2 + $0x182]] }
  0x7e   : > { %s2602_s4 = sld [smem:[#allocation2 + $0x202]] }
  0x7f   : > { %s2604_s28 = sld [smem:[#allocation2 + $0x282]] }
  0x80   : > { %s2606_s12 = sld [smem:[#allocation2 + $0xb]] }
  0x81   : > { %s2608_s3 = sld [smem:[#allocation2 + $0x8b]] }
  0x82   : > { %3979 = sst [smem:[#allocation34_spill]] %s2598_s1 }
  0x83   : > { %3980 = sst [smem:[#allocation35_spill]] %s2600_s2 }
  0x84   : > { %3981 = sst [smem:[#allocation36_spill]] %s2602_s4 }
  0x85   : > { %3982 = sst [smem:[#allocation37_spill]] %s2604_s28 }
  0x86   : > { %3983 = sst [smem:[#allocation38_spill]] %s2606_s12 }
  0x87   : > { %3984 = sst [smem:[#allocation39_spill]] %s2608_s3 }
  0x88   : > { %s2610_s13 = sld [smem:[#allocation2 + $0x10b]] }
  0x89   : > { %s2612_s11 = sld [smem:[#allocation2 + $0x18b]] }
  0x8a   : > { %s2614_s18 = sld [smem:[#allocation2 + $0x20b]] }
  0x8b   : > { %s2616_s23 = sld [smem:[#allocation2 + $0x28b]] }
  0x8c   : > { %s2618_s0 = sld [smem:[#allocation2 + $0x14]] }
  0x8d   : > { %s2620_s1 = sld [smem:[#allocation2 + $0x94]] }
  0x8e   : > { %3985 = sst [smem:[#allocation40_spill]] %s2610_s13 }
  0x8f   : > { %3986 = sst [smem:[#allocation41_spill]] %s2612_s11 }
  0x90   : > { %3987 = sst [smem:[#allocation42_spill]] %s2614_s18  ;;  %v635_v43 = vstv %s2614_s18 }
  0x91   : > { %3988 = sst [smem:[#allocation43_spill]] %s2616_s23 }
  0x92   : > { %3989 = sst [smem:[#allocation44_spill]] %s2618_s0 }
  0x93   : > { %3990 = sst [smem:[#allocation45_spill]] %s2620_s1 }
  0x94   : > { %s2622_s2 = sld [smem:[#allocation2 + $0x114]] }
  0x95   : > { %s2624_s4 = sld [smem:[#allocation2 + $0x194]] }
  0x96   : > { %s2626_s12 = sld [smem:[#allocation2 + $0x214]] }
  0x97   : > { %s2628_s3 = sld [smem:[#allocation2 + $0x294]] }
  0x98   : > { %s2630_s13 = sld [smem:[#allocation2 + $0x3]] }
  0x99   : > { %s2632_s11 = sld [smem:[#allocation2 + $0x83]] }
  0x9a   : > { %3991 = sst [smem:[#allocation46_spill]] %s2622_s2 }
  0x9b   : > { %3992 = sst [smem:[#allocation47_spill]] %s2624_s4 }
  0x9c   : > { %3993 = sst [smem:[#allocation48_spill]] %s2626_s12 }
  0x9d   : > { %3994 = sst [smem:[#allocation49_spill]] %s2628_s3 }
  0x9e   : > { %3995 = sst [smem:[#allocation50_spill]] %s2630_s13 }
  0x9f   : > { %3996 = sst [smem:[#allocation51_spill]] %s2632_s11 }
  0xa0   : > { %s2634_s23 = sld [smem:[#allocation2 + $0x103]] }
  0xa1   : > { %s2636_s0 = sld [smem:[#allocation2 + $0x183]] }
  0xa2   : > { %s2638_s1 = sld [smem:[#allocation2 + $0x203]] }
  0xa3   : > { %s2640_s2 = sld [smem:[#allocation2 + $0x283]] }
  0xa4   : > { %s2642_s4 = sld [smem:[#allocation2 + $0xc]] }
  0xa5   : > { %s2644_s12 = sld [smem:[#allocation2 + $0x8c]] }
  0xa6   : > { %3997 = sst [smem:[#allocation52_spill]] %s2634_s23 }
  0xa7   : > { %3998 = sst [smem:[#allocation53_spill]] %s2636_s0 }
  0xa8   : > { %3999 = sst [smem:[#allocation54_spill]] %s2638_s1 }
  0xa9   : > { %4000 = sst [smem:[#allocation55_spill]] %s2640_s2 }
  0xaa   : > { %4001 = sst [smem:[#allocation56_spill]] %s2642_s4 }
  0xab   : > { %4002 = sst [smem:[#allocation57_spill]] %s2644_s12 }
  0xac   : > { %s2646_s3 = sld [smem:[#allocation2 + $0x10c]] }
  0xad   : > { %s2648_s13 = sld [smem:[#allocation2 + $0x18c]] }
  0xae   : > { %s2650_s11 = sld [smem:[#allocation2 + $0x20c]] }
  0xaf   : > { %s2652_s23 = sld [smem:[#allocation2 + $0x28c]]  ;;  %v335_v62 = vpop.permute.xlu0 %334 }
  0xb0   : > { %s2654_s0 = sld [smem:[#allocation2 + $0x15]] }
  0xb1   : > { %s2657_s2 = sld [smem:[#allocation2 + $0x95]] }
  0xb2   : > { %4003 = sst [smem:[#allocation58_spill]] %s2646_s3 }
  0xb3   : > { %4004 = sst [smem:[#allocation59_spill]] %s2648_s13  ;;  %v337_v60 = vpop.permute.xlu0 %336 }
  0xb4   : > { %4005 = sst [smem:[#allocation60_spill]] %s2650_s11  ;;  %v2888_v58 = vsel %vm340_vm0, %v337_v60, %v335_v62 }
  0xb5   : > { %4006 = sst [smem:[#allocation61_spill]] %s2652_s23 }
  0xb6   : > { %4007 = sst [smem:[#allocation62_spill]] %s2654_s0 }
  0xb7   : > { %4008 = sst [smem:[#allocation63_spill]] %s2657_s2 }
  0xb8   : > { %s2660_s4 = sld [smem:[#allocation2 + $0x115]] }
  0xb9   : > { %s2663_s13 = sld [smem:[#allocation2 + $0x195]] }
  0xba   : > { %s2667_s23 = sld [smem:[#allocation2 + $0x215]] }
  0xbb   : > { %s2671_s14 = sld [smem:[#allocation2 + $0x295]] }
  0xbc   : > { %s2677_s15 = sld [smem:[#allocation2 + $0x4]] }
  0xbd   : > { %s2683_s5 = sld [smem:[#allocation2 + $0x84]] }
  0xbe   : > { %4009 = sst [smem:[#allocation64_spill]] %s2660_s4 }
  0xbf   : > { %4010 = sst [smem:[#allocation65_spill]] %s2663_s13 }
  0xc0   : > { %4011 = sst [smem:[#allocation66_spill]] %s2667_s23 }
  0xc1   : > { %4012 = sst [smem:[#allocation67_spill]] %s2671_s14 }
  0xc2   : > { %4013 = sst [smem:[#allocation68_spill]] %s2677_s15 }
  0xc3   : > { %4014 = sst [smem:[#allocation69_spill]] %s2683_s5 }
  0xc4   : > { %s2688_s6 = sld [smem:[#allocation2 + $0x104]] }
  0xc5   : > { %s4016_s7 = sld [smem:[#allocation10_spill]] }
  0xc6   : > { %s2693_s8 = sld [smem:[#allocation2 + $0x184]] }
  0xc7   : > { %s4018_s9 = sld [smem:[#allocation11_spill]] }
  0xc8   : > { %s4019_s16 = sld [smem:[#allocation12_spill]] }
  0xc9   : > { %s2698_s10 = sld [smem:[#allocation2 + $0x204]] }
  0xca   : > { %4015 = sst [smem:[#allocation70_spill]] %s2688_s6 }
  0xcb   : > { %s4021_s17 = sld [smem:[#allocation13_spill]]  ;;  %v300_v35 = vstv %s4016_s7 }
  0xcc   : > { %4017 = sst [smem:[#allocation10_spill]] %s2693_s8  ;;  %v301_v49 = vmul.f32 %v300_v35, %v2498_v0 }
  0xcd   : > { %s2703_s19 = sld [smem:[#allocation2 + $0x284]]  ;;  %v308_v38 = vstv %s4018_s9 }
  0xce   : > { %s2709_s20 = sld [smem:[#allocation2 + $0xd]]  ;;  %v316_v39 = vstv %s4019_s16  ;;  %v309_v52 = vmul.f32 %v308_v38, %v2498_v0  ;;  %v2080_v63 = vrot.slane %v301_v49, 10  ;;  %v582_v38 = vstv %s2604_s28 }
  0xcf   : > { %4020 = sst [smem:[#allocation11_spill]] %s2698_s10  ;;  %v317_v53 = vmul.f32 %v316_v39, %v2498_v0 }
  0xd0   : > { %s2715_s21 = sld [smem:[#allocation2 + $0x8d]]  ;;  %v2757_v14 = vadd.f32 %v2080_v63, %v258_v61 }
  0xd1   : > { %v324_v42 = vstv %s4021_s17  ;;  %s2719_s22 = sld [smem:[#allocation2 + $0x10d]]  ;;  %v2084_v3 = vrot.slane %v317_v53, 10 }
  0xd2   : > { %s2723_s24 = sld [smem:[#allocation2 + $0x18d]]  ;;  %v325_v56 = vmul.f32 %v324_v42, %v2498_v0  ;;  %v2082_v0 = vrot.slane %v309_v52, 10 }
  0xd3   : > { %4022 = sst [smem:[#allocation12_spill]] %s2703_s19  ;;  %v2765_v18 = vadd.f32 %v2084_v3, %v274_v2 }
  0xd4   : > { %4023 = sst [smem:[#allocation13_spill]] %s2709_s20  ;;  %v2086_v6 = vrot.slane %v325_v56, 10  ;;  %v2763_v17 = vadd.f32 %v2082_v0, %v266_v1  ;;  %v530_v0 = vpop.permute.xlu1 %529  ;;  %v2884_v1 = vsel %vm340_vm0, %v335_v62, %v337_v60 }
  0xd5   : > { %s2727_s25 = sld [smem:[#allocation2 + $0x20d]] }
  0xd6   : > { %4024 = sst [smem:[#allocation71_spill]] %s2715_s21  ;;  %v2772_v22 = vadd.f32 %v2086_v6, %v282_v5 }
  0xd7   : > { %4025 = sst [smem:[#allocation72_spill]] %s2719_s22 }
  0xd8   : > { %4026 = sst [smem:[#allocation73_spill]] %s2723_s24 }
  0xd9   : > { %s2730_s26 = sld [smem:[#allocation2 + $0x28d]] }
  0xda   : > { %s4029_s27 = sld [smem:[#allocation14_spill]] }
  0xdb   : > { %4027 = sst [smem:[#allocation74_spill]] %s2727_s25 }
  0xdc   : > { %s2733_s29 = sld [smem:[#allocation2 + $0x16]] }
  0xdd   : > { %s4031_s30 = sld [smem:[#allocation15_spill]] }
  0xde   : > { %s2735_s7 = sld [smem:[#allocation2 + $0x96]] }
  0xdf   : > { %4028 = sst [smem:[#allocation75_spill]] %s2730_s26 }
  0xe0   : > { %s4033_s9 = sld [smem:[#allocation16_spill]]  ;;  %v344_v7 = vstv %s4029_s27 }
  0xe1   : > { %s4034_s16 = sld [smem:[#allocation17_spill]]  ;;  %v345_v57 = vmul.f32 %v344_v7, %v2884_v1  ;;  %v346_v56 = vmul.f32 %v344_v7, %v2888_v58  ;;  %v532_v7 = vpop.permute.xlu1 %531 }
  0xe2   : > { %4030 = sst [smem:[#allocation76_spill]] %s2733_s29 }
  0xe3   : > { %s2737_s17 = sld [smem:[#allocation2 + $0x116]]  ;;  %v353_v12 = vstv %s4031_s30  ;;  %v349_v59 = vcombine.low %v345_v57, %v346_v56 }
  0xe4   : > { %4032 = sst [smem:[#allocation77_spill]] %s2735_s7  ;;  %v354_v61 = vmul.f32 %v353_v12, %v2884_v1  ;;  %v355_v60 = vmul.f32 %v353_v12, %v2888_v58 }
  0xe5   : > { %s4036_s26 = sld [smem:[#allocation18_spill]] }
  0xe6   : > { %s2742_s29 = sld [smem:[#allocation2 + $0x196]]  ;;  %v362_v8 = vstv %s4033_s9  ;;  %v358_v2 = vcombine.low %v354_v61, %v355_v60  ;;  %v2935_v61 = vsel %vm533_vm1, %v530_v0, %v532_v7 }
  0xe7   : > { %s4038_s25 = sld [smem:[#allocation19_spill]]  ;;  %v371_v15 = vstv %s4034_s16  ;;  %v363_v62 = vmul.f32 %v362_v8, %v2884_v1  ;;  %v364_v5 = vmul.f32 %v362_v8, %v2888_v58 }
  0xe8   : > { %s4039_s24 = sld [smem:[#allocation20_spill]]  ;;  %v372_v3 = vmul.f32 %v371_v15, %v2884_v1  ;;  %v373_v6 = vmul.f32 %v371_v15, %v2888_v58  ;;  %v360_v60 = vadd.f32 %v358_v2, %v2755_v13 }
  0xe9   : > { %4035 = sst [smem:[#allocation78_spill]] %s2737_s17  ;;  %v367_v56 = vcombine.low %v363_v62, %v364_v5 }
  0xea   : > { %s4040_s7 = sld [smem:[#allocation21_spill]]  ;;  %v376_v54 = vcombine.low %v372_v3, %v373_v6 }
  0xeb   : > { %s2751_s22 = sld [smem:[#allocation2 + $0x216]]  ;;  %v380_v16 = vstv %s4036_s26 }
  0xec   : > { %4037 = sst [smem:[#allocation79_spill]] %s2742_s29  ;;  %v381_v12 = vmul.f32 %v380_v16, %v2884_v1  ;;  %v382_v63 = vmul.f32 %v380_v16, %v2888_v58  ;;  %v2939_v16 = vsel %vm533_vm1, %v532_v7, %v530_v0 }
  0xed   : > { %s4042_s17 = sld [smem:[#allocation22_spill]]  ;;  %v389_v19 = vstv %s4038_s25 }
  0xee   : > { %s4043_s21 = sld [smem:[#allocation23_spill]]  ;;  %v398_v20 = vstv %s4039_s24  ;;  %v390_v8 = vmul.f32 %v389_v19, %v2884_v1  ;;  %v391_v55 = vmul.f32 %v389_v19, %v2888_v58  ;;  %v351_v19 = vadd.f32 %v349_v59, %v2749_v11 }
  0xef   : > { %s4044_s20 = sld [smem:[#allocation24_spill]]  ;;  %v399_v57 = vmul.f32 %v398_v20, %v2884_v1  ;;  %v400_v5 = vmul.f32 %v398_v20, %v2888_v58  ;;  %v385_v62 = vcombine.low %v381_v12, %v382_v63 }
  0xf0   : > { %s4045_s29 = sld [smem:[#allocation25_spill]]  ;;  %v409_v21 = vstv %s4040_s7  ;;  %v394_v11 = vcombine.low %v390_v8, %v391_v55 }
  0xf1   : > { %4041 = sst [smem:[#allocation80_spill]] %s2751_s22  ;;  %v410_v15 = vmul.f32 %v409_v21, %v2884_v1  ;;  %v411_v53 = vmul.f32 %v409_v21, %v2888_v58  ;;  %v403_v59 = vcombine.low %v399_v57, %v400_v5 }
  0xf2   : > { %s2759_s27 = sld [smem:[#allocation2 + $0x296]] }
  0xf3   : > { %s4047_s19 = sld [smem:[#allocation26_spill]]  ;;  %v420_v23 = vstv %s4042_s17  ;;  %v414_v63 = vcombine.low %v410_v15, %v411_v53  ;;  %v2094_v55 = vrot.slane %v403_v59, 9  ;;  %v396_v59 = vadd.f32 %v394_v11, %v2772_v22 }
  0xf4   : > { %s4048_s10 = sld [smem:[#allocation27_spill]]  ;;  %v431_v24 = vstv %s4043_s21  ;;  %v421_v0 = vmul.f32 %v420_v23, %v2884_v1  ;;  %v422_v13 = vmul.f32 %v420_v23, %v2888_v58 }
  0xf5   : > { %s4049_s8 = sld [smem:[#allocation28_spill]]  ;;  %v442_v25 = vstv %s4044_s20  ;;  %v432_v20 = vmul.f32 %v431_v24, %v2884_v1  ;;  %v433_v2 = vmul.f32 %v431_v24, %v2888_v58  ;;  %v2096_v53 = vrot.slane %v414_v63, 9 }
  0xf6   : > { %s4050_s22 = sld [smem:[#allocation29_spill]]  ;;  %v453_v26 = vstv %s4045_s29  ;;  %v443_v21 = vmul.f32 %v442_v25, %v2884_v1  ;;  %v444_v3 = vmul.f32 %v442_v25, %v2888_v58  ;;  %v425_v6 = vcombine.low %v421_v0, %v422_v13 }
  0xf7   : > { %s2767_s30 = sld [smem:[#allocation2 + $0x5]]  ;;  %v454_v23 = vmul.f32 %v453_v26, %v2884_v1  ;;  %v455_v7 = vmul.f32 %v453_v26, %v2888_v58  ;;  %v436_v12 = vcombine.low %v432_v20, %v433_v2  ;;  %v369_v25 = vadd.f32 %v367_v56, %v2757_v14 }
  0xf8   : > { %4046 = sst [smem:[#allocation81_spill]] %s2759_s27  ;;  %v447_v8 = vcombine.low %v443_v21, %v444_v3  ;;  %v2098_v15 = vrot.slane %v425_v6, 9  ;;  %v378_v0 = vadd.f32 %v376_v54, %v2763_v17  ;;  %v387_v26 = vadd.f32 %v385_v62, %v2765_v18 }
  0xf9   : > { %s4052_s9 = sld [smem:[#allocation30_spill]]  ;;  %v464_v27 = vstv %s4047_s19  ;;  %v458_v57 = vcombine.low %v454_v23, %v455_v7  ;;  %v407_v20 = vadd.f32 %v2094_v55, %v351_v19  ;;  %v2100_v14 = vrot.slane %v436_v12, 9 }
  0xfa   : > { %s4053_s6 = sld [smem:[#allocation31_spill]]  ;;  %v475_v28 = vstv %s4048_s10  ;;  %v465_v24 = vmul.f32 %v464_v27, %v2884_v1  ;;  %v466_v5 = vmul.f32 %v464_v27, %v2888_v58  ;;  %v2102_v56 = vrot.slane %v447_v8, 9 }
  0xfb   : > { %s4054_s5 = sld [smem:[#allocation32_spill]]  ;;  %v486_v29 = vstv %s4049_s8  ;;  %v476_v13 = vmul.f32 %v475_v28, %v2884_v1  ;;  %v477_v27 = vmul.f32 %v475_v28, %v2888_v58  ;;  %v418_v63 = vadd.f32 %v2096_v53, %v360_v60 }
  0xfc   : > { %s4055_s15 = sld [smem:[#allocation33_spill]]  ;;  %v497_v30 = vstv %s4050_s22  ;;  %v469_v17 = vcombine.low %v465_v24, %v466_v5  ;;  %v487_v18 = vmul.f32 %v486_v29, %v2884_v1  ;;  %v488_v22 = vmul.f32 %v486_v29, %v2888_v58 }
  0xfd   : > { %4051 = sst [smem:[#allocation82_spill]] %s2767_s30  ;;  %v429_v54 = vadd.f32 %v2098_v15, %v369_v25  ;;  %v2104_v62 = vrot.slane %v458_v57, 9  ;;  %v480_v11 = vcombine.low %v476_v13, %v477_v27  ;;  %v498_v19 = vmul.f32 %v497_v30, %v2884_v1 }
  0xfe   : > { %s2774_s16 = sld [smem:[#allocation2 + $0x85]]  ;;  %v491_v2 = vcombine.low %v487_v18, %v488_v22  ;;  %v499_v28 = vmul.f32 %v497_v30, %v2888_v58  ;;  %v440_v29 = vadd.f32 %v2100_v14, %v378_v0  ;;  %v451_v3 = vadd.f32 %v2102_v56, %v387_v26 }
  0xff   : > { %s4056_s26 = sld [smem:[#allocation34_spill]]  ;;  %v508_v31 = vstv %s4052_s9  ;;  %v2106_v23 = vrot.slane %v469_v17, 10  ;;  %v462_v12 = vadd.f32 %v2104_v62, %v396_v59  ;;  %v2108_v25 = vrot.slane %v480_v11, 10 }
 0x100   : > { %s4057_s27 = sld [smem:[#allocation35_spill]]  ;;  %v519_v32 = vstv %s4053_s6  ;;  %v509_v60 = vmul.f32 %v508_v31, %v2884_v1  ;;  %v510_v21 = vmul.f32 %v508_v31, %v2888_v58  ;;  %v502_v7 = vcombine.low %v498_v19, %v499_v28 }
 0x101   : > { %s4058_s14 = sld [smem:[#allocation36_spill]]  ;;  %v537_v33 = vstv %s4054_s5  ;;  %v520_v55 = vmul.f32 %v519_v32, %v2884_v1  ;;  %v521_v6 = vmul.f32 %v519_v32, %v2888_v58  ;;  %v473_v1 = vadd.f32 %v2106_v23, %v407_v20 }
 0x102   : > { %s2780_s30 = sld [smem:[#allocation2 + $0x105]]  ;;  %v546_v34 = vstv %s4055_s15  ;;  %v513_v30 = vcombine.low %v509_v60, %v510_v21  ;;  %v538_v53 = vmul.f32 %v537_v33, %v2935_v61  ;;  %v539_v31 = vmul.f32 %v537_v33, %v2939_v16 }
 0x103   : > { %s4060_s25 = sld [smem:[#allocation38_spill]]  ;;  %v524_v8 = vcombine.low %v520_v55, %v521_v6  ;;  %v547_v24 = vmul.f32 %v546_v34, %v2935_v61  ;;  %v2110_v15 = vrot.slane %v491_v2, 10  ;;  %v548_v32 = vmul.f32 %v546_v34, %v2939_v16 }
 0x104   : > { %s4061_s24 = sld [smem:[#allocation39_spill]]  ;;  %v2112_v58 = vrot.slane %v502_v7, 10  ;;  %v2114_v57 = vrot.slane %v513_v30, 10  ;;  %v484_v0 = vadd.f32 %v2108_v25, %v418_v63  ;;  %v542_v34 = vcombine.low %v538_v53, %v539_v31 }
 0x105   : > { %s4062_s7 = sld [smem:[#allocation40_spill]]  ;;  %v555_v35 = vstv %s4056_s26  ;;  %v495_v26 = vadd.f32 %v2110_v15, %v429_v54  ;;  %v2116_v59 = vrot.slane %v524_v8, 10  ;;  %v551_v14 = vcombine.low %v547_v24, %v548_v32 }
 0x106   : > { %s4063_s23 = sld [smem:[#allocation41_spill]]  ;;  %v564_v36 = vstv %s4057_s27  ;;  %v556_v5 = vmul.f32 %v555_v35, %v2935_v61  ;;  %v557_v33 = vmul.f32 %v555_v35, %v2939_v16  ;;  %v506_v13 = vadd.f32 %v2112_v58, %v440_v29 }
 0x107   : > { %s2786_s13 = sld [smem:[#allocation2 + $0x185]]  ;;  %v573_v37 = vstv %s4058_s14  ;;  %v517_v20 = vadd.f32 %v2114_v57, %v451_v3  ;;  %v565_v56 = vmul.f32 %v564_v36, %v2935_v61  ;;  %v528_v27 = vadd.f32 %v2116_v59, %v462_v12 }
 0x108   : > { %4059 = sst [smem:[#allocation83_spill]] %s2780_s30  ;;  %v544_v17 = vadd.f32 %v542_v34, %v473_v1  ;;  %v560_v35 = vcombine.low %v556_v5, %v557_v33  ;;  %v566_v63 = vmul.f32 %v564_v36, %v2939_v16  ;;  %v574_v18 = vmul.f32 %v573_v37, %v2935_v61 }
 0x109   : > { %s4065_s17 = sld [smem:[#allocation43_spill]]  ;;  %v591_v39 = vstv %s4060_s25  ;;  %v575_v22 = vmul.f32 %v573_v37, %v2939_v16  ;;  %v583_v54 = vmul.f32 %v582_v38, %v2935_v61  ;;  %v584_v11 = vmul.f32 %v582_v38, %v2939_v16 }
 0x10a   : > { %s4066_s21 = sld [smem:[#allocation44_spill]]  ;;  %v602_v40 = vstv %s4061_s24  ;;  %v592_v62 = vmul.f32 %v591_v39, %v2935_v61  ;;  %v593_v36 = vmul.f32 %v591_v39, %v2939_v16  ;;  %v553_v2 = vadd.f32 %v551_v14, %v484_v0 }
 0x10b   : > { %s4067_s20 = sld [smem:[#allocation45_spill]]  ;;  %v613_v41 = vstv %s4062_s7  ;;  %v603_v19 = vmul.f32 %v602_v40, %v2935_v61  ;;  %v604_v37 = vmul.f32 %v602_v40, %v2939_v16  ;;  %v562_v28 = vadd.f32 %v560_v35, %v495_v26 }
 0x10c   : > { %s2792_s29 = sld [smem:[#allocation2 + $0x205]]  ;;  %v624_v42 = vstv %s4063_s23  ;;  %v614_v60 = vmul.f32 %v613_v41, %v2935_v61  ;;  %v615_v38 = vmul.f32 %v613_v41, %v2939_v16  ;;  %v569_v21 = vcombine.low %v565_v56, %v566_v63 }
 0x10d   : > { %4064 = sst [smem:[#allocation84_spill]] %s2786_s13  ;;  %v596_v39 = vcombine.low %v592_v62, %v593_v36  ;;  %v607_v29 = vcombine.low %v603_v19, %v604_v37  ;;  %v625_v3 = vmul.f32 %v624_v42, %v2935_v61  ;;  %v578_v40 = vcombine.low %v574_v18, %v575_v22 }
 0x10e   : > { %s4068_s30 = sld [smem:[#allocation46_spill]]  ;;  %v618_v55 = vcombine.low %v614_v60, %v615_v38  ;;  %v626_v6 = vmul.f32 %v624_v42, %v2939_v16  ;;  %v636_v23 = vmul.f32 %v635_v43, %v2935_v61  ;;  %v571_v41 = vadd.f32 %v569_v21, %v506_v13 }
 0x10f   : > { %s4069_s19 = sld [smem:[#allocation47_spill]]  ;;  %v646_v44 = vstv %s4065_s17  ;;  %v587_v7 = vcombine.low %v583_v54, %v584_v11  ;;  %v637_v30 = vmul.f32 %v635_v43, %v2939_v16  ;;  %v2124_v12 = vrot.slane %v596_v39, 9 }
 0x110   : > { %s4070_s10 = sld [smem:[#allocation48_spill]]  ;;  %v657_v45 = vstv %s4066_s21  ;;  %v647_v53 = vmul.f32 %v646_v44, %v2935_v61  ;;  %v629_v8 = vcombine.low %v625_v3, %v626_v6  ;;  %v648_v31 = vmul.f32 %v646_v44, %v2939_v16 }
 0x111   : > { %s4071_s8 = sld [smem:[#allocation49_spill]]  ;;  %v668_v46 = vstv %s4067_s20  ;;  %v658_v42 = vmul.f32 %v657_v45, %v2935_v61  ;;  %v580_v24 = vadd.f32 %v578_v40, %v517_v20  ;;  %v2126_v1 = vrot.slane %v607_v29, 9 }
 0x112   : > { %s2798_s22 = sld [smem:[#allocation2 + $0x285]]  ;;  %v640_v25 = vcombine.low %v636_v23, %v637_v30  ;;  %v659_v43 = vmul.f32 %v657_v45, %v2939_v16  ;;  %v589_v15 = vadd.f32 %v587_v7, %v528_v27  ;;  %v600_v32 = vadd.f32 %v2124_v12, %v544_v17  ;;  %v723_v27 = vpop.permute.xlu0 %722 }
 0x113   : > { %s4072_s13 = sld [smem:[#allocation50_spill]]  ;;  %v2128_v58 = vrot.slane %v618_v55, 9  ;;  %v669_v57 = vmul.f32 %v668_v46, %v2935_v61  ;;  %v611_v5 = vadd.f32 %v2126_v1, %v553_v2  ;;  %v651_v44 = vcombine.low %v647_v53, %v648_v31 }
 0x114   : > { %s4073_s9 = sld [smem:[#allocation51_spill]]  ;;  %v679_v47 = vstv %s4068_s30  ;;  %v670_v33 = vmul.f32 %v668_v46, %v2939_v16  ;;  %v2130_v26 = vrot.slane %v629_v8, 9  ;;  %v662_v59 = vcombine.low %v658_v42, %v659_v43  ;;  %v725_v46 = vpop.permute.xlu1 %724 }
 0x115   : > { %s2804_s15 = sld [smem:[#allocation2 + $0xe]]  ;;  %v690_v48 = vstv %s4069_s19  ;;  %v680_v0 = vmul.f32 %v679_v47, %v2935_v61  ;;  %v681_v45 = vmul.f32 %v679_v47, %v2939_v16  ;;  %v622_v13 = vadd.f32 %v2128_v58, %v562_v28 }
 0x116   : > { %s2810_s28 = sld [smem:[#allocation2 + $0x8e]]  ;;  %v701_v49 = vstv %s4070_s10  ;;  %v691_v34 = vmul.f32 %v690_v48, %v2935_v61  ;;  %v2132_v20 = vrot.slane %v640_v25, 9  ;;  %v673_v14 = vcombine.low %v669_v57, %v670_v33 }
 0x117   : > { %v712_v50 = vstv %s4071_s8  ;;  %s2816_s7 = sld [smem:[#allocation2 + $0x10e]]  ;;  %v692_v56 = vmul.f32 %v690_v48, %v2939_v16  ;;  %v633_v17 = vadd.f32 %v2130_v26, %v571_v41  ;;  %v684_v35 = vcombine.low %v680_v0, %v681_v45 }
 0x118   : > { %s2822_s21 = sld [smem:[#allocation2 + $0x18e]]  ;;  %v702_v63 = vmul.f32 %v701_v49, %v2935_v61  ;;  %v703_v47 = vmul.f32 %v701_v49, %v2939_v16  ;;  %v644_v18 = vadd.f32 %v2132_v20, %v580_v24  ;;  %v2134_v22 = vrot.slane %v651_v44, 9 }
 0x119   : > { %v730_v51 = vstv %s4072_s13  ;;  %s4083_s10 = sld [smem:[#allocation67_spill]]  ;;  %v695_v54 = vcombine.low %v691_v34, %v692_v56  ;;  %v713_v62 = vmul.f32 %v712_v50, %v2935_v61  ;;  %v2136_v48 = vrot.slane %v662_v59, 10 }
 0x11a   : > { %v739_v52 = vstv %s4073_s9  ;;  %s2829_s13 = sld [smem:[#allocation2 + $0x20e]]  ;;  %v706_v11 = vcombine.low %v702_v63, %v703_v47  ;;  %v714_v36 = vmul.f32 %v712_v50, %v2939_v16  ;;  %v3127_v19 = vsel %vm726_vm2, %v723_v27, %v725_v46 }
 0x11b   : > { %4076 = sst [smem:[#allocation85_spill]] %s2804_s15  ;;  %v655_v49 = vadd.f32 %v2134_v22, %v589_v15  ;;  %v2138_v37 = vrot.slane %v673_v14, 10  ;;  %v3131_v2 = vsel %vm726_vm2, %v725_v46, %v723_v27  ;;  %v731_v61 = vmul.f32 %v730_v51, %v3127_v19 }
 0x11c   : > { %s4086_s9 = sld [smem:[#allocation70_spill]]  ;;  %v666_v28 = vadd.f32 %v2136_v48, %v600_v32  ;;  %v2140_v60 = vrot.slane %v684_v35, 10  ;;  %v717_v50 = vcombine.low %v713_v62, %v714_v36  ;;  %v732_v16 = vmul.f32 %v730_v51, %v3131_v2 }
 0x11d   : > { %s4087_s6 = sld [smem:[#allocation10_spill]]  ;;  %v677_v38 = vadd.f32 %v2138_v37, %v611_v5  ;;  %v2142_v21 = vrot.slane %v695_v54, 10  ;;  %v740_v39 = vmul.f32 %v739_v52, %v3127_v19  ;;  %v741_v29 = vmul.f32 %v739_v52, %v3131_v2 }
 0x11e   : > { %s4088_s5 = sld [smem:[#allocation11_spill]]  ;;  %v2144_v3 = vrot.slane %v706_v11, 10  ;;  %v735_v40 = vcombine.low %v731_v61, %v732_v16  ;;  %v2146_v41 = vrot.slane %v717_v50, 10  ;;  %v688_v8 = vadd.f32 %v2140_v60, %v622_v13 }
 0x11f   : > { %s2835_s18 = sld [smem:[#allocation2 + $0x28e]]  ;;  %v744_v7 = vcombine.low %v740_v39, %v741_v29  ;;  %v699_v31 = vadd.f32 %v2142_v21, %v633_v17 }
 0x120   : > { %s4091_s25 = sld [smem:[#allocation13_spill]]  ;;  %v710_v43 = vadd.f32 %v2144_v3, %v644_v18  ;;  %v721_v15 = vadd.f32 %v2146_v41, %v655_v49  ;;  %v737_v44 = vadd.f32 %v735_v40, %v666_v28 }
 0x121   : > { %s4092_s1 = sld [smem:[#allocation71_spill]]  ;;  %v746_v34 = vadd.f32 %v744_v7, %v677_v38 }
 0x122   : > { %s4093_s27 = sld [smem:[#allocation72_spill]] }
 0x123   : > { %s2841_s12 = sld [smem:[#allocation2 + $0x17]] }
 0x124   : > { %s4095_s26 = sld [smem:[#allocation74_spill]] }
 0x125   : > { %4090 = sst [smem:[#allocation67_spill]] %s2835_s18 }
 0x126   : > { %s4096_s3 = sld [smem:[#allocation75_spill]] }
 0x127   : > { %s2847_s23 = sld [smem:[#allocation2 + $0x97]] }
 0x128   : > { %s4100_s2 = sld [smem:[#allocation79_spill]] }
 0x129   : > { %s4102_s20 = sld [smem:[#allocation81_spill]] }
 0x12a   : > { %s4103_s19 = sld [smem:[#allocation82_spill]] }
 0x12b   : > { %s4105_s30 = sld [smem:[#allocation84_spill]] }
 0x12c   : > { %s2862_s17 = sld [smem:[#allocation2 + $0x117]] }
 0x12d   : > { %s2868_s14 = sld [smem:[#allocation2 + $0x197]] }
 0x12e   : > { %s4144_s8 = sld [smem:[#allocation52_spill]] }
 0x12f   : > { %s4145_s15 = sld [smem:[#allocation53_spill]] }
 0x130   : > { %s4146_s24 = sld [smem:[#allocation54_spill]] }
 0x131   : > { %s4147_s18 = sld [smem:[#allocation55_spill]] }
 0x132   : > { %s4150_s11 = sld [smem:[#allocation56_spill]] }
 0x133   : > { %s4153_s0 = sld [smem:[#allocation57_spill]] }
 0x134   : > { %v4148_v55 = vstv %s4144_s8  ;;  %s4156_s4 = sld [smem:[#allocation58_spill]] }
 0x135   : > { %v749_v6 = vmul.f32 %v4148_v55, %v3127_v19  ;;  %v4149_v23 = vmov %v4148_v55  ;;  %v4151_v30 = vstv %s4145_s15  ;;  %s4159_s8 = sld [smem:[#allocation59_spill]] }
 0x136   : > { %v750_v51 = vmul.f32 %v4149_v23, %v3131_v2  ;;  %v758_v53 = vmul.f32 %v4151_v30, %v3127_v19  ;;  %v4152_v12 = vmov %v4151_v30  ;;  %v4154_v42 = vstv %s4146_s24  ;;  %s4162_s15 = sld [smem:[#allocation60_spill]] }
 0x137   : > { %v759_v52 = vmul.f32 %v4152_v12, %v3131_v2  ;;  %v767_v24 = vmul.f32 %v4154_v42, %v3127_v19  ;;  %v4155_v1 = vmov %v4154_v42  ;;  %v4157_v32 = vstv %s4147_s18  ;;  %s4165_s24 = sld [smem:[#allocation61_spill]] }
 0x138   : > { %v768_v25 = vmul.f32 %v4155_v1, %v3131_v2  ;;  %v776_v58 = vmul.f32 %v4157_v32, %v3127_v19  ;;  %v4158_v57 = vmov %v4157_v32  ;;  %v753_v33 = vcombine.low %v749_v6, %v750_v51  ;;  %s4168_s18 = sld [smem:[#allocation62_spill]] }
 0x139   : > { %v777_v5 = vmul.f32 %v4158_v57, %v3131_v2  ;;  %v4160_v0 = vstv %s4150_s11  ;;  %v762_v13 = vcombine.low %v758_v53, %v759_v52  ;;  %v4163_v20 = vstv %s4153_s0  ;;  %s4173_s11 = sld [smem:[#allocation63_spill]] }
 0x13a   : > { %v785_v26 = vmul.f32 %v4160_v0, %v3127_v19  ;;  %v4161_v59 = vmov %v4160_v0  ;;  %v796_v14 = vmul.f32 %v4163_v20, %v3127_v19  ;;  %v4164_v56 = vmov %v4163_v20  ;;  %s4176_s0 = sld [smem:[#allocation64_spill]] }
 0x13b   : > { %v786_v45 = vmul.f32 %v4161_v59, %v3131_v2  ;;  %v797_v46 = vmul.f32 %v4164_v56, %v3131_v2  ;;  %v771_v27 = vcombine.low %v767_v24, %v768_v25  ;;  %v4166_v35 = vstv %s4156_s4  ;;  %s4178_s4 = sld [smem:[#allocation65_spill]] }
 0x13c   : > { %v807_v63 = vmul.f32 %v4166_v35, %v3127_v19  ;;  %v4167_v47 = vmov %v4166_v35  ;;  %v780_v22 = vcombine.low %v776_v58, %v777_v5  ;;  %v4169_v62 = vstv %s4159_s8  ;;  %s4182_s8 = sld [smem:[#allocation66_spill]] }
 0x13d   : > { %v789_v17 = vcombine.low %v785_v26, %v786_v45  ;;  %v808_v18 = vmul.f32 %v4167_v47, %v3131_v2  ;;  %v800_v54 = vcombine.low %v796_v14, %v797_v46  ;;  %v818_v48 = vmul.f32 %v4169_v62, %v3127_v19  ;;  %v918_v45 = vpop.permute.xlu1 %917 }
 0x13e   : > { %v4170_v11 = vmov %v4169_v62  ;;  %v4171_v61 = vstv %s4162_s15  ;;  %v4174_v21 = vstv %s4165_s24  ;;  %v755_v40 = vadd.f32 %v753_v33, %v688_v8  ;;  %s3221_s15 = sld [smem:[#allocation2 + $0x217]] }
 0x13f   : > { %v819_v36 = vmul.f32 %v4170_v11, %v3131_v2  ;;  %v2154_v49 = vrot.slane %v789_v17, 9  ;;  %v811_v37 = vcombine.low %v807_v63, %v808_v18  ;;  %v829_v28 = vmul.f32 %v4171_v61, %v3127_v19  ;;  %s3229_s24 = sld [smem:[#allocation2 + $0x297]] }
 0x140   : > { %v4172_v60 = vmov %v4171_v61  ;;  %v2156_v16 = vrot.slane %v800_v54, 9  ;;  %v840_v39 = vmul.f32 %v4174_v21, %v3127_v19  ;;  %v4175_v29 = vmov %v4174_v21 }
 0x141   : > { %v830_v50 = vmul.f32 %v4172_v60, %v3131_v2  ;;  %v822_v38 = vcombine.low %v818_v48, %v819_v36  ;;  %v841_v3 = vmul.f32 %v4175_v29, %v3131_v2  ;;  %v764_v55 = vadd.f32 %v762_v13, %v699_v31 }
 0x142   : > { %v4177_v23 = vstv %s4168_s18  ;;  %v773_v41 = vadd.f32 %v771_v27, %v710_v43  ;;  %v2158_v7 = vrot.slane %v811_v37, 9  ;;  %v782_v52 = vadd.f32 %v780_v22, %v721_v15  ;;  %s4188_s18 = sld [smem:[#allocation68_spill]] }
 0x143   : > { %v833_v6 = vcombine.low %v829_v28, %v830_v50  ;;  %v851_v51 = vmul.f32 %v4177_v23, %v3127_v19  ;;  %v844_v30 = vcombine.low %v840_v39, %v841_v3  ;;  %v4179_v53 = vmov %v4177_v23 }
 0x144   : > { %v852_v12 = vmul.f32 %v4179_v53, %v3131_v2  ;;  %v2160_v42 = vrot.slane %v822_v38, 9  ;;  %v4180_v24 = vstv %s4173_s11  ;;  %v793_v25 = vadd.f32 %v2154_v49, %v737_v44  ;;  %v916_v44 = vpop.permute.xlu0 %915  ;;  %s4191_s11 = sld [smem:[#allocation69_spill]] }
 0x145   : > { %v862_v1 = vmul.f32 %v4180_v24, %v3127_v19  ;;  %v4181_v8 = vmov %v4180_v24  ;;  %v804_v32 = vadd.f32 %v2156_v16, %v746_v34  ;;  %v2162_v58 = vrot.slane %v833_v6, 9 }
 0x146   : > { %v863_v31 = vmul.f32 %v4181_v8, %v3131_v2  ;;  %v4183_v43 = vstv %s4176_s0  ;;  %v2164_v15 = vrot.slane %v844_v30, 9  ;;  %v855_v5 = vcombine.low %v851_v51, %v852_v12  ;;  %s3516_s0 = sld [smem:[#allocation2 + $0x198]] }
 0x147   : > { %v873_v57 = vmul.f32 %v4183_v43, %v3127_v19  ;;  %v4184_v33 = vmov %v4183_v43  ;;  %v4185_v26 = vstv %s4178_s4  ;;  %v815_v34 = vadd.f32 %v2158_v7, %v755_v40  ;;  %s3522_s4 = sld [smem:[#allocation2 + $0x218]] }
 0x148   : > { %v874_v0 = vmul.f32 %v4184_v33, %v3131_v2  ;;  %v884_v59 = vmul.f32 %v4185_v26, %v3127_v19  ;;  %v866_v13 = vcombine.low %v862_v1, %v863_v31  ;;  %v4186_v20 = vmov %v4185_v26 }
 0x149   : > { %v885_v14 = vmul.f32 %v4186_v20, %v3131_v2  ;;  %v4187_v56 = vstv %s4182_s8  ;;  %v826_v27 = vadd.f32 %v2160_v42, %v764_v55  ;;  %v4190_v47 = vstv %s4083_s10  ;;  %s4199_s10 = sld [smem:[#allocation12_spill]] }
 0x14a   : > { %v895_v46 = vmul.f32 %v4187_v56, %v3127_v19  ;;  %v877_v17 = vcombine.low %v873_v57, %v874_v0  ;;  %v4189_v35 = vmov %v4187_v56  ;;  %v906_v18 = vmul.f32 %v4190_v47, %v3127_v19  ;;  %s3553_s8 = sld [smem:[#allocation2 + $0x298]] }
 0x14b   : > { %v896_v63 = vmul.f32 %v4189_v35, %v3131_v2  ;;  %v837_v22 = vadd.f32 %v2162_v58, %v773_v41  ;;  %v888_v54 = vcombine.low %v884_v59, %v885_v14  ;;  %v4192_v62 = vmov %v4190_v47 }
 0x14c   : > { %v907_v48 = vmul.f32 %v4192_v62, %v3131_v2  ;;  %v3248_v11 = vsel %vm919_vm3, %v916_v44, %v918_v45  ;;  %v848_v36 = vadd.f32 %v2164_v15, %v782_v52  ;;  %v2166_v49 = vrot.slane %v855_v5, 10 }
 0x14d   : > { %v899_v37 = vcombine.low %v895_v46, %v896_v63  ;;  %v3252_v61 = vsel %vm919_vm3, %v918_v45, %v916_v44  ;;  %v2168_v19 = vrot.slane %v866_v13, 10  ;;  %v4193_v60 = vstv %s4188_s18  ;;  %s3574_s18 = sld [smem:[#allocation2 + $0x107]] }
 0x14e   : > { %v910_v28 = vcombine.low %v906_v18, %v907_v48  ;;  %v924_v2 = vmul.f32 %v4193_v60, %v3248_v11  ;;  %v4194_v50 = vmov %v4193_v60  ;;  %v859_v38 = vadd.f32 %v2166_v49, %v793_v25 }
 0x14f   : > { %v925_v16 = vmul.f32 %v4194_v50, %v3252_v61  ;;  %v2170_v21 = vrot.slane %v877_v17, 10  ;;  %v4195_v39 = vstv %s4191_s11  ;;  %v2172_v55 = vrot.slane %v888_v54, 10  ;;  %s3579_s11 = sld [smem:[#allocation2 + $0x187]] }
 0x150   : > { %v933_v29 = vmul.f32 %v4195_v39, %v3248_v11  ;;  %v4196_v3 = vmov %v4195_v39  ;;  %v2174_v6 = vrot.slane %v899_v37, 10  ;;  %v4197_v51 = vstv %s4086_s9  ;;  %s4201_s9 = sld [smem:[#allocation73_spill]] }
 0x151   : > { %v934_v40 = vmul.f32 %v4196_v3, %v3252_v61  ;;  %v928_v23 = vcombine.low %v924_v2, %v925_v16  ;;  %v942_v41 = vmul.f32 %v4197_v51, %v3248_v11  ;;  %v2176_v7 = vrot.slane %v910_v28, 10 }
 0x152   : > { %v4198_v30 = vmov %v4197_v51  ;;  %v1280_v12 = vstv %s3221_s15  ;;  %v1291_v52 = vstv %s3229_s24  ;;  %v870_v42 = vadd.f32 %v2168_v19, %v804_v32  ;;  %s3565_s15 = sld [smem:[#allocation2 + $0x7]] }
 0x153   : > { %v943_v53 = vmul.f32 %v4198_v30, %v3252_v61  ;;  %v881_v24 = vadd.f32 %v2170_v21, %v815_v34  ;;  %v892_v1 = vadd.f32 %v2172_v55, %v826_v27  ;;  %v903_v8 = vadd.f32 %v2174_v6, %v837_v22  ;;  %s3570_s24 = sld [smem:[#allocation2 + $0x87]] }
 0x154   : > { %v914_v31 = vadd.f32 %v2176_v7, %v848_v36  ;;  %v930_v25 = vadd.f32 %v928_v23, %v859_v38  ;;  %v937_v58 = vcombine.low %v933_v29, %v934_v40  ;;  %v4200_v43 = vstv %s4087_s6  ;;  %s4220_s6 = sld [smem:[#allocation78_spill]] }
 0x155   : > { %v951_v57 = vmul.f32 %v4200_v43, %v3248_v11  ;;  %v946_v15 = vcombine.low %v942_v41, %v943_v53  ;;  %v4202_v5 = vmov %v4200_v43  ;;  %v4203_v32 = vstv %s4091_s25  ;;  %s3429_s25 = sld [smem:[#allocation2 + $0x86]] }
 0x156   : > { %v952_v33 = vmul.f32 %v4202_v5, %v3252_v61  ;;  %v978_v0 = vmul.f32 %v4203_v32, %v3248_v11  ;;  %v4204_v26 = vmov %v4203_v32  ;;  %v4205_v45 = vstv %s4088_s5  ;;  %s4217_s5 = sld [smem:[#allocation77_spill]] }
 0x157   : > { %v979_v59 = vmul.f32 %v4204_v26, %v3252_v61  ;;  %v960_v44 = vmul.f32 %v4205_v45, %v3248_v11  ;;  %v4206_v34 = vmov %v4205_v45  ;;  %v4207_v20 = vstv %s4092_s1  ;;  %s4214_s1 = sld [smem:[#allocation76_spill]] }
 0x158   : > { %v961_v13 = vmul.f32 %v4206_v34, %v3252_v61  ;;  %v989_v14 = vmul.f32 %v4207_v20, %v3248_v11  ;;  %v4208_v56 = vmov %v4207_v20  ;;  %v4209_v27 = vstv %s4199_s10  ;;  %s3583_s10 = sld [smem:[#allocation2 + $0x207]] }
 0x159   : > { %v990_v46 = vmul.f32 %v4208_v56, %v3252_v61  ;;  %v969_v17 = vmul.f32 %v4209_v27, %v3248_v11  ;;  %v4210_v35 = vmov %v4209_v27  ;;  %v982_v47 = vcombine.low %v978_v0, %v979_v59 }
 0x15a   : > { %v970_v63 = vmul.f32 %v4210_v35, %v3252_v61  ;;  %v4211_v18 = vstv %s4093_s27  ;;  %v939_v54 = vadd.f32 %v937_v58, %v870_v42  ;;  %v4213_v49 = vstv %s4201_s9  ;;  %s3463_s27 = sld [smem:[#allocation2 + $0xf]] }
 0x15b   : > { %v1000_v22 = vmul.f32 %v4211_v18, %v3248_v11  ;;  %v993_v62 = vcombine.low %v989_v14, %v990_v46  ;;  %v4212_v48 = vmov %v4211_v18  ;;  %v1011_v37 = vmul.f32 %v4213_v49, %v3248_v11  ;;  %s3587_s9 = sld [smem:[#allocation2 + $0x287]] }
 0x15c   : > { %v1001_v36 = vmul.f32 %v4212_v48, %v3252_v61  ;;  %v948_v19 = vadd.f32 %v946_v15, %v881_v24  ;;  %v955_v28 = vcombine.low %v951_v57, %v952_v33  ;;  %v4215_v60 = vmov %v4213_v49 }
 0x15d   : > { %v1012_v2 = vmul.f32 %v4215_v60, %v3252_v61  ;;  %v4216_v50 = vstv %s4095_s26  ;;  %v964_v38 = vcombine.low %v960_v44, %v961_v13  ;;  %v4219_v3 = vstv %s4096_s3  ;;  %s4226_s3 = sld [smem:[#allocation80_spill]] }
 0x15e   : > { %v1022_v16 = vmul.f32 %v4216_v50, %v3248_v11  ;;  %v1004_v21 = vcombine.low %v1000_v22, %v1001_v36  ;;  %v4218_v39 = vmov %v4216_v50  ;;  %v1033_v40 = vmul.f32 %v4219_v3, %v3248_v11  ;;  %s3445_s26 = sld [smem:[#allocation2 + $0x186]] }
 0x15f   : > { %v1023_v29 = vmul.f32 %v4218_v39, %v3252_v61  ;;  %v973_v55 = vcombine.low %v969_v17, %v970_v63  ;;  %v2184_v6 = vrot.slane %v982_v47, 9  ;;  %v1015_v23 = vcombine.low %v1011_v37, %v1012_v2  ;;  %v1111_v63 = vpop.permute.xlu1 %1110  ;;  %v1109_v47 = vpop.permute.xlu0 %1108 }
 0x160   : > { %v4221_v51 = vmov %v4219_v3  ;;  %v2186_v7 = vrot.slane %v993_v62, 9  ;;  %v4222_v53 = vstv %s4214_s1  ;;  %v957_v43 = vadd.f32 %v955_v28, %v892_v1  ;;  %s3591_s1 = sld [smem:[#allocation2 + $0x10]] }
 0x161   : > { %v1034_v41 = vmul.f32 %v4221_v51, %v3252_v61  ;;  %v1026_v30 = vcombine.low %v1022_v16, %v1023_v29  ;;  %v1044_v42 = vmul.f32 %v4222_v53, %v3248_v11  ;;  %v4223_v24 = vmov %v4222_v53 }
 0x162   : > { %v1045_v58 = vmul.f32 %v4223_v24, %v3252_v61  ;;  %v2188_v57 = vrot.slane %v1004_v21, 9  ;;  %v4224_v15 = vstv %s4217_s5  ;;  %v966_v0 = vadd.f32 %v964_v38, %v903_v8  ;;  %s3597_s5 = sld [smem:[#allocation2 + $0x90]] }
 0x163   : > { %v1055_v5 = vmul.f32 %v4224_v15, %v3248_v11  ;;  %v4225_v33 = vmov %v4224_v15  ;;  %v2190_v26 = vrot.slane %v1015_v23, 9  ;;  %v1037_v59 = vcombine.low %v1033_v40, %v1034_v41 }
 0x164   : > { %v1056_v32 = vmul.f32 %v4225_v33, %v3252_v61  ;;  %v4227_v45 = vstv %s4220_s6  ;;  %v975_v34 = vadd.f32 %v973_v55, %v914_v31  ;;  %v986_v13 = vadd.f32 %v2184_v6, %v930_v25  ;;  %s3600_s6 = sld [smem:[#allocation2 + $0x110]] }
 0x165   : > { %v1066_v44 = vmul.f32 %v4227_v45, %v3248_v11  ;;  %v2192_v20 = vrot.slane %v1026_v30, 9  ;;  %v4228_v1 = vmov %v4227_v45  ;;  %v997_v56 = vadd.f32 %v2186_v7, %v939_v54 }
 0x166   : > { %v1067_v14 = vmul.f32 %v4228_v1, %v3252_v61  ;;  %v1048_v46 = vcombine.low %v1044_v42, %v1045_v58  ;;  %v4229_v27 = vstv %s4100_s2  ;;  %v1008_v31 = vadd.f32 %v2188_v57, %v948_v19  ;;  %s4236_s2 = sld [smem:[#allocation83_spill]] }
 0x167   : > { %v1077_v8 = vmul.f32 %v4229_v27, %v3248_v11  ;;  %v4230_v17 = vmov %v4229_v27  ;;  %v1059_v18 = vcombine.low %v1055_v5, %v1056_v32  ;;  %v4231_v22 = vstv %s4226_s3  ;;  %s3605_s3 = sld [smem:[#allocation2 + $0x190]] }
 0x168   : > { %v1078_v35 = vmul.f32 %v4230_v17, %v3252_v61  ;;  %v1070_v25 = vcombine.low %v1066_v44, %v1067_v14  ;;  %v1088_v62 = vmul.f32 %v4231_v22, %v3248_v11  ;;  %v1019_v48 = vadd.f32 %v2190_v26, %v957_v43 }
 0x169   : > { %v2194_v54 = vrot.slane %v1037_v59, 9  ;;  %v4232_v36 = vmov %v4231_v22  ;;  %v4233_v37 = vstv %s4102_s20  ;;  %v1030_v60 = vadd.f32 %v2192_v20, %v966_v0  ;;  %s4240_s20 = sld [smem:[#allocation85_spill]] }
 0x16a   : > { %v1089_v49 = vmul.f32 %v4232_v36, %v3252_v61  ;;  %v1099_v28 = vmul.f32 %v4233_v37, %v3248_v11  ;;  %v1081_v2 = vcombine.low %v1077_v8, %v1078_v35  ;;  %v4234_v19 = vmov %v4233_v37 }
 0x16b   : > { %v1100_v50 = vmul.f32 %v4234_v19, %v3252_v61  ;;  %v3367_v16 = vsel %vm1112_vm4, %v1109_v47, %v1111_v63  ;;  %v2196_v38 = vrot.slane %v1048_v46, 10  ;;  %v3371_v39 = vsel %vm1112_vm4, %v1111_v63, %v1109_v47 }
 0x16c   : > { %v1092_v21 = vcombine.low %v1088_v62, %v1089_v49  ;;  %v4235_v29 = vstv %s4103_s19  ;;  %v2198_v3 = vrot.slane %v1059_v18, 10  ;;  %v2200_v40 = vrot.slane %v1070_v25, 10  ;;  %s3421_s19 = sld [smem:[#allocation2 + $0x6]] }
 0x16d   : > { %v1117_v11 = vmul.f32 %v4235_v29, %v3367_v16  ;;  %v1103_v55 = vcombine.low %v1099_v28, %v1100_v50  ;;  %v4237_v61 = vmov %v4235_v29  ;;  %v1041_v23 = vadd.f32 %v2194_v54, %v975_v34 }
 0x16e   : > { %v1118_v6 = vmul.f32 %v4237_v61, %v3371_v39  ;;  %v1052_v51 = vadd.f32 %v2196_v38, %v986_v13  ;;  %v4238_v41 = vstv %s2774_s16  ;;  %v1063_v42 = vadd.f32 %v2198_v3, %v997_v56  ;;  %s3508_s16 = sld [smem:[#allocation2 + $0x98]] }
 0x16f   : > { %v1126_v7 = vmul.f32 %v4238_v41, %v3367_v16  ;;  %v4239_v30 = vmov %v4238_v41  ;;  %v1074_v24 = vadd.f32 %v2200_v40, %v1008_v31  ;;  %v2202_v58 = vrot.slane %v1081_v2, 10 }
 0x170   : > { %v1127_v53 = vmul.f32 %v4239_v30, %v3371_v39  ;;  %v2204_v43 = vrot.slane %v1092_v21, 10  ;;  %v2206_v57 = vrot.slane %v1103_v55, 10  ;;  %v1121_v15 = vcombine.low %v1117_v11, %v1118_v6 }
 0x171   : > { %v4241_v5 = vstv %s4236_s2  ;;  %v1085_v26 = vadd.f32 %v2202_v58, %v1019_v48  ;;  %v4243_v45 = vstv %s4105_s30  ;;  %v4245_v14 = vstv %s2792_s29  ;;  %s3471_s29 = sld [smem:[#allocation2 + $0x8f]] }
 0x172   : > { %v1135_v33 = vmul.f32 %v4241_v5, %v3367_v16  ;;  %v4242_v32 = vmov %v4241_v5  ;;  %v1096_v59 = vadd.f32 %v2204_v43, %v1030_v60  ;;  %v1144_v44 = vmul.f32 %v4243_v45, %v3367_v16  ;;  %s3492_s30 = sld [smem:[#allocation2 + $0x20f]] }
 0x173   : > { %v1136_v0 = vmul.f32 %v4242_v32, %v3371_v39  ;;  %v4244_v34 = vmov %v4243_v45  ;;  %v1107_v20 = vadd.f32 %v2206_v57, %v1041_v23  ;;  %v1130_v1 = vcombine.low %v1126_v7, %v1127_v53  ;;  %s3608_s2 = sld [smem:[#allocation2 + $0x210]] }
 0x174   : > { %v1145_v13 = vmul.f32 %v4244_v34, %v3371_v39  ;;  %v1153_v56 = vmul.f32 %v4245_v14, %v3367_v16  ;;  %v4246_v46 = vmov %v4245_v14  ;;  %v4247_v8 = vstv %s2798_s22  ;;  %s4254_s22 = sld [smem:[#allocation67_spill]] }
 0x175   : > { %v1154_v27 = vmul.f32 %v4246_v46, %v3371_v39  ;;  %v1162_v17 = vmul.f32 %v4247_v8, %v3367_v16  ;;  %v4248_v35 = vmov %v4247_v8  ;;  %v4249_v47 = vstv %s4240_s20  ;;  %s3613_s20 = sld [smem:[#allocation2 + $0x290]] }
 0x176   : > { %v1163_v63 = vmul.f32 %v4248_v35, %v3371_v39  ;;  %v1171_v31 = vmul.f32 %v4249_v47, %v3367_v16  ;;  %v4250_v18 = vmov %v4249_v47  ;;  %v1123_v22 = vadd.f32 %v1121_v15, %v1052_v51 }
 0x177   : > { %v1172_v25 = vmul.f32 %v4250_v18, %v3371_v39  ;;  %v1139_v62 = vcombine.low %v1135_v33, %v1136_v0  ;;  %v4251_v48 = vstv %s2810_s28  ;;  %v1148_v37 = vcombine.low %v1144_v44, %v1145_v13  ;;  %s3437_s28 = sld [smem:[#allocation2 + $0x106]] }
 0x178   : > { %v1182_v54 = vmul.f32 %v4251_v48, %v3367_v16  ;;  %v4252_v36 = vmov %v4251_v48  ;;  %v4253_v60 = vstv %s2816_s7  ;;  %v1132_v38 = vadd.f32 %v1130_v1, %v1063_v42  ;;  %s3500_s7 = sld [smem:[#allocation2 + $0x28f]] }
 0x179   : > { %v1183_v49 = vmul.f32 %v4252_v36, %v3371_v39  ;;  %v1175_v28 = vcombine.low %v1171_v31, %v1172_v25  ;;  %v1193_v2 = vmul.f32 %v4253_v60, %v3367_v16  ;;  %v4255_v19 = vmov %v4253_v60 }
 0x17a   : > { %v1194_v50 = vmul.f32 %v4255_v19, %v3371_v39  ;;  %v1157_v21 = vcombine.low %v1153_v56, %v1154_v27  ;;  %v4256_v29 = vstv %s2822_s21  ;;  %v1166_v55 = vcombine.low %v1162_v17, %v1163_v63  ;;  %s3453_s21 = sld [smem:[#allocation2 + $0x206]] }
 0x17b   : > { %v1204_v11 = vmul.f32 %v4256_v29, %v3367_v16  ;;  %v4257_v3 = vmov %v4256_v29  ;;  %v1186_v61 = vcombine.low %v1182_v54, %v1183_v49  ;;  %v4258_v6 = vstv %s2829_s13  ;;  %s3458_s13 = sld [smem:[#allocation2 + $0x286]] }
 0x17c   : > { %v1205_v40 = vmul.f32 %v4257_v3, %v3371_v39  ;;  %v1215_v23 = vmul.f32 %v4258_v6, %v3367_v16  ;;  %v4259_v51 = vmov %v4258_v6  ;;  %v2214_v7 = vrot.slane %v1175_v28, 9 }
 0x17d   : > { %v1216_v41 = vmul.f32 %v4259_v51, %v3371_v39  ;;  %v1197_v30 = vcombine.low %v1193_v2, %v1194_v50  ;;  %v4260_v53 = vstv %s4254_s22  ;;  %v1141_v57 = vadd.f32 %v1139_v62, %v1074_v24  ;;  %s3620_s22 = sld [smem:[#allocation2 + $0x99]] }
 0x17e   : > { %v1226_v42 = vmul.f32 %v4260_v53, %v3367_v16  ;;  %v4261_v58 = vmov %v4260_v53  ;;  %v1150_v15 = vadd.f32 %v1148_v37, %v1085_v26  ;;  %v1208_v5 = vcombine.low %v1204_v11, %v1205_v40  ;;  %v1304_v53 = vpop.permute.xlu1 %1303 }
 0x17f   : > { %v1227_v43 = vmul.f32 %v4261_v58, %v3371_v39  ;;  %v4262_v33 = vstv %s2841_s12  ;;  %v1159_v0 = vadd.f32 %v1157_v21, %v1096_v59  ;;  %v1219_v45 = vcombine.low %v1215_v23, %v1216_v41  ;;  %s3476_s12 = sld [smem:[#allocation2 + $0x10f]] }
 0x180   : > { %v1237_v32 = vmul.f32 %v4262_v33, %v3367_v16  ;;  %v4263_v34 = vmov %v4262_v33  ;;  %v1168_v1 = vadd.f32 %v1166_v55, %v1107_v20  ;;  %v2216_v24 = vrot.slane %v1186_v61, 9 }
 0x181   : > { %v1230_v44 = vcombine.low %v1226_v42, %v1227_v43  ;;  %v1238_v13 = vmul.f32 %v4263_v34, %v3371_v39  ;;  %v4264_v26 = vstv %s2847_s23  ;;  %v1179_v59 = vadd.f32 %v2214_v7, %v1123_v22  ;;  %s3484_s23 = sld [smem:[#allocation2 + $0x18f]]  ;;  %v1302_v43 = vpop.permute.xlu0 %1301 }
 0x182   : > { %v1248_v14 = vmul.f32 %v4264_v26, %v3367_v16  ;;  %v4265_v56 = vmov %v4264_v26  ;;  %v2218_v27 = vrot.slane %v1197_v30, 9  ;;  %v4266_v17 = vstv %s2862_s17  ;;  %s3512_s17 = sld [smem:[#allocation2 + $0x118]] }
 0x183   : > { %v1249_v46 = vmul.f32 %v4265_v56, %v3371_v39  ;;  %v1241_v8 = vcombine.low %v1237_v32, %v1238_v13  ;;  %v1259_v35 = vmul.f32 %v4266_v17, %v3367_v16  ;;  %v2220_v20 = vrot.slane %v1208_v5, 9 }
 0x184   : > { %v4267_v47 = vmov %v4266_v17  ;;  %v4268_v18 = vstv %s2868_s14  ;;  %v2222_v22 = vrot.slane %v1219_v45, 9  ;;  %v2224_v62 = vrot.slane %v1230_v44, 9  ;;  %s3506_s14 = sld [smem:[#allocation2 + $0x18]] }
 0x185   : > { %v1252_v63 = vcombine.low %v1248_v14, %v1249_v46  ;;  %v1260_v31 = vmul.f32 %v4267_v47, %v3371_v39  ;;  %v1270_v25 = vmul.f32 %v4268_v18, %v3367_v16  ;;  %v4269_v48 = vmov %v4268_v18 }
 0x186   : > { %v1271_v54 = vmul.f32 %v4269_v48, %v3371_v39  ;;  %v1281_v36 = vmul.f32 %v1280_v12, %v3367_v16  ;;  %v1190_v49 = vadd.f32 %v2216_v24, %v1132_v38  ;;  %v1282_v28 = vmul.f32 %v1280_v12, %v3371_v39 }
 0x187   : > { %v1263_v37 = vcombine.low %v1259_v35, %v1260_v31  ;;  %v1292_v60 = vmul.f32 %v1291_v52, %v3367_v16  ;;  %v2226_v2 = vrot.slane %v1241_v8, 10  ;;  %v1293_v50 = vmul.f32 %v1291_v52, %v3371_v39 }
 0x188   : > { %v1274_v19 = vcombine.low %v1270_v25, %v1271_v54  ;;  %v1201_v38 = vadd.f32 %v2218_v27, %v1141_v57  ;;  %v1212_v21 = vadd.f32 %v2220_v20, %v1150_v15  ;;  %v2228_v12 = vrot.slane %v1252_v63, 10 }
 0x189   : > { %v1285_v29 = vcombine.low %v1281_v36, %v1282_v28  ;;  %v1223_v16 = vadd.f32 %v2222_v22, %v1159_v0  ;;  %v1234_v11 = vadd.f32 %v2224_v62, %v1168_v1  ;;  %v1245_v3 = vadd.f32 %v2226_v2, %v1179_v59 }
 0x18a   : > { %v1296_v40 = vcombine.low %v1292_v60, %v1293_v50  ;;  %v1256_v55 = vadd.f32 %v2228_v12, %v1190_v49  ;;  %v2230_v52 = vrot.slane %v1263_v37, 10  ;;  %v1309_v39 = vstv %s3421_s19  ;;  %s3618_s19 = sld [smem:[#allocation2 + $0x19]] }
 0x18b   : > { %v1318_v61 = vstv %s3429_s25  ;;  %v2232_v6 = vrot.slane %v1274_v19, 10  ;;  %v2234_v23 = vrot.slane %v1285_v29, 10  ;;  %v1327_v51 = vstv %s3437_s28  ;;  %s3623_s25 = sld [smem:[#allocation2 + $0x119]] }
 0x18c   : > { %v1336_v41 = vstv %s3445_s26  ;;  %v3518_v7 = vadd.f32 %v2230_v52, %v1201_v38  ;;  %v2236_v30 = vrot.slane %v1296_v40, 10  ;;  %v1345_v42 = vstv %s3453_s21  ;;  %s3627_s28 = sld [smem:[#allocation2 + $0x199]] }
 0x18d   : > { %v1354_v58 = vstv %s3458_s13  ;;  %v3524_v57 = vadd.f32 %v2232_v6, %v1212_v21  ;;  %v3526_v15 = vadd.f32 %v2234_v23, %v1223_v16  ;;  %v1363_v5 = vstv %s3463_s27  ;;  %s3633_s26 = sld [smem:[#allocation2 + $0x219]] }
 0x18e   : > { %v1374_v33 = vstv %s3471_s29  ;;  %v3530_v32 = vadd.f32 %v2236_v30, %v1234_v11  ;;  %v1385_v0 = vstv %s3476_s12  ;;  %v1396_v45 = vstv %s3484_s23  ;;  %s3660_s21 = sld [smem:[#allocation2 + $0x299]] }
 0x18f   : > { %v1407_v44 = vstv %s3492_s30  ;;  %v1418_v34 = vstv %s3500_s7  ;;  %v1429_v13 = vstv %s3506_s14  ;;  %v3539_v1 = vsel %vm1305_vm5, %v1302_v43, %v1304_v53  ;;  %s3668_s13 = sld [smem:[#allocation2 + $0x8]] }
 0x190   : > { %v3543_v24 = vsel %vm1305_vm5, %v1304_v53, %v1302_v43  ;;  %v1310_v26 = vmul.f32 %v1309_v39, %v3539_v1  ;;  %v1319_v56 = vmul.f32 %v1318_v61, %v3539_v1  ;;  %v1328_v59 = vmul.f32 %v1327_v51, %v3539_v1  ;;  %s3674_s27 = sld [smem:[#allocation2 + $0x88]] }
 0x191   : > { %v1311_v14 = vmul.f32 %v1309_v39, %v3543_v24  ;;  %v1320_v46 = vmul.f32 %v1318_v61, %v3543_v24  ;;  %v1329_v27 = vmul.f32 %v1327_v51, %v3543_v24  ;;  %v1337_v8 = vmul.f32 %v1336_v41, %v3539_v1  ;;  %s3679_s29 = sld [smem:[#allocation2 + $0x108]] }
 0x192   : > { %v1338_v17 = vmul.f32 %v1336_v41, %v3543_v24  ;;  %v1346_v63 = vmul.f32 %v1345_v42, %v3539_v1  ;;  %v1347_v47 = vmul.f32 %v1345_v42, %v3543_v24  ;;  %v1440_v31 = vstv %s3508_s16  ;;  %s3682_s12 = sld [smem:[#allocation2 + $0x188]] }
 0x193   : > { %v1314_v35 = vcombine.low %v1310_v26, %v1311_v14  ;;  %v1323_v20 = vcombine.low %v1319_v56, %v1320_v46  ;;  %v1451_v18 = vstv %s3512_s17  ;;  %v1355_v25 = vmul.f32 %v1354_v58, %v3539_v1  ;;  %s3687_s23 = sld [smem:[#allocation2 + $0x208]] }
 0x194   : > { %v1356_v22 = vmul.f32 %v1354_v58, %v3543_v24  ;;  %v1462_v62 = vstv %s3516_s0  ;;  %v1473_v48 = vstv %s3522_s4  ;;  %v1332_v54 = vcombine.low %v1328_v59, %v1329_v27  ;;  %s3691_s30 = sld [smem:[#allocation2 + $0x288]] }
 0x195   : > { %v1364_v36 = vmul.f32 %v1363_v5, %v3539_v1  ;;  %v1316_v49 = vadd.f32 %v1314_v35, %v1245_v3  ;;  %v1325_v37 = vadd.f32 %v1323_v20, %v1256_v55  ;;  %v1341_v28 = vcombine.low %v1337_v8, %v1338_v17  ;;  %s3696_s7 = sld [smem:[#allocation2 + $0x11]] }
 0x196   : > { %v1365_v60 = vmul.f32 %v1363_v5, %v3543_v24  ;;  %v1350_v2 = vcombine.low %v1346_v63, %v1347_v47  ;;  %v1375_v19 = vmul.f32 %v1374_v33, %v3539_v1  ;;  %v1376_v50 = vmul.f32 %v1374_v33, %v3543_v24  ;;  %s3700_s14 = sld [smem:[#allocation2 + $0x91]] }
 0x197   : > { %v1386_v38 = vmul.f32 %v1385_v0, %v3539_v1  ;;  %v1359_v21 = vcombine.low %v1355_v25, %v1356_v22  ;;  %v1387_v29 = vmul.f32 %v1385_v0, %v3543_v24  ;;  %v1397_v16 = vmul.f32 %v1396_v45, %v3539_v1  ;;  %s3704_s16 = sld [smem:[#allocation2 + $0x111]] }
 0x198   : > { %v1368_v12 = vcombine.low %v1364_v36, %v1365_v60  ;;  %v1379_v11 = vcombine.low %v1375_v19, %v1376_v50  ;;  %v1398_v3 = vmul.f32 %v1396_v45, %v3543_v24  ;;  %v1408_v40 = vmul.f32 %v1407_v44, %v3539_v1  ;;  %s3708_s17 = sld [smem:[#allocation2 + $0x191]] }
 0x199   : > { %v1409_v55 = vmul.f32 %v1407_v44, %v3543_v24  ;;  %v1390_v39 = vcombine.low %v1386_v38, %v1387_v29  ;;  %v1419_v61 = vmul.f32 %v1418_v34, %v3539_v1  ;;  %v1420_v6 = vmul.f32 %v1418_v34, %v3543_v24  ;;  %s3714_s0 = sld [smem:[#allocation2 + $0x211]] }
 0x19a   : > { %v2244_v52 = vrot.slane %v1368_v12, 9  ;;  %v1484_v23 = vstv %s3553_s8  ;;  %v2246_v51 = vrot.slane %v1379_v11, 9  ;;  %v1401_v41 = vcombine.low %v1397_v16, %v1398_v3  ;;  %v1497_v12 = vpop.permute.xlu1 %1496  ;;  %v1495_v11 = vpop.permute.xlu0 %1494  ;;  %s3717_s4 = sld [smem:[#allocation2 + $0x291]] }
 0x19b   : > { %v1430_v30 = vmul.f32 %v1429_v13, %v3539_v1  ;;  %v1334_v53 = vadd.f32 %v1332_v54, %v3518_v7  ;;  %v1412_v42 = vcombine.low %v1408_v40, %v1409_v55  ;;  %v1423_v58 = vcombine.low %v1419_v61, %v1420_v6  ;;  %s3721_s8 = sld [smem:[#allocation2 + $0x1a]] }
 0x19c   : > { %v1431_v43 = vmul.f32 %v1429_v13, %v3543_v24  ;;  %v1343_v5 = vadd.f32 %v1341_v28, %v3524_v57  ;;  %v1352_v33 = vadd.f32 %v1350_v2, %v3526_v15  ;;  %v1361_v0 = vadd.f32 %v1359_v21, %v3530_v32 }
 0x19d   : > { %v1441_v45 = vmul.f32 %v1440_v31, %v3539_v1  ;;  %v1372_v44 = vadd.f32 %v2244_v52, %v1316_v49  ;;  %v1383_v34 = vadd.f32 %v2246_v51, %v1325_v37  ;;  %v2248_v26 = vrot.slane %v1390_v39, 9 }
 0x19e   : > { %v1442_v7 = vmul.f32 %v1440_v31, %v3543_v24  ;;  %v2250_v13 = vrot.slane %v1401_v41, 9  ;;  %v1434_v14 = vcombine.low %v1430_v30, %v1431_v43  ;;  %v1452_v56 = vmul.f32 %v1451_v18, %v3539_v1 }
 0x19f   : > { %v1453_v57 = vmul.f32 %v1451_v18, %v3543_v24  ;;  %v2252_v15 = vrot.slane %v1412_v42, 9  ;;  %v2254_v32 = vrot.slane %v1423_v58, 9  ;;  %v1463_v59 = vmul.f32 %v1462_v62, %v3539_v1 }
 0x1a0   : > { %v1445_v46 = vcombine.low %v1441_v45, %v1442_v7  ;;  %v1464_v8 = vmul.f32 %v1462_v62, %v3543_v24  ;;  %v1474_v17 = vmul.f32 %v1473_v48, %v3539_v1  ;;  %v1475_v35 = vmul.f32 %v1473_v48, %v3543_v24 }
 0x1a1   : > { %v1456_v27 = vcombine.low %v1452_v56, %v1453_v57  ;;  %v1394_v20 = vadd.f32 %v2248_v26, %v1334_v53  ;;  %v1485_v63 = vmul.f32 %v1484_v23, %v3539_v1  ;;  %v1486_v47 = vmul.f32 %v1484_v23, %v3543_v24 }
 0x1a2   : > { %v1502_v31 = vstv %s3565_s15  ;;  %v2256_v18 = vrot.slane %v1434_v14, 10  ;;  %v2258_v25 = vrot.slane %v1445_v46, 10  ;;  %v1467_v22 = vcombine.low %v1463_v59, %v1464_v8  ;;  %s3724_s15 = sld [smem:[#allocation2 + $0x9a]] }
 0x1a3   : > { %v1478_v62 = vcombine.low %v1474_v17, %v1475_v35  ;;  %v1405_v54 = vadd.f32 %v2250_v13, %v1343_v5  ;;  %v1416_v36 = vadd.f32 %v2252_v15, %v1352_v33  ;;  %v1427_v48 = vadd.f32 %v2254_v32, %v1361_v0 }
 0x1a4   : > { %v1489_v49 = vcombine.low %v1485_v63, %v1486_v47  ;;  %v1438_v1 = vadd.f32 %v2256_v18, %v1372_v44  ;;  %v1449_v37 = vadd.f32 %v2258_v25, %v1383_v34  ;;  %v2260_v24 = vrot.slane %v1456_v27, 10 }
 0x1a5   : > { %v1511_v28 = vstv %s3570_s24  ;;  %v2262_v60 = vrot.slane %v1467_v22, 10  ;;  %v2264_v2 = vrot.slane %v1478_v62, 10  ;;  %v1520_v19 = vstv %s3574_s18  ;;  %s3729_s24 = sld [smem:[#allocation2 + $0x11a]] }
 0x1a6   : > { %v1529_v50 = vstv %s3579_s11  ;;  %v3629_v38 = vadd.f32 %v2260_v24, %v1394_v20  ;;  %v2266_v21 = vrot.slane %v1489_v49, 10  ;;  %v1538_v29 = vstv %s3583_s10  ;;  %s3734_s18 = sld [smem:[#allocation2 + $0x19a]] }
 0x1a7   : > { %v1547_v16 = vstv %s3587_s9  ;;  %v3635_v3 = vadd.f32 %v2262_v60, %v1405_v54  ;;  %v3637_v40 = vadd.f32 %v2264_v2, %v1416_v36  ;;  %v1556_v55 = vstv %s3591_s1  ;;  %s3736_s11 = sld [smem:[#allocation2 + $0x21a]] }
 0x1a8   : > { %v1567_v52 = vstv %s3597_s5  ;;  %v3641_v39 = vadd.f32 %v2266_v21, %v1427_v48  ;;  %v1578_v61 = vstv %s3600_s6  ;;  %v1589_v6 = vstv %s3605_s3  ;;  %s3748_s10 = sld [smem:[#allocation2 + $0x29a]] }
 0x1a9   : > { %v1600_v23 = vstv %s3608_s2  ;;  %v1611_v51 = vstv %s3613_s20  ;;  %v1622_v41 = vstv %s3618_s19  ;;  %v3650_v30 = vsel %vm1498_vm6, %v1495_v11, %v1497_v12  ;;  %s4270_s9 = sld [smem:[#allocation9_spill]] }
 0x1aa   : > { %v3654_v53 = vsel %vm1498_vm6, %v1497_v12, %v1495_v11  ;;  %v1503_v42 = vmul.f32 %v1502_v31, %v3650_v30  ;;  %v1512_v43 = vmul.f32 %v1511_v28, %v3650_v30  ;;  %v1521_v33 = vmul.f32 %v1520_v19, %v3650_v30  ;;  %s4271_s3 = sld [smem:[#allocation89_spill]] }
 0x1ab   : > { %v1504_v58 = vmul.f32 %v1502_v31, %v3654_v53  ;;  %v1513_v5 = vmul.f32 %v1511_v28, %v3654_v53  ;;  %v1522_v0 = vmul.f32 %v1520_v19, %v3654_v53  ;;  %v1530_v45 = vmul.f32 %v1529_v50, %v3650_v30 }
 0x1ac   : > { %v1531_v44 = vmul.f32 %v1529_v50, %v3654_v53  ;;  %v1539_v7 = vmul.f32 %v1538_v29, %v3650_v30  ;;  %v1540_v13 = vmul.f32 %v1538_v29, %v3654_v53  ;;  %v1633_v14 = vstv %s3620_s22 }
 0x1ad   : > { %v1507_v34 = vcombine.low %v1503_v42, %v1504_v58  ;;  %v1516_v26 = vcombine.low %v1512_v43, %v1513_v5  ;;  %v1644_v56 = vstv %s3623_s25  ;;  %v1548_v57 = vmul.f32 %v1547_v16, %v3650_v30 }
 0x1ae   : > { %v1549_v15 = vmul.f32 %v1547_v16, %v3654_v53  ;;  %v1655_v32 = vstv %s3627_s28  ;;  %v1666_v46 = vstv %s3633_s26  ;;  %v1525_v59 = vcombine.low %v1521_v33, %v1522_v0 }
 0x1af   : > { %v1557_v27 = vmul.f32 %v1556_v55, %v3650_v30  ;;  %v1509_v8 = vadd.f32 %v1507_v34, %v1438_v1  ;;  %v1518_v17 = vadd.f32 %v1516_v26, %v1449_v37  ;;  %v1534_v35 = vcombine.low %v1530_v45, %v1531_v44  ;;  %s2330_s1 = sshll.u32 %s4270_s9, 4 }
 0x1b0   : > { %v1558_v20 = vmul.f32 %v1556_v55, %v3654_v53  ;;  %v1543_v63 = vcombine.low %v1539_v7, %v1540_v13  ;;  %v1568_v47 = vmul.f32 %v1567_v52, %v3650_v30  ;;  %v1569_v31 = vmul.f32 %v1567_v52, %v3654_v53  ;;  %s197_s2 = scalar_lea.vmem %s4271_s3, %s2330_s1 }
 0x1b1   : > { %v1579_v18 = vmul.f32 %v1578_v61, %v3650_v30  ;;  %v1552_v25 = vcombine.low %v1548_v57, %v1549_v15  ;;  %v1580_v62 = vmul.f32 %v1578_v61, %v3654_v53  ;;  %v1590_v54 = vmul.f32 %v1589_v6, %v3650_v30 }
 0x1b2   : > { %v1561_v22 = vcombine.low %v1557_v27, %v1558_v20  ;;  %v1572_v36 = vcombine.low %v1568_v47, %v1569_v31  ;;  %v1591_v48 = vmul.f32 %v1589_v6, %v3654_v53  ;;  %v1601_v49 = vmul.f32 %v1600_v23, %v3650_v30 }
 0x1b3   : > { %v1602_v1 = vmul.f32 %v1600_v23, %v3654_v53  ;;  %v1583_v24 = vcombine.low %v1579_v18, %v1580_v62  ;;  %v1612_v28 = vmul.f32 %v1611_v51, %v3650_v30  ;;  %v1613_v60 = vmul.f32 %v1611_v51, %v3654_v53 }
 0x1b4   : > { %v2274_v37 = vrot.slane %v1561_v22, 9  ;;  %v1677_v2 = vstv %s3660_s21  ;;  %v2276_v19 = vrot.slane %v1572_v36, 9  ;;  %v1594_v50 = vcombine.low %v1590_v54, %v1591_v48  ;;  %v1690_v36 = vpop.permute.xlu1 %1689 }
 0x1b5   : > { %v1623_v21 = vmul.f32 %v1622_v41, %v3650_v30  ;;  %v1527_v12 = vadd.f32 %v1525_v59, %v3629_v38  ;;  %v1605_v29 = vcombine.low %v1601_v49, %v1602_v1  ;;  %v1616_v16 = vcombine.low %v1612_v28, %v1613_v60  ;;  %v1688_v1 = vpop.permute.xlu0 %1687 }
 0x1b6   : > { %v1624_v11 = vmul.f32 %v1622_v41, %v3654_v53  ;;  %v1536_v55 = vadd.f32 %v1534_v35, %v3635_v3  ;;  %v1545_v52 = vadd.f32 %v1543_v63, %v3637_v40  ;;  %v1554_v61 = vadd.f32 %v1552_v25, %v3641_v39 }
 0x1b7   : > { %v1634_v6 = vmul.f32 %v1633_v14, %v3650_v30  ;;  %v1565_v23 = vadd.f32 %v2274_v37, %v1509_v8  ;;  %v1576_v51 = vadd.f32 %v2276_v19, %v1518_v17  ;;  %v2278_v42 = vrot.slane %v1583_v24, 9 }
 0x1b8   : > { %v1635_v38 = vmul.f32 %v1633_v14, %v3654_v53  ;;  %v2280_v41 = vrot.slane %v1594_v50, 9  ;;  %v1627_v58 = vcombine.low %v1623_v21, %v1624_v11  ;;  %v1645_v43 = vmul.f32 %v1644_v56, %v3650_v30 }
 0x1b9   : > { %v1646_v3 = vmul.f32 %v1644_v56, %v3654_v53  ;;  %v2282_v40 = vrot.slane %v1605_v29, 9  ;;  %v2284_v39 = vrot.slane %v1616_v16, 9  ;;  %v1656_v33 = vmul.f32 %v1655_v32, %v3650_v30 }
 0x1ba   : > { %v1638_v5 = vcombine.low %v1634_v6, %v1635_v38  ;;  %v1657_v45 = vmul.f32 %v1655_v32, %v3654_v53  ;;  %v1667_v44 = vmul.f32 %v1666_v46, %v3650_v30  ;;  %v1668_v34 = vmul.f32 %v1666_v46, %v3654_v53 }
 0x1bb   : > { %v1649_v0 = vcombine.low %v1645_v43, %v1646_v3  ;;  %v1587_v26 = vadd.f32 %v2278_v42, %v1527_v12  ;;  %v1678_v7 = vmul.f32 %v1677_v2, %v3650_v30  ;;  %v1679_v13 = vmul.f32 %v1677_v2, %v3654_v53 }
 0x1bc   : > { %v2286_v14 = vrot.slane %v1627_v58, 10  ;;  %v2288_v56 = vrot.slane %v1638_v5, 10  ;;  %v1660_v57 = vcombine.low %v1656_v33, %v1657_v45  ;;  %v1671_v15 = vcombine.low %v1667_v44, %v1668_v34 }
 0x1bd   : > { %v1598_v32 = vadd.f32 %v2280_v41, %v1536_v55  ;;  %v1609_v46 = vadd.f32 %v2282_v40, %v1545_v52  ;;  %v1620_v30 = vadd.f32 %v2284_v39, %v1554_v61  ;;  %v1682_v59 = vcombine.low %v1678_v7, %v1679_v13 }
 0x1be   : > { %v1631_v53 = vadd.f32 %v2286_v14, %v1565_v23  ;;  %v1642_v27 = vadd.f32 %v2288_v56, %v1576_v51  ;;  %v2290_v8 = vrot.slane %v1649_v0, 10  ;;  %v1695_v17 = vstv %s3668_s13 }
 0x1bf   : > { %v2292_v35 = vrot.slane %v1660_v57, 10  ;;  %v2294_v20 = vrot.slane %v1671_v15, 10  ;;  %v1704_v63 = vstv %s3674_s27  ;;  %v1713_v47 = vstv %s3679_s29 }
 0x1c0   : > { %v1653_v31 = vadd.f32 %v2290_v8, %v1587_v26  ;;  %v2296_v18 = vrot.slane %v1682_v59, 10  ;;  %v1722_v25 = vstv %s3682_s12  ;;  %v1731_v22 = vstv %s3687_s23 }
 0x1c1   : > { %v1664_v62 = vadd.f32 %v2292_v35, %v1598_v32  ;;  %v1675_v54 = vadd.f32 %v2294_v20, %v1609_v46  ;;  %v1740_v48 = vstv %s3691_s30  ;;  %v1749_v49 = vstv %s3696_s7 }
 0x1c2   : > { %v1686_v37 = vadd.f32 %v2296_v18, %v1620_v30  ;;  %v1760_v24 = vstv %s3700_s14  ;;  %v1771_v28 = vstv %s3704_s16  ;;  %v1782_v60 = vstv %s3708_s17 }
 0x1c3   : > { %v1793_v2 = vstv %s3714_s0  ;;  %v1804_v19 = vstv %s3717_s4  ;;  %v1815_v50 = vstv %s3721_s8  ;;  %v1826_v21 = vstv %s3724_s15 }
 0x1c4   : > { %v1837_v12 = vstv %s3729_s24  ;;  %v1848_v29 = vstv %s3734_s18  ;;  %v1859_v16 = vstv %s3736_s11  ;;  %v3759_v11 = vsel %vm1691_vm7, %v1688_v1, %v1690_v36 }
 0x1c5   : > { %v3763_v55 = vsel %vm1691_vm7, %v1690_v36, %v1688_v1  ;;  %v1696_v52 = vmul.f32 %v1695_v17, %v3759_v11  ;;  %v1705_v61 = vmul.f32 %v1704_v63, %v3759_v11  ;;  %v1714_v6 = vmul.f32 %v1713_v47, %v3759_v11 }
 0x1c6   : > { %v1697_v23 = vmul.f32 %v1695_v17, %v3763_v55  ;;  %v1706_v51 = vmul.f32 %v1704_v63, %v3763_v55  ;;  %v1715_v42 = vmul.f32 %v1713_v47, %v3763_v55  ;;  %v1723_v38 = vmul.f32 %v1722_v25, %v3759_v11 }
 0x1c7   : > { %v1724_v41 = vmul.f32 %v1722_v25, %v3763_v55  ;;  %v1732_v4 = vmul.f32 %v1731_v22, %v3759_v11  ;;  %v1733_v58 = vmul.f32 %v1731_v22, %v3763_v55  ;;  %v1741_v43 = vmul.f32 %v1740_v48, %v3759_v11 }
 0x1c8   : > { %v1700_v3 = vcombine.low %v1696_v52, %v1697_v23  ;;  %v1709_v40 = vcombine.low %v1705_v61, %v1706_v51  ;;  %v1718_v39 = vcombine.low %v1714_v6, %v1715_v42  ;;  %v1742_v5 = vmul.f32 %v1740_v48, %v3763_v55 }
 0x1c9   : > { %v1727_v33 = vcombine.low %v1723_v38, %v1724_v41  ;;  %v1736_v0 = vcombine.low %v1732_v4, %v1733_v58  ;;  %v1750_v45 = vmul.f32 %v1749_v49, %v3759_v11  ;;  %v1751_v44 = vmul.f32 %v1749_v49, %v3763_v55 }
 0x1ca   : > { %v1870_v34 = vstv %s3748_s10  ;;  %v1702_v26 = vadd.f32 %v1700_v3, %v1631_v53  ;;  %v1711_v7 = vadd.f32 %v1709_v40, %v1642_v27  ;;  %v1720_v13 = vadd.f32 %v1718_v39, %v1653_v31 }
 0x1cb   : > { %v1729_v14 = vadd.f32 %v1727_v33, %v1664_v62  ;;  %v1745_v56 = vcombine.low %v1741_v43, %v1742_v5  ;;  %v1754_v57 = vcombine.low %v1750_v45, %v1751_v44  ;;  %v1761_v15 = vmul.f32 %v1760_v24, %v3759_v11 }
 0x1cc   : > { %v1738_v32 = vadd.f32 %v1736_v0, %v1675_v54  ;;  %v1762_v46 = vmul.f32 %v1760_v24, %v3763_v55  ;;  %v1772_v30 = vmul.f32 %v1771_v28, %v3759_v11  ;;  %v1773_v59 = vmul.f32 %v1771_v28, %v3763_v55 }
 0x1cd   : > { %v2304_v8 = vrot.slane %v1754_v57, 9  ;;  %v1783_v17 = vmul.f32 %v1782_v60, %v3759_v11  ;;  %v1784_v35 = vmul.f32 %v1782_v60, %v3763_v55  ;;  %v1794_v53 = vmul.f32 %v1793_v2, %v3759_v11 }
 0x1ce   : > { %v1765_v27 = vcombine.low %v1761_v15, %v1762_v46  ;;  %v1776_v20 = vcombine.low %v1772_v30, %v1773_v59  ;;  %v1795_v63 = vmul.f32 %v1793_v2, %v3763_v55  ;;  %v1805_v47 = vmul.f32 %v1804_v19, %v3759_v11 }
 0x1cf   : > { %v1747_v31 = vadd.f32 %v1745_v56, %v1686_v37  ;;  %v1787_v18 = vcombine.low %v1783_v17, %v1784_v35  ;;  %v1806_v25 = vmul.f32 %v1804_v19, %v3763_v55  ;;  %v1816_v22 = vmul.f32 %v1815_v50, %v3759_v11 }
 0x1d0   : > { %v2306_v62 = vrot.slane %v1765_v27, 9  ;;  %v2308_v54 = vrot.slane %v1776_v20, 9  ;;  %v1798_v36 = vcombine.low %v1794_v53, %v1795_v63  ;;  %v1817_v48 = vmul.f32 %v1815_v50, %v3763_v55 }
 0x1d1   : > { %v2310_v49 = vrot.slane %v1787_v18, 9  ;;  %v1809_v1 = vcombine.low %v1805_v47, %v1806_v25  ;;  %v1827_v24 = vmul.f32 %v1826_v21, %v3759_v11  ;;  %v1828_v37 = vmul.f32 %v1826_v21, %v3763_v55 }
 0x1d2   : > { %v1758_v28 = vadd.f32 %v2304_v8, %v1702_v26  ;;  %v1769_v60 = vadd.f32 %v2306_v62, %v1711_v7  ;;  %v2312_v2 = vrot.slane %v1798_v36, 9  ;;  %v1820_v19 = vcombine.low %v1816_v22, %v1817_v48 }
 0x1d3   : > { %v1780_v52 = vadd.f32 %v2308_v54, %v1720_v13  ;;  %v2314_v61 = vrot.slane %v1809_v1, 9  ;;  %v1831_v6 = vcombine.low %v1827_v24, %v1828_v37  ;;  %v1838_v50 = vmul.f32 %v1837_v12, %v3759_v11 }
 0x1d4   : > { %v1791_v23 = vadd.f32 %v2310_v49, %v1729_v14  ;;  %v2316_v51 = vrot.slane %v1820_v19, 10  ;;  %v1839_v42 = vmul.f32 %v1837_v12, %v3763_v55  ;;  %v1849_v21 = vmul.f32 %v1848_v29, %v3759_v11 }
 0x1d5   : > { %v1802_v38 = vadd.f32 %v2312_v2, %v1738_v32  ;;  %v2318_v41 = vrot.slane %v1831_v6, 10  ;;  %v1850_v4 = vmul.f32 %v1848_v29, %v3763_v55  ;;  %v1860_v58 = vmul.f32 %v1859_v16, %v3759_v11 }
 0x1d6   : > { %v1824_v43 = vadd.f32 %v2316_v51, %v1758_v28  ;;  %v1842_v3 = vcombine.low %v1838_v50, %v1839_v42  ;;  %v1861_v40 = vmul.f32 %v1859_v16, %v3763_v55  ;;  %v1871_v39 = vmul.f32 %v1870_v34, %v3759_v11 }
 0x1d7   : > { %v1813_v5 = vadd.f32 %v2314_v61, %v1747_v31  ;;  %v1835_v12 = vadd.f32 %v2318_v41, %v1769_v60  ;;  %v1853_v33 = vcombine.low %v1849_v21, %v1850_v4  ;;  %v1872_v0 = vmul.f32 %v1870_v34, %v3763_v55 }
 0x1d8   : > { %v2320_v45 = vrot.slane %v1842_v3, 10  ;;  %v1864_v44 = vcombine.low %v1860_v58, %v1861_v40  ;;  %v1884_v29 = vrot.slane %v1824_v43, %v2745_v9  ;;  %v1888_v26 = vrot.slane %v1824_v43, %v2747_v10 }
 0x1d9   : > { %v2322_v7 = vrot.slane %v1853_v33, 10  ;;  %v1875_v13 = vcombine.low %v1871_v39, %v1872_v0  ;;  %v1895_v14 = vrot.slane %v1835_v12, %v2745_v9  ;;  %v1899_v16 = vrot.slane %v1835_v12, %v2747_v10 }
 0x1da   : > { %v1846_v11 = vadd.f32 %v2320_v45, %v1780_v52  ;;  %v2324_v56 = vrot.slane %v1864_v44, 10 }
 0x1db   : > { %v1857_v57 = vadd.f32 %v2322_v7, %v1791_v23  ;;  %v2326_v15 = vrot.slane %v1875_v13, 10  ;;  %v1947_v55 = vsel %vm1946_vm8, %v1884_v29, %v1895_v14  ;;  %v1948_v34 = vsel %vm1946_vm8, %v1888_v26, %v1899_v16 }
 0x1dc   : > { %v1868_v32 = vadd.f32 %v2324_v56, %v1802_v38  ;;  %v1906_v46 = vrot.slane %v1846_v11, %v2745_v9  ;;  %v1910_v30 = vrot.slane %v1846_v11, %v2747_v10 }
 0x1dd   : > { %v1879_v59 = vadd.f32 %v2326_v15, %v1813_v5  ;;  %v1917_v8 = vrot.slane %v1857_v57, %v2745_v9  ;;  %v1921_v17 = vrot.slane %v1857_v57, %v2747_v10 }
 0x1de   : > { %v1928_v35 = vrot.slane %v1868_v32, %v2745_v9  ;;  %v1932_v53 = vrot.slane %v1868_v32, %v2747_v10  ;;  %v1950_v27 = vsel %vm1949_vm9, %v1947_v55, %v1906_v46  ;;  %v1951_v20 = vsel %vm1949_vm9, %v1948_v34, %v1910_v30 }
 0x1df   : > { %v1939_v63 = vrot.slane %v1879_v59, %v2745_v9  ;;  %v1943_v47 = vrot.slane %v1879_v59, %v2747_v10  ;;  %v1953_v31 = vsel %vm1952_vm10, %v1950_v27, %v1917_v8  ;;  %v1954_v18 = vsel %vm1952_vm10, %v1951_v20, %v1921_v17 }
 0x1e0   : > { %v1956_v25 = vsel %vm1955_vm11, %v1953_v31, %v1928_v35  ;;  %v1957_v22 = vsel %vm1955_vm11, %v1954_v18, %v1932_v53 }
 0x1e1   : > { %v1959_v62 = vsel %vm1958_vm12, %v1956_v25, %v1939_v63  ;;  %v1960_v54 = vsel %vm1958_vm12, %v1957_v22, %v1943_v47 }
 0x1e2   : > { %1961 = vst [vmem:[%s197_s2] sm:$0x3f] %v1959_v62  ;;  %1962 = vst [vmem:[%s197_s2 + $0x8] sm:$0x3f] %v1960_v54 }
 0x1e3 PF: > { %s4272_s20 = sld [smem:[#allocation8_spill]] }
 0x1e9   : > { %s15_s12 = sadd.s32 1, %s4272_s20  }
 0x1ea   : > { %p12_p5 = scmp.ge.s32.totalorder %s15_s12, 4  }
 0x1ec   :  { %14 = sbr.rel (!%p12_p5) target bundleno = 7 (0x7), region = 71 }
 0x1f1   :  { %1984 = vsyncpa [#allocation3], 1 }
 0x1f2   :  { %1986 = vsyncpa [#allocation3 + $0x1], 1 }
 0x1f3   :  { %1987 = vsyncpa [#allocation5], 1 }

</bundles_post_ra>
